<compile_context>
chip_gen: v6e
topology: v6e:2x2x1
jax: 0.10.0
libtpu: 0.0.40
codegen_flags: <defaults>
</compile_context>

<pallas_src>
import math

import jax
import jax.numpy as jnp
from jax.experimental import pallas as pl
from jax.experimental.pallas import tpu as pltpu

# ---- model hyper-parameters (defaults from the PyTorch config) ----
INPUT_SIZE = 5      # num_sensors
HIDDEN = 64         # lstm hidden_size == gnn input_dim
GNN_HID = 32
GNN_OUT = 64
FUSION_OUT = 128
GRAPH_THRESHOLD = 0.5

BATCH = 2
SEQ = 8

B_PAD = 8           # batch padded to one f32 sublane group
I_PAD = 8           # input feature dim padded for aligned K
LANE = 128          # lane width of the epilogue pack / padded output width

# ---- packed "recurrence" buffer (lane width 4H = 256) row offsets ----
R_WIH1, R_WHH1, R_B1 = 0, 8, 72          # (8,256) [rows 5:8 zero], (64,256), (1,256)
R_WIH2, R_WHH2, R_B2 = 80, 144, 208      # (64,256), (64,256), (1,256)
REC_ROWS = 216

# ---- packed "epilogue" buffer (lane width 128) row offsets ----
E_GW1, E_GB1 = 0, 64                     # gcn_w1 (64,32)->cols 0:32 ; gcn_b1 row
E_GW2, E_GB2 = 72, 200                   # gcn_w2 (32,64)-> rows 0:32/cols 0:64 of 128x128
E_WFL, E_WFG, E_BF = 208, 272, 400       # fusion weights (lstm half / gnn half) + bias
E_WR, E_BR = 408, 536                    # reconstruction (128,5)->cols 0:5 of 128x128
EPI_ROWS = 544


# ----------------------------------------------------------------------------
# LSTM cell epilogue: gates (pre-activation, gate order [i, f, o, g]) -> h, c
# ----------------------------------------------------------------------------
def _gates_to_hc(gates, c):
    H = HIDDEN
    # sigmoid(x) == 0.5 * tanh(0.5 * x) + 0.5 : one EUP push for the [i|f|o]
    # slab, no full-precision divide on the per-step critical path.
    sig = 0.5 * jnp.tanh(0.5 * gates[:, :3 * H]) + 0.5
    g = jnp.tanh(gates[:, 3 * H:])
    i = sig[:, :H]
    f = sig[:, H:2 * H]
    o = sig[:, 2 * H:3 * H]
    c_new = f * c + i * g
    h_new = o * jnp.tanh(c_new)
    return h_new, c_new


# ----------------------------------------------------------------------------
# Single fused kernel: 2-layer LSTM encoder -> folded GCN -> fusion -> recon
# ----------------------------------------------------------------------------
def hybrid_kernel(x_ref,        # (S*B_PAD + B_PAD, 8): time-major x, then d in col 0
                  rec_ref,      # (REC_ROWS, 256): packed LSTM weights (VMEM)
                  epi_hbm_ref,  # (EPI_ROWS, 128): packed epilogue weights (ANY/HBM)
                  out_ref,      # (B_PAD, 128)
                  gx_ref,       # scratch (S*B_PAD, 256): precomputed layer-1 input term
                  epi_ref,      # scratch (EPI_ROWS, 128): epilogue weights landing pad
                  sem):         # DMA semaphore
    H = HIDDEN
    SB = SEQ * B_PAD

    # Kick off the epilogue-weight DMA immediately; wait only after the
    # serial LSTM recurrence (manual 1-deep pipelining for a gridless kernel).
    epi_cp = pltpu.make_async_copy(epi_hbm_ref, epi_ref, sem)
    epi_cp.start()

    # Hoisted layer-1 input projection: one (64, 8) @ (8, 256) matmul, parked
    # in VMEM scratch so its 16 vregs are not live across the unrolled loop.
    gx_ref[...] = (
        jnp.dot(x_ref[0:SB, :], rec_ref[R_WIH1:R_WIH1 + I_PAD, :],
                preferred_element_type=jnp.float32)
        + rec_ref[R_B1:R_B1 + 1, :])

    h1 = jnp.zeros((B_PAD, H), jnp.float32)
    c1 = jnp.zeros((B_PAD, H), jnp.float32)
    h2 = jnp.zeros((B_PAD, H), jnp.float32)
    c2 = jnp.zeros((B_PAD, H), jnp.float32)

    # Fully unrolled recurrence (S=8 static).  Weight slabs are read from the
    # packed ref at each use (no long live ranges); every gx slice starts on a
    # sublane-group boundary.  Inter-layer dropout is an eval-mode no-op.
    for t in range(SEQ):
        # layer 1: only the recurrent matmul per step (input term precomputed)
        g1 = gx_ref[t * B_PAD:(t + 1) * B_PAD, :] + jnp.dot(
            h1, rec_ref[R_WHH1:R_WHH1 + H, :], preferred_element_type=jnp.float32)
        h1, c1 = _gates_to_hc(g1, c1)

        # layer 2: two K=64 matmuls (no lane concat on the serial chain)
        g2 = (jnp.dot(h1, rec_ref[R_WIH2:R_WIH2 + H, :],
                      preferred_element_type=jnp.float32)
              + jnp.dot(h2, rec_ref[R_WHH2:R_WHH2 + H, :],
                        preferred_element_type=jnp.float32)
              + rec_ref[R_B2:R_B2 + 1, :])
        h2, c2 = _gates_to_hc(g2, c2)

    lstm_features = h2                    # (B_PAD, H); rows >= BATCH are padding

    # Epilogue weights are needed only from here on.
    epi_cp.wait()

    # ---- folded 2-layer GCN + node-mean aggregation ----
    # node_features rows are identical (= batch-mean of lstm_features), so
    #   A_hat @ X          == d[:, None] * x_mean          (d = rowsum of A_hat)
    #   mean_i(A_hat @ H1) == (1/N) * d @ H1               (A_hat symmetric)
    # Zero-padded rows/cols of d and of the packed GCN weights contribute 0.
    x_mean = jnp.mean(lstm_features[0:BATCH, :], axis=0, keepdims=True)   # (1, H)
    d = x_ref[SB:SB + B_PAD, 0:1]                                          # (8, 1)
    z1 = jnp.dot(x_mean, epi_ref[E_GW1:E_GW1 + H, :],
                 preferred_element_type=jnp.float32)                       # (1, 128)
    h1g = jnp.maximum(d * z1 + epi_ref[E_GB1:E_GB1 + 1, :], 0.0)           # (8, 128)
    agg = jnp.sum(d * h1g, axis=0, keepdims=True) * (1.0 / INPUT_SIZE)     # (1, 128)
    gnn_agg = (jnp.dot(agg, epi_ref[E_GW2:E_GW2 + LANE, :],
                       preferred_element_type=jnp.float32)
               + epi_ref[E_GB2:E_GB2 + 1, :])                              # (1, 128)
    # TODO(synk): GraphNeuralNetworkLayer source not provided; symmetric-norm
    #             GCN with ReLU after layer 1 only is assumed.

    # ---- fusion (concatenate == split matmul) + reconstruction ----
    fused = (jnp.dot(lstm_features, epi_ref[E_WFL:E_WFL + H, :],
                     preferred_element_type=jnp.float32)
             + jnp.dot(gnn_agg, epi_ref[E_WFG:E_WFG + LANE, :],
                       preferred_element_type=jnp.float32)                 # bcast over B
             + epi_ref[E_BF:E_BF + 1, :])                                  # (8, 128)
    out_ref[...] = (jnp.dot(fused, epi_ref[E_WR:E_WR + LANE, :],
                            preferred_element_type=jnp.float32)
                    + epi_ref[E_BR:E_BR + 1, :])                           # (8, 128)


# ----------------------------------------------------------------------------
# Glue: correlation-thresholded sensor graph -> GCN-normalized dense adjacency
# TODO(synk): `create_sensor_graph` source not provided; standard correlation
#             graph + symmetric GCN normalization assumed.
# ----------------------------------------------------------------------------
def build_normalized_adjacency(x_bsi, threshold):
    B, S, N = x_bsi.shape
    flat = x_bsi.reshape(B * S, N)
    centered = flat - flat.mean(axis=0, keepdims=True)
    std = jnp.sqrt(jnp.mean(centered ** 2, axis=0, keepdims=True)) + 1e-8
    normed = centered / std
    corr = (normed.T @ normed) / (B * S)
    adj = (jnp.abs(corr) > threshold).astype(jnp.float32)
    adj = adj * (1.0 - jnp.eye(N, dtype=jnp.float32))      # drop self-correlation
    a_hat = adj + jnp.eye(N, dtype=jnp.float32)            # GCN self-loops
    deg = a_hat.sum(axis=1)
    dinv = 1.0 / jnp.sqrt(deg)
    return a_hat * dinv[:, None] * dinv[None, :]


# ----------------------------------------------------------------------------
# Full forward pass (mirrors LSTMGNNHybridModel.forward)
# ----------------------------------------------------------------------------
def hybrid_forward(x, rec_pack, epi_pack):
    B, S, N = x.shape

    # Sensor graph -> row sums of the normalized adjacency.
    a_hat = build_normalized_adjacency(x, GRAPH_THRESHOLD)           # (N, N)
    d = a_hat.sum(axis=1)                                            # (N,)

    # Time-major input, batch padded to a full 8-row sublane group, feature dim
    # padded to 8; graph row-sums appended as 8 extra rows (column 0).
    x_tm = jnp.transpose(x, (1, 0, 2))                               # (S, B, N)
    x_rows = jnp.zeros((S, B_PAD, I_PAD), jnp.float32).at[:, :B, :N].set(x_tm)
    x_rows = x_rows.reshape(S * B_PAD, I_PAD)
    d_rows = jnp.zeros((B_PAD, I_PAD), jnp.float32).at[:N, :].set(d[:, None])
    x_op = jnp.concatenate([x_rows, d_rows], axis=0)                 # (72, 8)

    rec_full = pl.pallas_call(
        hybrid_kernel,
        out_shape=jax.ShapeDtypeStruct((B_PAD, LANE), jnp.float32),
        in_specs=[
            pl.BlockSpec(memory_space=pltpu.MemorySpace.VMEM),       # x + d
            pl.BlockSpec(memory_space=pltpu.MemorySpace.VMEM),       # LSTM pack
            pl.BlockSpec(memory_space=pl.ANY),                       # epilogue pack (deferred DMA)
        ],
        out_specs=pl.BlockSpec(memory_space=pltpu.MemorySpace.VMEM),
        scratch_shapes=[
            pltpu.VMEM((SEQ * B_PAD, 4 * HIDDEN), jnp.float32),      # layer-1 input term
            pltpu.VMEM((EPI_ROWS, LANE), jnp.float32),               # epilogue weights
            pltpu.SemaphoreType.DMA(()),
        ],
    )(x_op, rec_pack, epi_pack)

    rec = rec_full[:B, :N]                                           # (B, N)
    # Reconstruction is constant over the sequence axis -> free XLA broadcast.
    return jnp.broadcast_to(rec[:, None, :], (B, S, N))


# ----------------------------------------------------------------------------
# Parameter init (synthetic, PyTorch-style uniform bounds) and packing
#
# Gate columns use order [i, f, o, g]; LSTM weights are stored pre-transposed
# (in_dim, 4H) with bias = b_ih + b_hh.
# TODO(synk): loading real PyTorch weights requires permuting gate columns from
#             [i, f, g, o], summing b_ih + b_hh and transposing before packing.
# ----------------------------------------------------------------------------
def init_params(key):
    ks = jax.random.split(key, 15)

    def u(k, shape, scale):
        return jax.random.uniform(k, shape, jnp.float32, -scale, scale)

    H, I = HIDDEN, INPUT_SIZE
    s_lstm = 1.0 / math.sqrt(H)
    s_gcn1 = 1.0 / math.sqrt(H)
    s_gcn2 = 1.0 / math.sqrt(GNN_HID)
    s_fuse = 1.0 / math.sqrt(H + GNN_OUT)
    s_rec = 1.0 / math.sqrt(FUSION_OUT)

    return {
        "wih1": u(ks[0], (I, 4 * H), s_lstm),
        "whh1": u(ks[1], (H, 4 * H), s_lstm),
        "b1":   u(ks[2], (1, 4 * H), s_lstm),
        "wih2": u(ks[3], (H, 4 * H), s_lstm),
        "whh2": u(ks[4], (H, 4 * H), s_lstm),
        "b2":   u(ks[5], (1, 4 * H), s_lstm),
        "gcn_w1": u(ks[6], (H, GNN_HID), s_gcn1),
        "gcn_b1": u(ks[7], (1, GNN_HID), s_gcn1),
        "gcn_w2": u(ks[8], (GNN_HID, GNN_OUT), s_gcn2),
        "gcn_b2": u(ks[9], (1, GNN_OUT), s_gcn2),
        "w_fuse_lstm": u(ks[10], (H, FUSION_OUT), s_fuse),
        "w_fuse_gnn":  u(ks[11], (GNN_OUT, FUSION_OUT), s_fuse),
        "b_fuse":      u(ks[12], (1, FUSION_OUT), s_fuse),
        "w_rec": u(ks[13], (FUSION_OUT, I), s_rec),
        "b_rec": u(ks[14], (1, I), s_rec),
    }


def pack_params(p):
    """Pack the 15 natural-shape params into two contiguous lane-aligned buffers."""
    H = HIDDEN
    rec = jnp.zeros((REC_ROWS, 4 * H), jnp.float32)
    rec = rec.at[R_WIH1:R_WIH1 + INPUT_SIZE].set(p["wih1"])
    rec = rec.at[R_WHH1:R_WHH1 + H].set(p["whh1"])
    rec = rec.at[R_B1:R_B1 + 1].set(p["b1"])
    rec = rec.at[R_WIH2:R_WIH2 + H].set(p["wih2"])
    rec = rec.at[R_WHH2:R_WHH2 + H].set(p["whh2"])
    rec = rec.at[R_B2:R_B2 + 1].set(p["b2"])

    epi = jnp.zeros((EPI_ROWS, LANE), jnp.float32)
    epi = epi.at[E_GW1:E_GW1 + H, :GNN_HID].set(p["gcn_w1"])
    epi = epi.at[E_GB1, :GNN_HID].set(p["gcn_b1"][0])
    epi = epi.at[E_GW2:E_GW2 + GNN_HID, :GNN_OUT].set(p["gcn_w2"])
    epi = epi.at[E_GB2, :GNN_OUT].set(p["gcn_b2"][0])
    epi = epi.at[E_WFL:E_WFL + H, :].set(p["w_fuse_lstm"])
    epi = epi.at[E_WFG:E_WFG + GNN_OUT, :].set(p["w_fuse_gnn"])
    epi = epi.at[E_BF, :].set(p["b_fuse"][0])
    epi = epi.at[E_WR:E_WR + FUSION_OUT, :INPUT_SIZE].set(p["w_rec"])
    epi = epi.at[E_BR, :INPUT_SIZE].set(p["b_rec"][0])
    return rec, epi


# ----------------------------------------------------------------------------
# Pure-JAX reference (unfused, natural-shape params) for a golden check.
# ----------------------------------------------------------------------------
def reference_forward(x, p):
    B, S, N = x.shape
    H = HIDDEN

    def cell(h, c, gates):
        i = jax.nn.sigmoid(gates[:, 0:H])
        f = jax.nn.sigmoid(gates[:, H:2 * H])
        o = jax.nn.sigmoid(gates[:, 2 * H:3 * H])
        g = jnp.tanh(gates[:, 3 * H:4 * H])
        c_new = f * c + i * g
        return o * jnp.tanh(c_new), c_new

    h1 = jnp.zeros((B, H), jnp.float32); c1 = jnp.zeros((B, H), jnp.float32)
    h2 = jnp.zeros((B, H), jnp.float32); c2 = jnp.zeros((B, H), jnp.float32)
    for t in range(S):
        xt = x[:, t, :]
        h1, c1 = cell(h1, c1, xt @ p["wih1"] + h1 @ p["whh1"] + p["b1"])
        h2, c2 = cell(h2, c2, h1 @ p["wih2"] + h2 @ p["whh2"] + p["b2"])
    lstm_features = h2                                                 # (B, H)

    a_hat = build_normalized_adjacency(x, GRAPH_THRESHOLD)             # (N, N)
    node_x = jnp.broadcast_to(lstm_features.mean(axis=0, keepdims=True), (N, H))
    h1g = jnp.maximum(a_hat @ node_x @ p["gcn_w1"] + p["gcn_b1"], 0.0)
    gnn = a_hat @ h1g @ p["gcn_w2"] + p["gcn_b2"]                      # (N, GNN_OUT)
    gnn_agg = jnp.broadcast_to(gnn.mean(axis=0, keepdims=True), (B, GNN_OUT))
    fused = lstm_features @ p["w_fuse_lstm"] + gnn_agg @ p["w_fuse_gnn"] + p["b_fuse"]
    rec = fused @ p["w_rec"] + p["b_rec"]                              # (B, N)
    return jnp.broadcast_to(rec[:, None, :], (B, S, N))


if __name__ == "__main__":
    key = jax.random.PRNGKey(0)
    pkey, xkey = jax.random.split(key)
    params = init_params(pkey)
    rec_pack, epi_pack = pack_params(params)
    x = jax.random.normal(xkey, (BATCH, SEQ, INPUT_SIZE), jnp.float32)

    fwd = jax.jit(hybrid_forward)
    out = jax.block_until_ready(fwd(x, rec_pack, epi_pack))

    assert out.shape == (BATCH, SEQ, INPUT_SIZE), out.shape
    assert out.dtype == jnp.float32
    assert bool(jnp.all(jnp.isfinite(out)))

    ref = reference_forward(x, params)
    err = float(jnp.max(jnp.abs(out - ref)))
    assert err < 2e-2, f"max abs err vs reference: {err}"
    print("KERNEL_OK")
</pallas_src>

<mosaic_0001>
module attributes {stable_mosaic.version = 11 : i64} {
  func.func @hybrid_kernel(%arg0: memref<72x8xf32, #tpu.memory_space<vmem>>, %arg1: memref<216x256xf32, #tpu.memory_space<vmem>>, %arg2: memref<544x128xf32, #tpu.memory_space<any>>, %arg3: memref<8x128xf32, #tpu.memory_space<vmem>>, %arg4: memref<64x256xf32, #tpu.memory_space<vmem>>, %arg5: memref<544x128xf32, #tpu.memory_space<vmem>>, %arg6: memref<!tpu.dma_semaphore, #tpu.memory_space<semaphore_mem>>) attributes {dimension_semantics = [], scalar_prefetch = 0 : i64, scratch_operands = 3 : i64, tpu.core_type = #tpu.core_type<tc>} {
    tpu.enqueue_dma source(%arg2 : memref<544x128xf32, #tpu.memory_space<any>>) target(%arg5 : memref<544x128xf32, #tpu.memory_space<vmem>>) target_semaphore(%arg6 : memref<!tpu.dma_semaphore, #tpu.memory_space<semaphore_mem>>)
    %c0 = arith.constant 0 : index
    %c0_0 = arith.constant 0 : index
    %0 = vector.load %arg0[%c0, %c0_0] : memref<72x8xf32, #tpu.memory_space<vmem>>, vector<64x8xf32>
    %c0_1 = arith.constant 0 : index
    %c0_2 = arith.constant 0 : index
    %1 = vector.load %arg1[%c0_1, %c0_2] : memref<216x256xf32, #tpu.memory_space<vmem>>, vector<8x256xf32>
    %cst = arith.constant dense<0.000000e+00> : vector<64x256xf32>
    %2 = tpu.matmul %0, %1, %cst {dimension_numbers = #tpu.dot_dimension_numbers<[1], [0], [0], [1], [0, 0, 1, 1], [], []>} : vector<64x8xf32>, vector<8x256xf32>, vector<64x256xf32> -> vector<64x256xf32>
    %c72 = arith.constant 72 : index
    %c0_3 = arith.constant 0 : index
    %3 = vector.load %arg1[%c72, %c0_3] : memref<216x256xf32, #tpu.memory_space<vmem>>, vector<1x256xf32>
    %4 = vector.broadcast %3 : vector<1x256xf32> to vector<64x256xf32>
    %5 = arith.addf %2, %4 : vector<64x256xf32>
    %c0_4 = arith.constant 0 : index
    %c0_5 = arith.constant 0 : index
    %6 = vector.load %arg4[%c0_4, %c0_5] : memref<64x256xf32, #tpu.memory_space<vmem>>, vector<64x256xf32>
    tpu.vector_store %arg4[%c0_4, %c0_5], %5 {strides = array<i32>} : memref<64x256xf32, #tpu.memory_space<vmem>>, vector<64x256xf32>,
    %cst_6 = arith.constant 0.000000e+00 : f32
    %7 = vector.broadcast %cst_6 : f32 to vector<8x64xf32>
    %cst_7 = arith.constant 0.000000e+00 : f32
    %8 = vector.broadcast %cst_7 : f32 to vector<8x64xf32>
    %cst_8 = arith.constant 0.000000e+00 : f32
    %9 = vector.broadcast %cst_8 : f32 to vector<8x64xf32>
    %cst_9 = arith.constant 0.000000e+00 : f32
    %10 = vector.broadcast %cst_9 : f32 to vector<8x64xf32>
    %c0_10 = arith.constant 0 : index
    %c0_11 = arith.constant 0 : index
    %11 = vector.load %arg4[%c0_10, %c0_11] : memref<64x256xf32, #tpu.memory_space<vmem>>, vector<8x256xf32>
    %c8 = arith.constant 8 : index
    %c0_12 = arith.constant 0 : index
    %12 = vector.load %arg1[%c8, %c0_12] : memref<216x256xf32, #tpu.memory_space<vmem>>, vector<64x256xf32>
    %cst_13 = arith.constant dense<0.000000e+00> : vector<8x256xf32>
    %13 = tpu.matmul %7, %12, %cst_13 {dimension_numbers = #tpu.dot_dimension_numbers<[1], [0], [0], [1], [0, 0, 1, 1], [], []>} : vector<8x64xf32>, vector<64x256xf32>, vector<8x256xf32> -> vector<8x256xf32>
    %14 = arith.addf %11, %13 : vector<8x256xf32>
    %15 = vector.extract_strided_slice %14 {offsets = [0, 0], sizes = [8, 192], strides = [1, 1]} : vector<8x256xf32> to vector<8x192xf32>
    %cst_14 = arith.constant 5.000000e-01 : f32
    %16 = vector.broadcast %cst_14 : f32 to vector<8x192xf32>
    %17 = arith.mulf %16, %15 : vector<8x192xf32>
    %18 = math.tanh %17 : vector<8x192xf32>
    %cst_15 = arith.constant 5.000000e-01 : f32
    %19 = vector.broadcast %cst_15 : f32 to vector<8x192xf32>
    %20 = arith.mulf %19, %18 : vector<8x192xf32>
    %cst_16 = arith.constant 5.000000e-01 : f32
    %21 = vector.broadcast %cst_16 : f32 to vector<8x192xf32>
    %22 = arith.addf %20, %21 : vector<8x192xf32>
    %23 = vector.extract_strided_slice %14 {offsets = [0, 192], sizes = [8, 64], strides = [1, 1]} : vector<8x256xf32> to vector<8x64xf32>
    %24 = math.tanh %23 : vector<8x64xf32>
    %25 = vector.extract_strided_slice %22 {offsets = [0, 0], sizes = [8, 64], strides = [1, 1]} : vector<8x192xf32> to vector<8x64xf32>
    %26 = vector.extract_strided_slice %22 {offsets = [0, 64], sizes = [8, 64], strides = [1, 1]} : vector<8x192xf32> to vector<8x64xf32>
    %27 = vector.extract_strided_slice %22 {offsets = [0, 128], sizes = [8, 64], strides = [1, 1]} : vector<8x192xf32> to vector<8x64xf32>
    %28 = arith.mulf %26, %8 : vector<8x64xf32>
    %29 = arith.mulf %25, %24 : vector<8x64xf32>
    %30 = arith.addf %28, %29 : vector<8x64xf32>
    %31 = math.tanh %30 : vector<8x64xf32>
    %32 = arith.mulf %27, %31 : vector<8x64xf32>
    %c80 = arith.constant 80 : index
    %c0_17 = arith.constant 0 : index
    %33 = vector.load %arg1[%c80, %c0_17] : memref<216x256xf32, #tpu.memory_space<vmem>>, vector<64x256xf32>
    %cst_18 = arith.constant dense<0.000000e+00> : vector<8x256xf32>
    %34 = tpu.matmul %32, %33, %cst_18 {dimension_numbers = #tpu.dot_dimension_numbers<[1], [0], [0], [1], [0, 0, 1, 1], [], []>} : vector<8x64xf32>, vector<64x256xf32>, vector<8x256xf32> -> vector<8x256xf32>
    %c144 = arith.constant 144 : index
    %c0_19 = arith.constant 0 : index
    %35 = vector.load %arg1[%c144, %c0_19] : memref<216x256xf32, #tpu.memory_space<vmem>>, vector<64x256xf32>
    %cst_20 = arith.constant dense<0.000000e+00> : vector<8x256xf32>
    %36 = tpu.matmul %9, %35, %cst_20 {dimension_numbers = #tpu.dot_dimension_numbers<[1], [0], [0], [1], [0, 0, 1, 1], [], []>} : vector<8x64xf32>, vector<64x256xf32>, vector<8x256xf32> -> vector<8x256xf32>
    %37 = arith.addf %34, %36 : vector<8x256xf32>
    %c208 = arith.constant 208 : index
    %c0_21 = arith.constant 0 : index
    %38 = vector.load %arg1[%c208, %c0_21] : memref<216x256xf32, #tpu.memory_space<vmem>>, vector<1x256xf32>
    %39 = vector.broadcast %38 : vector<1x256xf32> to vector<8x256xf32>
    %40 = arith.addf %37, %39 : vector<8x256xf32>
    %41 = vector.extract_strided_slice %40 {offsets = [0, 0], sizes = [8, 192], strides = [1, 1]} : vector<8x256xf32> to vector<8x192xf32>
    %cst_22 = arith.constant 5.000000e-01 : f32
    %42 = vector.broadcast %cst_22 : f32 to vector<8x192xf32>
    %43 = arith.mulf %42, %41 : vector<8x192xf32>
    %44 = math.tanh %43 : vector<8x192xf32>
    %cst_23 = arith.constant 5.000000e-01 : f32
    %45 = vector.broadcast %cst_23 : f32 to vector<8x192xf32>
    %46 = arith.mulf %45, %44 : vector<8x192xf32>
    %cst_24 = arith.constant 5.000000e-01 : f32
    %47 = vector.broadcast %cst_24 : f32 to vector<8x192xf32>
    %48 = arith.addf %46, %47 : vector<8x192xf32>
    %49 = vector.extract_strided_slice %40 {offsets = [0, 192], sizes = [8, 64], strides = [1, 1]} : vector<8x256xf32> to vector<8x64xf32>
    %50 = math.tanh %49 : vector<8x64xf32>
    %51 = vector.extract_strided_slice %48 {offsets = [0, 0], sizes = [8, 64], strides = [1, 1]} : vector<8x192xf32> to vector<8x64xf32>
    %52 = vector.extract_strided_slice %48 {offsets = [0, 64], sizes = [8, 64], strides = [1, 1]} : vector<8x192xf32> to vector<8x64xf32>
    %53 = vector.extract_strided_slice %48 {offsets = [0, 128], sizes = [8, 64], strides = [1, 1]} : vector<8x192xf32> to vector<8x64xf32>
    %54 = arith.mulf %52, %10 : vector<8x64xf32>
    %55 = arith.mulf %51, %50 : vector<8x64xf32>
    %56 = arith.addf %54, %55 : vector<8x64xf32>
    %57 = math.tanh %56 : vector<8x64xf32>
    %58 = arith.mulf %53, %57 : vector<8x64xf32>
    %c8_25 = arith.constant 8 : index
    %c0_26 = arith.constant 0 : index
    %59 = vector.load %arg4[%c8_25, %c0_26] : memref<64x256xf32, #tpu.memory_space<vmem>>, vector<8x256xf32>
    %c8_27 = arith.constant 8 : index
    %c0_28 = arith.constant 0 : index
    %60 = vector.load %arg1[%c8_27, %c0_28] : memref<216x256xf32, #tpu.memory_space<vmem>>, vector<64x256xf32>
    %cst_29 = arith.constant dense<0.000000e+00> : vector<8x256xf32>
    %61 = tpu.matmul %32, %60, %cst_29 {dimension_numbers = #tpu.dot_dimension_numbers<[1], [0], [0], [1], [0, 0, 1, 1], [], []>} : vector<8x64xf32>, vector<64x256xf32>, vector<8x256xf32> -> vector<8x256xf32>
    %62 = arith.addf %59, %61 : vector<8x256xf32>
    %63 = vector.extract_strided_slice %62 {offsets = [0, 0], sizes = [8, 192], strides = [1, 1]} : vector<8x256xf32> to vector<8x192xf32>
    %cst_30 = arith.constant 5.000000e-01 : f32
    %64 = vector.broadcast %cst_30 : f32 to vector<8x192xf32>
    %65 = arith.mulf %64, %63 : vector<8x192xf32>
    %66 = math.tanh %65 : vector<8x192xf32>
    %cst_31 = arith.constant 5.000000e-01 : f32
    %67 = vector.broadcast %cst_31 : f32 to vector<8x192xf32>
    %68 = arith.mulf %67, %66 : vector<8x192xf32>
    %cst_32 = arith.constant 5.000000e-01 : f32
    %69 = vector.broadcast %cst_32 : f32 to vector<8x192xf32>
    %70 = arith.addf %68, %69 : vector<8x192xf32>
    %71 = vector.extract_strided_slice %62 {offsets = [0, 192], sizes = [8, 64], strides = [1, 1]} : vector<8x256xf32> to vector<8x64xf32>
    %72 = math.tanh %71 : vector<8x64xf32>
    %73 = vector.extract_strided_slice %70 {offsets = [0, 0], sizes = [8, 64], strides = [1, 1]} : vector<8x192xf32> to vector<8x64xf32>
    %74 = vector.extract_strided_slice %70 {offsets = [0, 64], sizes = [8, 64], strides = [1, 1]} : vector<8x192xf32> to vector<8x64xf32>
    %75 = vector.extract_strided_slice %70 {offsets = [0, 128], sizes = [8, 64], strides = [1, 1]} : vector<8x192xf32> to vector<8x64xf32>
    %76 = arith.mulf %74, %30 : vector<8x64xf32>
    %77 = arith.mulf %73, %72 : vector<8x64xf32>
    %78 = arith.addf %76, %77 : vector<8x64xf32>
    %79 = math.tanh %78 : vector<8x64xf32>
    %80 = arith.mulf %75, %79 : vector<8x64xf32>
    %c80_33 = arith.constant 80 : index
    %c0_34 = arith.constant 0 : index
    %81 = vector.load %arg1[%c80_33, %c0_34] : memref<216x256xf32, #tpu.memory_space<vmem>>, vector<64x256xf32>
    %cst_35 = arith.constant dense<0.000000e+00> : vector<8x256xf32>
    %82 = tpu.matmul %80, %81, %cst_35 {dimension_numbers = #tpu.dot_dimension_numbers<[1], [0], [0], [1], [0, 0, 1, 1], [], []>} : vector<8x64xf32>, vector<64x256xf32>, vector<8x256xf32> -> vector<8x256xf32>
    %c144_36 = arith.constant 144 : index
    %c0_37 = arith.constant 0 : index
    %83 = vector.load %arg1[%c144_36, %c0_37] : memref<216x256xf32, #tpu.memory_space<vmem>>, vector<64x256xf32>
    %cst_38 = arith.constant dense<0.000000e+00> : vector<8x256xf32>
    %84 = tpu.matmul %58, %83, %cst_38 {dimension_numbers = #tpu.dot_dimension_numbers<[1], [0], [0], [1], [0, 0, 1, 1], [], []>} : vector<8x64xf32>, vector<64x256xf32>, vector<8x256xf32> -> vector<8x256xf32>
    %85 = arith.addf %82, %84 : vector<8x256xf32>
    %c208_39 = arith.constant 208 : index
    %c0_40 = arith.constant 0 : index
    %86 = vector.load %arg1[%c208_39, %c0_40] : memref<216x256xf32, #tpu.memory_space<vmem>>, vector<1x256xf32>
    %87 = vector.broadcast %86 : vector<1x256xf32> to vector<8x256xf32>
    %88 = arith.addf %85, %87 : vector<8x256xf32>
    %89 = vector.extract_strided_slice %88 {offsets = [0, 0], sizes = [8, 192], strides = [1, 1]} : vector<8x256xf32> to vector<8x192xf32>
    %cst_41 = arith.constant 5.000000e-01 : f32
    %90 = vector.broadcast %cst_41 : f32 to vector<8x192xf32>
    %91 = arith.mulf %90, %89 : vector<8x192xf32>
    %92 = math.tanh %91 : vector<8x192xf32>
    %cst_42 = arith.constant 5.000000e-01 : f32
    %93 = vector.broadcast %cst_42 : f32 to vector<8x192xf32>
    %94 = arith.mulf %93, %92 : vector<8x192xf32>
    %cst_43 = arith.constant 5.000000e-01 : f32
    %95 = vector.broadcast %cst_43 : f32 to vector<8x192xf32>
    %96 = arith.addf %94, %95 : vector<8x192xf32>
    %97 = vector.extract_strided_slice %88 {offsets = [0, 192], sizes = [8, 64], strides = [1, 1]} : vector<8x256xf32> to vector<8x64xf32>
    %98 = math.tanh %97 : vector<8x64xf32>
    %99 = vector.extract_strided_slice %96 {offsets = [0, 0], sizes = [8, 64], strides = [1, 1]} : vector<8x192xf32> to vector<8x64xf32>
    %100 = vector.extract_strided_slice %96 {offsets = [0, 64], sizes = [8, 64], strides = [1, 1]} : vector<8x192xf32> to vector<8x64xf32>
    %101 = vector.extract_strided_slice %96 {offsets = [0, 128], sizes = [8, 64], strides = [1, 1]} : vector<8x192xf32> to vector<8x64xf32>
    %102 = arith.mulf %100, %56 : vector<8x64xf32>
    %103 = arith.mulf %99, %98 : vector<8x64xf32>
    %104 = arith.addf %102, %103 : vector<8x64xf32>
    %105 = math.tanh %104 : vector<8x64xf32>
    %106 = arith.mulf %101, %105 : vector<8x64xf32>
    %c16 = arith.constant 16 : index
    %c0_44 = arith.constant 0 : index
    %107 = vector.load %arg4[%c16, %c0_44] : memref<64x256xf32, #tpu.memory_space<vmem>>, vector<8x256xf32>
    %c8_45 = arith.constant 8 : index
    %c0_46 = arith.constant 0 : index
    %108 = vector.load %arg1[%c8_45, %c0_46] : memref<216x256xf32, #tpu.memory_space<vmem>>, vector<64x256xf32>
    %cst_47 = arith.constant dense<0.000000e+00> : vector<8x256xf32>
    %109 = tpu.matmul %80, %108, %cst_47 {dimension_numbers = #tpu.dot_dimension_numbers<[1], [0], [0], [1], [0, 0, 1, 1], [], []>} : vector<8x64xf32>, vector<64x256xf32>, vector<8x256xf32> -> vector<8x256xf32>
    %110 = arith.addf %107, %109 : vector<8x256xf32>
    %111 = vector.extract_strided_slice %110 {offsets = [0, 0], sizes = [8, 192], strides = [1, 1]} : vector<8x256xf32> to vector<8x192xf32>
    %cst_48 = arith.constant 5.000000e-01 : f32
    %112 = vector.broadcast %cst_48 : f32 to vector<8x192xf32>
    %113 = arith.mulf %112, %111 : vector<8x192xf32>
    %114 = math.tanh %113 : vector<8x192xf32>
    %cst_49 = arith.constant 5.000000e-01 : f32
    %115 = vector.broadcast %cst_49 : f32 to vector<8x192xf32>
    %116 = arith.mulf %115, %114 : vector<8x192xf32>
    %cst_50 = arith.constant 5.000000e-01 : f32
    %117 = vector.broadcast %cst_50 : f32 to vector<8x192xf32>
    %118 = arith.addf %116, %117 : vector<8x192xf32>
    %119 = vector.extract_strided_slice %110 {offsets = [0, 192], sizes = [8, 64], strides = [1, 1]} : vector<8x256xf32> to vector<8x64xf32>
    %120 = math.tanh %119 : vector<8x64xf32>
    %121 = vector.extract_strided_slice %118 {offsets = [0, 0], sizes = [8, 64], strides = [1, 1]} : vector<8x192xf32> to vector<8x64xf32>
    %122 = vector.extract_strided_slice %118 {offsets = [0, 64], sizes = [8, 64], strides = [1, 1]} : vector<8x192xf32> to vector<8x64xf32>
    %123 = vector.extract_strided_slice %118 {offsets = [0, 128], sizes = [8, 64], strides = [1, 1]} : vector<8x192xf32> to vector<8x64xf32>
    %124 = arith.mulf %122, %78 : vector<8x64xf32>
    %125 = arith.mulf %121, %120 : vector<8x64xf32>
    %126 = arith.addf %124, %125 : vector<8x64xf32>
    %127 = math.tanh %126 : vector<8x64xf32>
    %128 = arith.mulf %123, %127 : vector<8x64xf32>
    %c80_51 = arith.constant 80 : index
    %c0_52 = arith.constant 0 : index
    %129 = vector.load %arg1[%c80_51, %c0_52] : memref<216x256xf32, #tpu.memory_space<vmem>>, vector<64x256xf32>
    %cst_53 = arith.constant dense<0.000000e+00> : vector<8x256xf32>
    %130 = tpu.matmul %128, %129, %cst_53 {dimension_numbers = #tpu.dot_dimension_numbers<[1], [0], [0], [1], [0, 0, 1, 1], [], []>} : vector<8x64xf32>, vector<64x256xf32>, vector<8x256xf32> -> vector<8x256xf32>
    %c144_54 = arith.constant 144 : index
    %c0_55 = arith.constant 0 : index
    %131 = vector.load %arg1[%c144_54, %c0_55] : memref<216x256xf32, #tpu.memory_space<vmem>>, vector<64x256xf32>
    %cst_56 = arith.constant dense<0.000000e+00> : vector<8x256xf32>
    %132 = tpu.matmul %106, %131, %cst_56 {dimension_numbers = #tpu.dot_dimension_numbers<[1], [0], [0], [1], [0, 0, 1, 1], [], []>} : vector<8x64xf32>, vector<64x256xf32>, vector<8x256xf32> -> vector<8x256xf32>
    %133 = arith.addf %130, %132 : vector<8x256xf32>
    %c208_57 = arith.constant 208 : index
    %c0_58 = arith.constant 0 : index
    %134 = vector.load %arg1[%c208_57, %c0_58] : memref<216x256xf32, #tpu.memory_space<vmem>>, vector<1x256xf32>
    %135 = vector.broadcast %134 : vector<1x256xf32> to vector<8x256xf32>
    %136 = arith.addf %133, %135 : vector<8x256xf32>
    %137 = vector.extract_strided_slice %136 {offsets = [0, 0], sizes = [8, 192], strides = [1, 1]} : vector<8x256xf32> to vector<8x192xf32>
    %cst_59 = arith.constant 5.000000e-01 : f32
    %138 = vector.broadcast %cst_59 : f32 to vector<8x192xf32>
    %139 = arith.mulf %138, %137 : vector<8x192xf32>
    %140 = math.tanh %139 : vector<8x192xf32>
    %cst_60 = arith.constant 5.000000e-01 : f32
    %141 = vector.broadcast %cst_60 : f32 to vector<8x192xf32>
    %142 = arith.mulf %141, %140 : vector<8x192xf32>
    %cst_61 = arith.constant 5.000000e-01 : f32
    %143 = vector.broadcast %cst_61 : f32 to vector<8x192xf32>
    %144 = arith.addf %142, %143 : vector<8x192xf32>
    %145 = vector.extract_strided_slice %136 {offsets = [0, 192], sizes = [8, 64], strides = [1, 1]} : vector<8x256xf32> to vector<8x64xf32>
    %146 = math.tanh %145 : vector<8x64xf32>
    %147 = vector.extract_strided_slice %144 {offsets = [0, 0], sizes = [8, 64], strides = [1, 1]} : vector<8x192xf32> to vector<8x64xf32>
    %148 = vector.extract_strided_slice %144 {offsets = [0, 64], sizes = [8, 64], strides = [1, 1]} : vector<8x192xf32> to vector<8x64xf32>
    %149 = vector.extract_strided_slice %144 {offsets = [0, 128], sizes = [8, 64], strides = [1, 1]} : vector<8x192xf32> to vector<8x64xf32>
    %150 = arith.mulf %148, %104 : vector<8x64xf32>
    %151 = arith.mulf %147, %146 : vector<8x64xf32>
    %152 = arith.addf %150, %151 : vector<8x64xf32>
    %153 = math.tanh %152 : vector<8x64xf32>
    %154 = arith.mulf %149, %153 : vector<8x64xf32>
    %c24 = arith.constant 24 : index
    %c0_62 = arith.constant 0 : index
    %155 = vector.load %arg4[%c24, %c0_62] : memref<64x256xf32, #tpu.memory_space<vmem>>, vector<8x256xf32>
    %c8_63 = arith.constant 8 : index
    %c0_64 = arith.constant 0 : index
    %156 = vector.load %arg1[%c8_63, %c0_64] : memref<216x256xf32, #tpu.memory_space<vmem>>, vector<64x256xf32>
    %cst_65 = arith.constant dense<0.000000e+00> : vector<8x256xf32>
    %157 = tpu.matmul %128, %156, %cst_65 {dimension_numbers = #tpu.dot_dimension_numbers<[1], [0], [0], [1], [0, 0, 1, 1], [], []>} : vector<8x64xf32>, vector<64x256xf32>, vector<8x256xf32> -> vector<8x256xf32>
    %158 = arith.addf %155, %157 : vector<8x256xf32>
    %159 = vector.extract_strided_slice %158 {offsets = [0, 0], sizes = [8, 192], strides = [1, 1]} : vector<8x256xf32> to vector<8x192xf32>
    %cst_66 = arith.constant 5.000000e-01 : f32
    %160 = vector.broadcast %cst_66 : f32 to vector<8x192xf32>
    %161 = arith.mulf %160, %159 : vector<8x192xf32>
    %162 = math.tanh %161 : vector<8x192xf32>
    %cst_67 = arith.constant 5.000000e-01 : f32
    %163 = vector.broadcast %cst_67 : f32 to vector<8x192xf32>
    %164 = arith.mulf %163, %162 : vector<8x192xf32>
    %cst_68 = arith.constant 5.000000e-01 : f32
    %165 = vector.broadcast %cst_68 : f32 to vector<8x192xf32>
    %166 = arith.addf %164, %165 : vector<8x192xf32>
    %167 = vector.extract_strided_slice %158 {offsets = [0, 192], sizes = [8, 64], strides = [1, 1]} : vector<8x256xf32> to vector<8x64xf32>
    %168 = math.tanh %167 : vector<8x64xf32>
    %169 = vector.extract_strided_slice %166 {offsets = [0, 0], sizes = [8, 64], strides = [1, 1]} : vector<8x192xf32> to vector<8x64xf32>
    %170 = vector.extract_strided_slice %166 {offsets = [0, 64], sizes = [8, 64], strides = [1, 1]} : vector<8x192xf32> to vector<8x64xf32>
    %171 = vector.extract_strided_slice %166 {offsets = [0, 128], sizes = [8, 64], strides = [1, 1]} : vector<8x192xf32> to vector<8x64xf32>
    %172 = arith.mulf %170, %126 : vector<8x64xf32>
    %173 = arith.mulf %169, %168 : vector<8x64xf32>
    %174 = arith.addf %172, %173 : vector<8x64xf32>
    %175 = math.tanh %174 : vector<8x64xf32>
    %176 = arith.mulf %171, %175 : vector<8x64xf32>
    %c80_69 = arith.constant 80 : index
    %c0_70 = arith.constant 0 : index
    %177 = vector.load %arg1[%c80_69, %c0_70] : memref<216x256xf32, #tpu.memory_space<vmem>>, vector<64x256xf32>
    %cst_71 = arith.constant dense<0.000000e+00> : vector<8x256xf32>
    %178 = tpu.matmul %176, %177, %cst_71 {dimension_numbers = #tpu.dot_dimension_numbers<[1], [0], [0], [1], [0, 0, 1, 1], [], []>} : vector<8x64xf32>, vector<64x256xf32>, vector<8x256xf32> -> vector<8x256xf32>
    %c144_72 = arith.constant 144 : index
    %c0_73 = arith.constant 0 : index
    %179 = vector.load %arg1[%c144_72, %c0_73] : memref<216x256xf32, #tpu.memory_space<vmem>>, vector<64x256xf32>
    %cst_74 = arith.constant dense<0.000000e+00> : vector<8x256xf32>
    %180 = tpu.matmul %154, %179, %cst_74 {dimension_numbers = #tpu.dot_dimension_numbers<[1], [0], [0], [1], [0, 0, 1, 1], [], []>} : vector<8x64xf32>, vector<64x256xf32>, vector<8x256xf32> -> vector<8x256xf32>
    %181 = arith.addf %178, %180 : vector<8x256xf32>
    %c208_75 = arith.constant 208 : index
    %c0_76 = arith.constant 0 : index
    %182 = vector.load %arg1[%c208_75, %c0_76] : memref<216x256xf32, #tpu.memory_space<vmem>>, vector<1x256xf32>
    %183 = vector.broadcast %182 : vector<1x256xf32> to vector<8x256xf32>
    %184 = arith.addf %181, %183 : vector<8x256xf32>
    %185 = vector.extract_strided_slice %184 {offsets = [0, 0], sizes = [8, 192], strides = [1, 1]} : vector<8x256xf32> to vector<8x192xf32>
    %cst_77 = arith.constant 5.000000e-01 : f32
    %186 = vector.broadcast %cst_77 : f32 to vector<8x192xf32>
    %187 = arith.mulf %186, %185 : vector<8x192xf32>
    %188 = math.tanh %187 : vector<8x192xf32>
    %cst_78 = arith.constant 5.000000e-01 : f32
    %189 = vector.broadcast %cst_78 : f32 to vector<8x192xf32>
    %190 = arith.mulf %189, %188 : vector<8x192xf32>
    %cst_79 = arith.constant 5.000000e-01 : f32
    %191 = vector.broadcast %cst_79 : f32 to vector<8x192xf32>
    %192 = arith.addf %190, %191 : vector<8x192xf32>
    %193 = vector.extract_strided_slice %184 {offsets = [0, 192], sizes = [8, 64], strides = [1, 1]} : vector<8x256xf32> to vector<8x64xf32>
    %194 = math.tanh %193 : vector<8x64xf32>
    %195 = vector.extract_strided_slice %192 {offsets = [0, 0], sizes = [8, 64], strides = [1, 1]} : vector<8x192xf32> to vector<8x64xf32>
    %196 = vector.extract_strided_slice %192 {offsets = [0, 64], sizes = [8, 64], strides = [1, 1]} : vector<8x192xf32> to vector<8x64xf32>
    %197 = vector.extract_strided_slice %192 {offsets = [0, 128], sizes = [8, 64], strides = [1, 1]} : vector<8x192xf32> to vector<8x64xf32>
    %198 = arith.mulf %196, %152 : vector<8x64xf32>
    %199 = arith.mulf %195, %194 : vector<8x64xf32>
    %200 = arith.addf %198, %199 : vector<8x64xf32>
    %201 = math.tanh %200 : vector<8x64xf32>
    %202 = arith.mulf %197, %201 : vector<8x64xf32>
    %c32 = arith.constant 32 : index
    %c0_80 = arith.constant 0 : index
    %203 = vector.load %arg4[%c32, %c0_80] : memref<64x256xf32, #tpu.memory_space<vmem>>, vector<8x256xf32>
    %c8_81 = arith.constant 8 : index
    %c0_82 = arith.constant 0 : index
    %204 = vector.load %arg1[%c8_81, %c0_82] : memref<216x256xf32, #tpu.memory_space<vmem>>, vector<64x256xf32>
    %cst_83 = arith.constant dense<0.000000e+00> : vector<8x256xf32>
    %205 = tpu.matmul %176, %204, %cst_83 {dimension_numbers = #tpu.dot_dimension_numbers<[1], [0], [0], [1], [0, 0, 1, 1], [], []>} : vector<8x64xf32>, vector<64x256xf32>, vector<8x256xf32> -> vector<8x256xf32>
    %206 = arith.addf %203, %205 : vector<8x256xf32>
    %207 = vector.extract_strided_slice %206 {offsets = [0, 0], sizes = [8, 192], strides = [1, 1]} : vector<8x256xf32> to vector<8x192xf32>
    %cst_84 = arith.constant 5.000000e-01 : f32
    %208 = vector.broadcast %cst_84 : f32 to vector<8x192xf32>
    %209 = arith.mulf %208, %207 : vector<8x192xf32>
    %210 = math.tanh %209 : vector<8x192xf32>
    %cst_85 = arith.constant 5.000000e-01 : f32
    %211 = vector.broadcast %cst_85 : f32 to vector<8x192xf32>
    %212 = arith.mulf %211, %210 : vector<8x192xf32>
    %cst_86 = arith.constant 5.000000e-01 : f32
    %213 = vector.broadcast %cst_86 : f32 to vector<8x192xf32>
    %214 = arith.addf %212, %213 : vector<8x192xf32>
    %215 = vector.extract_strided_slice %206 {offsets = [0, 192], sizes = [8, 64], strides = [1, 1]} : vector<8x256xf32> to vector<8x64xf32>
    %216 = math.tanh %215 : vector<8x64xf32>
    %217 = vector.extract_strided_slice %214 {offsets = [0, 0], sizes = [8, 64], strides = [1, 1]} : vector<8x192xf32> to vector<8x64xf32>
    %218 = vector.extract_strided_slice %214 {offsets = [0, 64], sizes = [8, 64], strides = [1, 1]} : vector<8x192xf32> to vector<8x64xf32>
    %219 = vector.extract_strided_slice %214 {offsets = [0, 128], sizes = [8, 64], strides = [1, 1]} : vector<8x192xf32> to vector<8x64xf32>
    %220 = arith.mulf %218, %174 : vector<8x64xf32>
    %221 = arith.mulf %217, %216 : vector<8x64xf32>
    %222 = arith.addf %220, %221 : vector<8x64xf32>
    %223 = math.tanh %222 : vector<8x64xf32>
    %224 = arith.mulf %219, %223 : vector<8x64xf32>
    %c80_87 = arith.constant 80 : index
    %c0_88 = arith.constant 0 : index
    %225 = vector.load %arg1[%c80_87, %c0_88] : memref<216x256xf32, #tpu.memory_space<vmem>>, vector<64x256xf32>
    %cst_89 = arith.constant dense<0.000000e+00> : vector<8x256xf32>
    %226 = tpu.matmul %224, %225, %cst_89 {dimension_numbers = #tpu.dot_dimension_numbers<[1], [0], [0], [1], [0, 0, 1, 1], [], []>} : vector<8x64xf32>, vector<64x256xf32>, vector<8x256xf32> -> vector<8x256xf32>
    %c144_90 = arith.constant 144 : index
    %c0_91 = arith.constant 0 : index
    %227 = vector.load %arg1[%c144_90, %c0_91] : memref<216x256xf32, #tpu.memory_space<vmem>>, vector<64x256xf32>
    %cst_92 = arith.constant dense<0.000000e+00> : vector<8x256xf32>
    %228 = tpu.matmul %202, %227, %cst_92 {dimension_numbers = #tpu.dot_dimension_numbers<[1], [0], [0], [1], [0, 0, 1, 1], [], []>} : vector<8x64xf32>, vector<64x256xf32>, vector<8x256xf32> -> vector<8x256xf32>
    %229 = arith.addf %226, %228 : vector<8x256xf32>
    %c208_93 = arith.constant 208 : index
    %c0_94 = arith.constant 0 : index
    %230 = vector.load %arg1[%c208_93, %c0_94] : memref<216x256xf32, #tpu.memory_space<vmem>>, vector<1x256xf32>
    %231 = vector.broadcast %230 : vector<1x256xf32> to vector<8x256xf32>
    %232 = arith.addf %229, %231 : vector<8x256xf32>
    %233 = vector.extract_strided_slice %232 {offsets = [0, 0], sizes = [8, 192], strides = [1, 1]} : vector<8x256xf32> to vector<8x192xf32>
    %cst_95 = arith.constant 5.000000e-01 : f32
    %234 = vector.broadcast %cst_95 : f32 to vector<8x192xf32>
    %235 = arith.mulf %234, %233 : vector<8x192xf32>
    %236 = math.tanh %235 : vector<8x192xf32>
    %cst_96 = arith.constant 5.000000e-01 : f32
    %237 = vector.broadcast %cst_96 : f32 to vector<8x192xf32>
    %238 = arith.mulf %237, %236 : vector<8x192xf32>
    %cst_97 = arith.constant 5.000000e-01 : f32
    %239 = vector.broadcast %cst_97 : f32 to vector<8x192xf32>
    %240 = arith.addf %238, %239 : vector<8x192xf32>
    %241 = vector.extract_strided_slice %232 {offsets = [0, 192], sizes = [8, 64], strides = [1, 1]} : vector<8x256xf32> to vector<8x64xf32>
    %242 = math.tanh %241 : vector<8x64xf32>
    %243 = vector.extract_strided_slice %240 {offsets = [0, 0], sizes = [8, 64], strides = [1, 1]} : vector<8x192xf32> to vector<8x64xf32>
    %244 = vector.extract_strided_slice %240 {offsets = [0, 64], sizes = [8, 64], strides = [1, 1]} : vector<8x192xf32> to vector<8x64xf32>
    %245 = vector.extract_strided_slice %240 {offsets = [0, 128], sizes = [8, 64], strides = [1, 1]} : vector<8x192xf32> to vector<8x64xf32>
    %246 = arith.mulf %244, %200 : vector<8x64xf32>
    %247 = arith.mulf %243, %242 : vector<8x64xf32>
    %248 = arith.addf %246, %247 : vector<8x64xf32>
    %249 = math.tanh %248 : vector<8x64xf32>
    %250 = arith.mulf %245, %249 : vector<8x64xf32>
    %c40 = arith.constant 40 : index
    %c0_98 = arith.constant 0 : index
    %251 = vector.load %arg4[%c40, %c0_98] : memref<64x256xf32, #tpu.memory_space<vmem>>, vector<8x256xf32>
    %c8_99 = arith.constant 8 : index
    %c0_100 = arith.constant 0 : index
    %252 = vector.load %arg1[%c8_99, %c0_100] : memref<216x256xf32, #tpu.memory_space<vmem>>, vector<64x256xf32>
    %cst_101 = arith.constant dense<0.000000e+00> : vector<8x256xf32>
    %253 = tpu.matmul %224, %252, %cst_101 {dimension_numbers = #tpu.dot_dimension_numbers<[1], [0], [0], [1], [0, 0, 1, 1], [], []>} : vector<8x64xf32>, vector<64x256xf32>, vector<8x256xf32> -> vector<8x256xf32>
    %254 = arith.addf %251, %253 : vector<8x256xf32>
    %255 = vector.extract_strided_slice %254 {offsets = [0, 0], sizes = [8, 192], strides = [1, 1]} : vector<8x256xf32> to vector<8x192xf32>
    %cst_102 = arith.constant 5.000000e-01 : f32
    %256 = vector.broadcast %cst_102 : f32 to vector<8x192xf32>
    %257 = arith.mulf %256, %255 : vector<8x192xf32>
    %258 = math.tanh %257 : vector<8x192xf32>
    %cst_103 = arith.constant 5.000000e-01 : f32
    %259 = vector.broadcast %cst_103 : f32 to vector<8x192xf32>
    %260 = arith.mulf %259, %258 : vector<8x192xf32>
    %cst_104 = arith.constant 5.000000e-01 : f32
    %261 = vector.broadcast %cst_104 : f32 to vector<8x192xf32>
    %262 = arith.addf %260, %261 : vector<8x192xf32>
    %263 = vector.extract_strided_slice %254 {offsets = [0, 192], sizes = [8, 64], strides = [1, 1]} : vector<8x256xf32> to vector<8x64xf32>
    %264 = math.tanh %263 : vector<8x64xf32>
    %265 = vector.extract_strided_slice %262 {offsets = [0, 0], sizes = [8, 64], strides = [1, 1]} : vector<8x192xf32> to vector<8x64xf32>
    %266 = vector.extract_strided_slice %262 {offsets = [0, 64], sizes = [8, 64], strides = [1, 1]} : vector<8x192xf32> to vector<8x64xf32>
    %267 = vector.extract_strided_slice %262 {offsets = [0, 128], sizes = [8, 64], strides = [1, 1]} : vector<8x192xf32> to vector<8x64xf32>
    %268 = arith.mulf %266, %222 : vector<8x64xf32>
    %269 = arith.mulf %265, %264 : vector<8x64xf32>
    %270 = arith.addf %268, %269 : vector<8x64xf32>
    %271 = math.tanh %270 : vector<8x64xf32>
    %272 = arith.mulf %267, %271 : vector<8x64xf32>
    %c80_105 = arith.constant 80 : index
    %c0_106 = arith.constant 0 : index
    %273 = vector.load %arg1[%c80_105, %c0_106] : memref<216x256xf32, #tpu.memory_space<vmem>>, vector<64x256xf32>
    %cst_107 = arith.constant dense<0.000000e+00> : vector<8x256xf32>
    %274 = tpu.matmul %272, %273, %cst_107 {dimension_numbers = #tpu.dot_dimension_numbers<[1], [0], [0], [1], [0, 0, 1, 1], [], []>} : vector<8x64xf32>, vector<64x256xf32>, vector<8x256xf32> -> vector<8x256xf32>
    %c144_108 = arith.constant 144 : index
    %c0_109 = arith.constant 0 : index
    %275 = vector.load %arg1[%c144_108, %c0_109] : memref<216x256xf32, #tpu.memory_space<vmem>>, vector<64x256xf32>
    %cst_110 = arith.constant dense<0.000000e+00> : vector<8x256xf32>
    %276 = tpu.matmul %250, %275, %cst_110 {dimension_numbers = #tpu.dot_dimension_numbers<[1], [0], [0], [1], [0, 0, 1, 1], [], []>} : vector<8x64xf32>, vector<64x256xf32>, vector<8x256xf32> -> vector<8x256xf32>
    %277 = arith.addf %274, %276 : vector<8x256xf32>
    %c208_111 = arith.constant 208 : index
    %c0_112 = arith.constant 0 : index
    %278 = vector.load %arg1[%c208_111, %c0_112] : memref<216x256xf32, #tpu.memory_space<vmem>>, vector<1x256xf32>
    %279 = vector.broadcast %278 : vector<1x256xf32> to vector<8x256xf32>
    %280 = arith.addf %277, %279 : vector<8x256xf32>
    %281 = vector.extract_strided_slice %280 {offsets = [0, 0], sizes = [8, 192], strides = [1, 1]} : vector<8x256xf32> to vector<8x192xf32>
    %cst_113 = arith.constant 5.000000e-01 : f32
    %282 = vector.broadcast %cst_113 : f32 to vector<8x192xf32>
    %283 = arith.mulf %282, %281 : vector<8x192xf32>
    %284 = math.tanh %283 : vector<8x192xf32>
    %cst_114 = arith.constant 5.000000e-01 : f32
    %285 = vector.broadcast %cst_114 : f32 to vector<8x192xf32>
    %286 = arith.mulf %285, %284 : vector<8x192xf32>
    %cst_115 = arith.constant 5.000000e-01 : f32
    %287 = vector.broadcast %cst_115 : f32 to vector<8x192xf32>
    %288 = arith.addf %286, %287 : vector<8x192xf32>
    %289 = vector.extract_strided_slice %280 {offsets = [0, 192], sizes = [8, 64], strides = [1, 1]} : vector<8x256xf32> to vector<8x64xf32>
    %290 = math.tanh %289 : vector<8x64xf32>
    %291 = vector.extract_strided_slice %288 {offsets = [0, 0], sizes = [8, 64], strides = [1, 1]} : vector<8x192xf32> to vector<8x64xf32>
    %292 = vector.extract_strided_slice %288 {offsets = [0, 64], sizes = [8, 64], strides = [1, 1]} : vector<8x192xf32> to vector<8x64xf32>
    %293 = vector.extract_strided_slice %288 {offsets = [0, 128], sizes = [8, 64], strides = [1, 1]} : vector<8x192xf32> to vector<8x64xf32>
    %294 = arith.mulf %292, %248 : vector<8x64xf32>
    %295 = arith.mulf %291, %290 : vector<8x64xf32>
    %296 = arith.addf %294, %295 : vector<8x64xf32>
    %297 = math.tanh %296 : vector<8x64xf32>
    %298 = arith.mulf %293, %297 : vector<8x64xf32>
    %c48 = arith.constant 48 : index
    %c0_116 = arith.constant 0 : index
    %299 = vector.load %arg4[%c48, %c0_116] : memref<64x256xf32, #tpu.memory_space<vmem>>, vector<8x256xf32>
    %c8_117 = arith.constant 8 : index
    %c0_118 = arith.constant 0 : index
    %300 = vector.load %arg1[%c8_117, %c0_118] : memref<216x256xf32, #tpu.memory_space<vmem>>, vector<64x256xf32>
    %cst_119 = arith.constant dense<0.000000e+00> : vector<8x256xf32>
    %301 = tpu.matmul %272, %300, %cst_119 {dimension_numbers = #tpu.dot_dimension_numbers<[1], [0], [0], [1], [0, 0, 1, 1], [], []>} : vector<8x64xf32>, vector<64x256xf32>, vector<8x256xf32> -> vector<8x256xf32>
    %302 = arith.addf %299, %301 : vector<8x256xf32>
    %303 = vector.extract_strided_slice %302 {offsets = [0, 0], sizes = [8, 192], strides = [1, 1]} : vector<8x256xf32> to vector<8x192xf32>
    %cst_120 = arith.constant 5.000000e-01 : f32
    %304 = vector.broadcast %cst_120 : f32 to vector<8x192xf32>
    %305 = arith.mulf %304, %303 : vector<8x192xf32>
    %306 = math.tanh %305 : vector<8x192xf32>
    %cst_121 = arith.constant 5.000000e-01 : f32
    %307 = vector.broadcast %cst_121 : f32 to vector<8x192xf32>
    %308 = arith.mulf %307, %306 : vector<8x192xf32>
    %cst_122 = arith.constant 5.000000e-01 : f32
    %309 = vector.broadcast %cst_122 : f32 to vector<8x192xf32>
    %310 = arith.addf %308, %309 : vector<8x192xf32>
    %311 = vector.extract_strided_slice %302 {offsets = [0, 192], sizes = [8, 64], strides = [1, 1]} : vector<8x256xf32> to vector<8x64xf32>
    %312 = math.tanh %311 : vector<8x64xf32>
    %313 = vector.extract_strided_slice %310 {offsets = [0, 0], sizes = [8, 64], strides = [1, 1]} : vector<8x192xf32> to vector<8x64xf32>
    %314 = vector.extract_strided_slice %310 {offsets = [0, 64], sizes = [8, 64], strides = [1, 1]} : vector<8x192xf32> to vector<8x64xf32>
    %315 = vector.extract_strided_slice %310 {offsets = [0, 128], sizes = [8, 64], strides = [1, 1]} : vector<8x192xf32> to vector<8x64xf32>
    %316 = arith.mulf %314, %270 : vector<8x64xf32>
    %317 = arith.mulf %313, %312 : vector<8x64xf32>
    %318 = arith.addf %316, %317 : vector<8x64xf32>
    %319 = math.tanh %318 : vector<8x64xf32>
    %320 = arith.mulf %315, %319 : vector<8x64xf32>
    %c80_123 = arith.constant 80 : index
    %c0_124 = arith.constant 0 : index
    %321 = vector.load %arg1[%c80_123, %c0_124] : memref<216x256xf32, #tpu.memory_space<vmem>>, vector<64x256xf32>
    %cst_125 = arith.constant dense<0.000000e+00> : vector<8x256xf32>
    %322 = tpu.matmul %320, %321, %cst_125 {dimension_numbers = #tpu.dot_dimension_numbers<[1], [0], [0], [1], [0, 0, 1, 1], [], []>} : vector<8x64xf32>, vector<64x256xf32>, vector<8x256xf32> -> vector<8x256xf32>
    %c144_126 = arith.constant 144 : index
    %c0_127 = arith.constant 0 : index
    %323 = vector.load %arg1[%c144_126, %c0_127] : memref<216x256xf32, #tpu.memory_space<vmem>>, vector<64x256xf32>
    %cst_128 = arith.constant dense<0.000000e+00> : vector<8x256xf32>
    %324 = tpu.matmul %298, %323, %cst_128 {dimension_numbers = #tpu.dot_dimension_numbers<[1], [0], [0], [1], [0, 0, 1, 1], [], []>} : vector<8x64xf32>, vector<64x256xf32>, vector<8x256xf32> -> vector<8x256xf32>
    %325 = arith.addf %322, %324 : vector<8x256xf32>
    %c208_129 = arith.constant 208 : index
    %c0_130 = arith.constant 0 : index
    %326 = vector.load %arg1[%c208_129, %c0_130] : memref<216x256xf32, #tpu.memory_space<vmem>>, vector<1x256xf32>
    %327 = vector.broadcast %326 : vector<1x256xf32> to vector<8x256xf32>
    %328 = arith.addf %325, %327 : vector<8x256xf32>
    %329 = vector.extract_strided_slice %328 {offsets = [0, 0], sizes = [8, 192], strides = [1, 1]} : vector<8x256xf32> to vector<8x192xf32>
    %cst_131 = arith.constant 5.000000e-01 : f32
    %330 = vector.broadcast %cst_131 : f32 to vector<8x192xf32>
    %331 = arith.mulf %330, %329 : vector<8x192xf32>
    %332 = math.tanh %331 : vector<8x192xf32>
    %cst_132 = arith.constant 5.000000e-01 : f32
    %333 = vector.broadcast %cst_132 : f32 to vector<8x192xf32>
    %334 = arith.mulf %333, %332 : vector<8x192xf32>
    %cst_133 = arith.constant 5.000000e-01 : f32
    %335 = vector.broadcast %cst_133 : f32 to vector<8x192xf32>
    %336 = arith.addf %334, %335 : vector<8x192xf32>
    %337 = vector.extract_strided_slice %328 {offsets = [0, 192], sizes = [8, 64], strides = [1, 1]} : vector<8x256xf32> to vector<8x64xf32>
    %338 = math.tanh %337 : vector<8x64xf32>
    %339 = vector.extract_strided_slice %336 {offsets = [0, 0], sizes = [8, 64], strides = [1, 1]} : vector<8x192xf32> to vector<8x64xf32>
    %340 = vector.extract_strided_slice %336 {offsets = [0, 64], sizes = [8, 64], strides = [1, 1]} : vector<8x192xf32> to vector<8x64xf32>
    %341 = vector.extract_strided_slice %336 {offsets = [0, 128], sizes = [8, 64], strides = [1, 1]} : vector<8x192xf32> to vector<8x64xf32>
    %342 = arith.mulf %340, %296 : vector<8x64xf32>
    %343 = arith.mulf %339, %338 : vector<8x64xf32>
    %344 = arith.addf %342, %343 : vector<8x64xf32>
    %345 = math.tanh %344 : vector<8x64xf32>
    %346 = arith.mulf %341, %345 : vector<8x64xf32>
    %c56 = arith.constant 56 : index
    %c0_134 = arith.constant 0 : index
    %347 = vector.load %arg4[%c56, %c0_134] : memref<64x256xf32, #tpu.memory_space<vmem>>, vector<8x256xf32>
    %c8_135 = arith.constant 8 : index
    %c0_136 = arith.constant 0 : index
    %348 = vector.load %arg1[%c8_135, %c0_136] : memref<216x256xf32, #tpu.memory_space<vmem>>, vector<64x256xf32>
    %cst_137 = arith.constant dense<0.000000e+00> : vector<8x256xf32>
    %349 = tpu.matmul %320, %348, %cst_137 {dimension_numbers = #tpu.dot_dimension_numbers<[1], [0], [0], [1], [0, 0, 1, 1], [], []>} : vector<8x64xf32>, vector<64x256xf32>, vector<8x256xf32> -> vector<8x256xf32>
    %350 = arith.addf %347, %349 : vector<8x256xf32>
    %351 = vector.extract_strided_slice %350 {offsets = [0, 0], sizes = [8, 192], strides = [1, 1]} : vector<8x256xf32> to vector<8x192xf32>
    %cst_138 = arith.constant 5.000000e-01 : f32
    %352 = vector.broadcast %cst_138 : f32 to vector<8x192xf32>
    %353 = arith.mulf %352, %351 : vector<8x192xf32>
    %354 = math.tanh %353 : vector<8x192xf32>
    %cst_139 = arith.constant 5.000000e-01 : f32
    %355 = vector.broadcast %cst_139 : f32 to vector<8x192xf32>
    %356 = arith.mulf %355, %354 : vector<8x192xf32>
    %cst_140 = arith.constant 5.000000e-01 : f32
    %357 = vector.broadcast %cst_140 : f32 to vector<8x192xf32>
    %358 = arith.addf %356, %357 : vector<8x192xf32>
    %359 = vector.extract_strided_slice %350 {offsets = [0, 192], sizes = [8, 64], strides = [1, 1]} : vector<8x256xf32> to vector<8x64xf32>
    %360 = math.tanh %359 : vector<8x64xf32>
    %361 = vector.extract_strided_slice %358 {offsets = [0, 0], sizes = [8, 64], strides = [1, 1]} : vector<8x192xf32> to vector<8x64xf32>
    %362 = vector.extract_strided_slice %358 {offsets = [0, 64], sizes = [8, 64], strides = [1, 1]} : vector<8x192xf32> to vector<8x64xf32>
    %363 = vector.extract_strided_slice %358 {offsets = [0, 128], sizes = [8, 64], strides = [1, 1]} : vector<8x192xf32> to vector<8x64xf32>
    %364 = arith.mulf %362, %318 : vector<8x64xf32>
    %365 = arith.mulf %361, %360 : vector<8x64xf32>
    %366 = arith.addf %364, %365 : vector<8x64xf32>
    %367 = math.tanh %366 : vector<8x64xf32>
    %368 = arith.mulf %363, %367 : vector<8x64xf32>
    %c80_141 = arith.constant 80 : index
    %c0_142 = arith.constant 0 : index
    %369 = vector.load %arg1[%c80_141, %c0_142] : memref<216x256xf32, #tpu.memory_space<vmem>>, vector<64x256xf32>
    %cst_143 = arith.constant dense<0.000000e+00> : vector<8x256xf32>
    %370 = tpu.matmul %368, %369, %cst_143 {dimension_numbers = #tpu.dot_dimension_numbers<[1], [0], [0], [1], [0, 0, 1, 1], [], []>} : vector<8x64xf32>, vector<64x256xf32>, vector<8x256xf32> -> vector<8x256xf32>
    %c144_144 = arith.constant 144 : index
    %c0_145 = arith.constant 0 : index
    %371 = vector.load %arg1[%c144_144, %c0_145] : memref<216x256xf32, #tpu.memory_space<vmem>>, vector<64x256xf32>
    %cst_146 = arith.constant dense<0.000000e+00> : vector<8x256xf32>
    %372 = tpu.matmul %346, %371, %cst_146 {dimension_numbers = #tpu.dot_dimension_numbers<[1], [0], [0], [1], [0, 0, 1, 1], [], []>} : vector<8x64xf32>, vector<64x256xf32>, vector<8x256xf32> -> vector<8x256xf32>
    %373 = arith.addf %370, %372 : vector<8x256xf32>
    %c208_147 = arith.constant 208 : index
    %c0_148 = arith.constant 0 : index
    %374 = vector.load %arg1[%c208_147, %c0_148] : memref<216x256xf32, #tpu.memory_space<vmem>>, vector<1x256xf32>
    %375 = vector.broadcast %374 : vector<1x256xf32> to vector<8x256xf32>
    %376 = arith.addf %373, %375 : vector<8x256xf32>
    %377 = vector.extract_strided_slice %376 {offsets = [0, 0], sizes = [8, 192], strides = [1, 1]} : vector<8x256xf32> to vector<8x192xf32>
    %cst_149 = arith.constant 5.000000e-01 : f32
    %378 = vector.broadcast %cst_149 : f32 to vector<8x192xf32>
    %379 = arith.mulf %378, %377 : vector<8x192xf32>
    %380 = math.tanh %379 : vector<8x192xf32>
    %cst_150 = arith.constant 5.000000e-01 : f32
    %381 = vector.broadcast %cst_150 : f32 to vector<8x192xf32>
    %382 = arith.mulf %381, %380 : vector<8x192xf32>
    %cst_151 = arith.constant 5.000000e-01 : f32
    %383 = vector.broadcast %cst_151 : f32 to vector<8x192xf32>
    %384 = arith.addf %382, %383 : vector<8x192xf32>
    %385 = vector.extract_strided_slice %376 {offsets = [0, 192], sizes = [8, 64], strides = [1, 1]} : vector<8x256xf32> to vector<8x64xf32>
    %386 = math.tanh %385 : vector<8x64xf32>
    %387 = vector.extract_strided_slice %384 {offsets = [0, 0], sizes = [8, 64], strides = [1, 1]} : vector<8x192xf32> to vector<8x64xf32>
    %388 = vector.extract_strided_slice %384 {offsets = [0, 64], sizes = [8, 64], strides = [1, 1]} : vector<8x192xf32> to vector<8x64xf32>
    %389 = vector.extract_strided_slice %384 {offsets = [0, 128], sizes = [8, 64], strides = [1, 1]} : vector<8x192xf32> to vector<8x64xf32>
    %390 = arith.mulf %388, %344 : vector<8x64xf32>
    %391 = arith.mulf %387, %386 : vector<8x64xf32>
    %392 = arith.addf %390, %391 : vector<8x64xf32>
    %393 = math.tanh %392 : vector<8x64xf32>
    %394 = arith.mulf %389, %393 : vector<8x64xf32>
    tpu.wait_dma2 semaphore(%arg6 : memref<!tpu.dma_semaphore, #tpu.memory_space<semaphore_mem>>) src(%arg2 : memref<544x128xf32, #tpu.memory_space<any>>) dst(%arg5 : memref<544x128xf32, #tpu.memory_space<vmem>>)
    %395 = vector.extract_strided_slice %394 {offsets = [0, 0], sizes = [2, 64], strides = [1, 1]} : vector<8x64xf32> to vector<2x64xf32>
    %cst_152 = arith.constant dense<0.000000e+00> : vector<64xf32>
    %396 = vector.multi_reduction <add>, %395, %cst_152 [0] : vector<2x64xf32> to vector<64xf32>
    %397 = vector.shape_cast %396 : vector<64xf32> to vector<1x64xf32>
    %cst_153 = arith.constant 2.000000e+00 : f32
    %398 = vector.broadcast %cst_153 : f32 to vector<1x64xf32>
    %399 = arith.divf %397, %398 : vector<1x64xf32>
    %c64 = arith.constant 64 : index
    %c0_154 = arith.constant 0 : index
    %400 = vector.load %arg0[%c64, %c0_154] : memref<72x8xf32, #tpu.memory_space<vmem>>, vector<8x1xf32>
    %c0_155 = arith.constant 0 : index
    %c0_156 = arith.constant 0 : index
    %401 = vector.load %arg5[%c0_155, %c0_156] : memref<544x128xf32, #tpu.memory_space<vmem>>, vector<64x128xf32>
    %cst_157 = arith.constant dense<0.000000e+00> : vector<1x128xf32>
    %402 = tpu.matmul %399, %401, %cst_157 {dimension_numbers = #tpu.dot_dimension_numbers<[1], [0], [0], [1], [0, 0, 1, 1], [], []>} : vector<1x64xf32>, vector<64x128xf32>, vector<1x128xf32> -> vector<1x128xf32>
    %403 = vector.broadcast %400 : vector<8x1xf32> to vector<8x128xf32>
    %404 = vector.broadcast %402 : vector<1x128xf32> to vector<8x128xf32>
    %405 = arith.mulf %403, %404 : vector<8x128xf32>
    %c64_158 = arith.constant 64 : index
    %c0_159 = arith.constant 0 : index
    %406 = vector.load %arg5[%c64_158, %c0_159] : memref<544x128xf32, #tpu.memory_space<vmem>>, vector<1x128xf32>
    %407 = vector.broadcast %406 : vector<1x128xf32> to vector<8x128xf32>
    %408 = arith.addf %405, %407 : vector<8x128xf32>
    %cst_160 = arith.constant 0.000000e+00 : f32
    %409 = vector.broadcast %cst_160 : f32 to vector<8x128xf32>
    %410 = arith.maximumf %408, %409 : vector<8x128xf32>
    %411 = vector.broadcast %400 : vector<8x1xf32> to vector<8x128xf32>
    %412 = arith.mulf %411, %410 : vector<8x128xf32>
    %cst_161 = arith.constant dense<0.000000e+00> : vector<128xf32>
    %413 = vector.multi_reduction <add>, %412, %cst_161 [0] : vector<8x128xf32> to vector<128xf32>
    %414 = vector.shape_cast %413 : vector<128xf32> to vector<1x128xf32>
    %cst_162 = arith.constant 2.000000e-01 : f32
    %415 = vector.broadcast %cst_162 : f32 to vector<1x128xf32>
    %416 = arith.mulf %414, %415 : vector<1x128xf32>
    %c72_163 = arith.constant 72 : index
    %c0_164 = arith.constant 0 : index
    %417 = vector.load %arg5[%c72_163, %c0_164] : memref<544x128xf32, #tpu.memory_space<vmem>>, vector<128x128xf32>
    %cst_165 = arith.constant dense<0.000000e+00> : vector<1x128xf32>
    %418 = tpu.matmul %416, %417, %cst_165 {dimension_numbers = #tpu.dot_dimension_numbers<[1], [0], [0], [1], [0, 0, 1, 1], [], []>} : vector<1x128xf32>, vector<128x128xf32>, vector<1x128xf32> -> vector<1x128xf32>
    %c200 = arith.constant 200 : index
    %c0_166 = arith.constant 0 : index
    %419 = vector.load %arg5[%c200, %c0_166] : memref<544x128xf32, #tpu.memory_space<vmem>>, vector<1x128xf32>
    %420 = arith.addf %418, %419 : vector<1x128xf32>
    %c208_167 = arith.constant 208 : index
    %c0_168 = arith.constant 0 : index
    %421 = vector.load %arg5[%c208_167, %c0_168] : memref<544x128xf32, #tpu.memory_space<vmem>>, vector<64x128xf32>
    %cst_169 = arith.constant dense<0.000000e+00> : vector<8x128xf32>
    %422 = tpu.matmul %394, %421, %cst_169 {dimension_numbers = #tpu.dot_dimension_numbers<[1], [0], [0], [1], [0, 0, 1, 1], [], []>} : vector<8x64xf32>, vector<64x128xf32>, vector<8x128xf32> -> vector<8x128xf32>
    %c272 = arith.constant 272 : index
    %c0_170 = arith.constant 0 : index
    %423 = vector.load %arg5[%c272, %c0_170] : memref<544x128xf32, #tpu.memory_space<vmem>>, vector<128x128xf32>
    %cst_171 = arith.constant dense<0.000000e+00> : vector<1x128xf32>
    %424 = tpu.matmul %420, %423, %cst_171 {dimension_numbers = #tpu.dot_dimension_numbers<[1], [0], [0], [1], [0, 0, 1, 1], [], []>} : vector<1x128xf32>, vector<128x128xf32>, vector<1x128xf32> -> vector<1x128xf32>
    %425 = vector.broadcast %424 : vector<1x128xf32> to vector<8x128xf32>
    %426 = arith.addf %422, %425 : vector<8x128xf32>
    %c400 = arith.constant 400 : index
    %c0_172 = arith.constant 0 : index
    %427 = vector.load %arg5[%c400, %c0_172] : memref<544x128xf32, #tpu.memory_space<vmem>>, vector<1x128xf32>
    %428 = vector.broadcast %427 : vector<1x128xf32> to vector<8x128xf32>
    %429 = arith.addf %426, %428 : vector<8x128xf32>
    %c408 = arith.constant 408 : index
    %c0_173 = arith.constant 0 : index
    %430 = vector.load %arg5[%c408, %c0_173] : memref<544x128xf32, #tpu.memory_space<vmem>>, vector<128x128xf32>
    %cst_174 = arith.constant dense<0.000000e+00> : vector<8x128xf32>
    %431 = tpu.matmul %429, %430, %cst_174 {dimension_numbers = #tpu.dot_dimension_numbers<[1], [0], [0], [1], [0, 0, 1, 1], [], []>} : vector<8x128xf32>, vector<128x128xf32>, vector<8x128xf32> -> vector<8x128xf32>
    %c536 = arith.constant 536 : index
    %c0_175 = arith.constant 0 : index
    %432 = vector.load %arg5[%c536, %c0_175] : memref<544x128xf32, #tpu.memory_space<vmem>>, vector<1x128xf32>
    %433 = vector.broadcast %432 : vector<1x128xf32> to vector<8x128xf32>
    %434 = arith.addf %431, %433 : vector<8x128xf32>
    %c0_176 = arith.constant 0 : index
    %c0_177 = arith.constant 0 : index
    %435 = vector.load %arg3[%c0_176, %c0_177] : memref<8x128xf32, #tpu.memory_space<vmem>>, vector<8x128xf32>
    tpu.vector_store %arg3[%c0_176, %c0_177], %434 {strides = array<i32>} : memref<8x128xf32, #tpu.memory_space<vmem>>, vector<8x128xf32>,
    return
  }
}

</mosaic_0001>

<bundles_post_ra>
// kernel: hybrid_forward.1
= control target key start
LH: loop header
LB: loop body
LE: loop exit
PB: predicated region body
PF: predicated region fallthrough
CT: control target
= control target key end

     0   :  { %8 = vsyncpa [#allocation6], 0  ;;  %s3458_s12 = smov [#allocation5]   ;;  %s4440_s0 = inlined_call_operand.vmem [shape: f32[72,8], index: 0, kind: input, shape index: {}]   ;;  %s4441_s1 = inlined_call_operand.hbm [shape: f32[216,256], index: 1, kind: input, shape index: {}]   ;;  %s4442_s2 = inlined_call_operand.hbm [shape: f32[544,128], index: 2, kind: input, shape index: {}]   ;;  %s4443_s3 = inlined_call_operand.vmem [shape: f32[8,128], index: 3, kind: output, shape index: {}]  }
   0x1   :  { %s16_s13 = sshll.u32 %s3458_s12, 4  ;;  %s17_s13 = int_to_ptr.vmem [resolvable:$true] %s16_s13 }
   0x2   :  { %s3422_s14 = scalar_lea.vmem %s17_s13, 6912  ;;  %p3427_p1 = scmp.lt.s32.totalorder %s17_s13, %s17_s13 }
   0x3   :  { %p3423_p0 = scmp.ne.s32.totalorder %s17_s13, %s3422_s14  ;;  %p3428_p2 = scmp.lt.s32.totalorder %s3422_s14, %s3422_s14 }
   0x5   :  { %p3429_p3 = por %p3428_p2, %p3427_p1 }
   0x7   :  { %p3430_p4 = pnand %p3429_p3, %p3423_p0 }
   0x9   :  { %3433 = shalt.err (!%p3430_p4)
}
   0xa   :  { %s3459_s15 = smov 256   ;;  %s3460_s16 = smov 16  }
   0xb   :  { %22 = dma.hbm_to_vmem [thread:$0]  %s4441_s1, 6912, %s17_s13, [#allocation6], %s3459_s15, %s3459_s15, %s3460_s16  }
   0xc   :  { %3454 = dma.done.wait [#allocation6], 6912  }
   0xd   :  { %3455 = vsyncadd [#allocation6], 4294960384  ;;  %v4445_v0 = vmov 0.0   ;;  %v46_v1 = vld [vmem:[#allocation5 + $0x8] sm:$0xff]  ;;  %v45_v2 = vld [vmem:[#allocation5] sm:$0xff]  ;;  %vm60_vm0 = vcmask 64512   ;;  %v50_v24 = vlaneseq }
   0xe   :  { %173 = vmatprep.mubr.f32.mxu1 %v4445_v0  ;;  %149 = vmatprep.mubr.f32.mxu0 %v4445_v0  ;;  %v41_v3 = vld [vmem:[%s4440_s0 + $0x20] sm:$0xff]  ;;  %v3494_v4 = vld [vmem:[#allocation5 + $0x88] sm:$0xff]  ;;  %v3498_v6 = vld [vmem:[#allocation5 + $0x78] sm:$0xff]  ;;  %s3462_s28 = smov 64   ;;  %vm232_vm1 = vcmask 523264   ;;  %s3463_s8 = smov [#allocation3]  }
   0xf   :  { %3227 = vmatprep.subr.mxu1 %v46_v1  ;;  %4492 = vst [vmem:[#allocation13_spill] sm:$0xff] %v3494_v4  ;;  %v3496_v5 = vld [vmem:[#allocation5 + $0x80] sm:$0xff]  ;;  %115 = vmatprep.subr.mxu0 %v46_v1  ;;  %v3502_v7 = vld [vmem:[#allocation5 + $0x70] sm:$0xff]  ;;  %v42_v8 = vld [vmem:[%s4440_s0 + $0x28] sm:$0xff]  ;;  %v3570_v27 = vshrl.u32 %v50_v24, 7  ;;  %s33_s9 = sshll.u32 %s3463_s8, 4  ;;  %s34_s9 = int_to_ptr.vmem [resolvable:$true] %s33_s9 }
  0x10   :  { %3228 = vmatpush1.msra.mxu1 %v45_v2  ;;  %116 = vmatpush1.msra.mxu0 %v45_v2  ;;  %v3509_v9 = vld [vmem:[#allocation5 + $0x68] sm:$0xff]  ;;  %v3512_v10 = vld [vmem:[#allocation5 + $0x60] sm:$0xff]  ;;  %v3515_v11 = vld [vmem:[#allocation5 + $0x58] sm:$0xff]  ;;  %s3442_s10 = scalar_lea.vmem %s34_s9, 8704  ;;  %p3447_p6 = scmp.lt.s32.totalorder %s34_s9, %s34_s9 }
  0x11   :  { %2983 = vmatmul.mubr.msk.f32.vlgmr.msra.gmra.mxu1 %vm60_vm0, %v41_v3  ;;  %252 = vmatprep.subr.mxu1 %v3494_v4  ;;  %v37_v12 = vld [vmem:[%s4440_s0] sm:$0xff]  ;;  %v3522_v13 = vld [vmem:[#allocation5 + $0x50] sm:$0xff]  ;;  %v3529_v15 = vld [vmem:[#allocation5 + $0x48] sm:$0xff]  ;;  %v3577_v30 = vsub.s32 0, %v3570_v27  ;;  %v4444_v36 = vsub.s32 1, %v3570_v27  ;;  %p3443_p5 = scmp.ne.s32.totalorder %s34_s9, %s3442_s10  ;;  %p3448_p7 = scmp.lt.s32.totalorder %s3442_s10, %s3442_s10 }
  0x12   :  { %253 = vmatpush1.msra.mxu1 %v3496_v5  ;;  %179 = vmatprep.mubr.f32.mxu1 %v4445_v0  ;;  %v43_v14 = vld [vmem:[%s4440_s0 + $0x30] sm:$0xff]  ;;  %v3532_v16 = vld [vmem:[#allocation5 + $0x40] sm:$0xff]  ;;  %v3536_v17 = vld [vmem:[#allocation5 + $0x38] sm:$0xff] }
  0x13   :  { %254 = vmatprep.subr.mxu1 %v3498_v6  ;;  %2979 = vmatmul.mubr.msk.f32.vlgmr.msra.gmra.mxu0 %vm60_vm0, %v37_v12  ;;  %v3541_v18 = vld [vmem:[#allocation5 + $0x30] sm:$0xff]  ;;  %v44_v19 = vld [vmem:[%s4440_s0 + $0x38] sm:$0xff]  ;;  %v3548_v20 = vld [vmem:[#allocation5 + $0x28] sm:$0xff]  ;;  %4497 = vst [vmem:[#allocation18_spill] sm:$0xff] %v3577_v30  ;;  %p3449_p8 = por %p3448_p7, %p3447_p6 }
  0x14   :  { %255 = vmatpush1.msra.mxu1 %v3502_v7  ;;  %155 = vmatprep.mubr.f32.mxu0 %v4445_v0  ;;  %v3551_v21 = vld [vmem:[#allocation5 + $0x20] sm:$0xff]  ;;  %v3554_v22 = vld [vmem:[#allocation5 + $0x18] sm:$0xff]  ;;  %v3558_v23 = vld [vmem:[#allocation5 + $0x10] sm:$0xff] }
  0x15   :  { %2984 = vmatmul.mubr.msk.f32.gmra.mxu1 %vm60_vm0, %v42_v8  ;;  %256 = vmatprep.subr.mxu1 %v3509_v9  ;;  %v48_v31 = vld [vmem:[#allocation5 + $0x90] ss:$8 sm:$0x3]  ;;  %v3609_v56 = vld [vmem:[#allocation5 + $0x188] sm:$0xff]  ;;  %v3612_v57 = vld [vmem:[#allocation5 + $0x180] sm:$0xff]  ;;  %p3450_p9 = pnand %p3449_p8, %p3443_p5 }
  0x16   :  { %257 = vmatpush1.msra.mxu1 %v3512_v10  ;;  %185 = vmatprep.mubr.f32.mxu1 %v4445_v0  ;;  %v3584_v35 = vrot.slane %v48_v31, %v3577_v30  ;;  %v3594_v41 = vrot.slane %v48_v31, %v4444_v36  ;;  %v3605_v54 = vld [vmem:[#allocation5 + $0x198] sm:$0xff]  ;;  %v3607_v55 = vld [vmem:[#allocation5 + $0x190] sm:$0xff]  ;;  %v3621_v60 = vld [vmem:[#allocation5 + $0x168] sm:$0xff] }
  0x17   :  { %258 = vmatprep.subr.mxu1 %v3515_v11  ;;  %4504 = vst [vmem:[#allocation25_spill] sm:$0xff] %v3605_v54  ;;  %v3615_v58 = vld [vmem:[#allocation5 + $0x178] sm:$0xff]  ;;  %v3618_v59 = vld [vmem:[#allocation5 + $0x170] sm:$0xff]  ;;  %v3624_v61 = vld [vmem:[#allocation5 + $0x160] sm:$0xff] }
  0x18   :  { %259 = vmatpush1.msra.mxu1 %v3522_v13  ;;  %4500 = vst [vmem:[#allocation21_spill] sm:$0xff] %v3584_v35  ;;  %4503 = vst [vmem:[#allocation24_spill] sm:$0xff] %v3594_v41  ;;  %v3626_v62 = vld [vmem:[#allocation5 + $0x118] sm:$0xff]  ;;  %v3628_v63 = vld [vmem:[#allocation5 + $0x110] sm:$0xff] }
  0x19   :  { %2985 = vmatmul.mubr.msk.f32.gmra.mxu1 %vm60_vm0, %v43_v14  ;;  %260 = vmatprep.subr.mxu1 %v3529_v15  ;;  %v3631_v1 = vld [vmem:[#allocation5 + $0x158] sm:$0xff]  ;;  %v3634_v2 = vld [vmem:[#allocation5 + $0x108] sm:$0xff]  ;;  %v3640_v8 = vld [vmem:[#allocation5 + $0x150] sm:$0xff] }
  0x1a   :  { %261 = vmatpush1.msra.mxu1 %v3532_v16  ;;  %191 = vmatprep.mubr.f32.mxu1 %v4445_v0  ;;  %v38_v3 = vld [vmem:[%s4440_s0 + $0x8] sm:$0xff]  ;;  %v3643_v12 = vld [vmem:[#allocation5 + $0x100] sm:$0xff]  ;;  %v3655_v31 = vld [vmem:[#allocation5 + $0xf0] sm:$0xff] }
  0x1b   :  { %262 = vmatprep.subr.mxu1 %v3536_v17  ;;  %457 = vmatprep.subr.mxu0 %v3626_v62  ;;  %v3646_v14 = vld [vmem:[#allocation5 + $0x148] sm:$0xff]  ;;  %v3652_v24 = vld [vmem:[#allocation5 + $0x140] sm:$0xff] }
  0x1c   :  { %263 = vmatpush1.msra.mxu1 %v3541_v18  ;;  %458 = vmatpush1.msra.mxu0 %v3628_v63 }
  0x1d   :  { %2986 = vmatmul.mubr.msk.f32.gmra.mxu1 %vm60_vm0, %v44_v19  ;;  %264 = vmatprep.subr.mxu1 %v3548_v20  ;;  %v3649_v19 = vld [vmem:[#allocation5 + $0xf8] sm:$0xff] }
  0x1e   :  { %265 = vmatpush1.msra.mxu1 %v3551_v21  ;;  %300 = vmatprep.mubr.f32.mxu1 %v4445_v0 }
  0x1f   :  { %266 = vmatprep.subr.mxu1 %v3554_v22  ;;  %459 = vmatprep.subr.mxu0 %v3634_v2 }
  0x20   :  { %267 = vmatpush1.msra.mxu1 %v3558_v23  ;;  %2980 = vmatmul.mubr.msk.f32.gmra.mxu0 %vm60_vm0, %v38_v3  ;;  %v3711_v3 = vld [vmem:[#allocation5 + $0xb0] sm:$0xff] }
  0x21   :  { %301 = vmatmul.mubr.f32.vlgmr.msra.gmra.mxu1 %v4445_v0  ;;  %383 = vmatprep.subr.mxu1 %v3605_v54  ;;  %4511 = vst [vmem:[#allocation32_spill] sm:$0xff] %v3711_v3 }
  0x22   :  { %431 = vmatprep.mubr.f32.mxu1 %v4445_v0  ;;  %384 = vmatpush1.msra.mxu1 %v3607_v55 }
  0x23   :  { %385 = vmatprep.subr.mxu1 %v3609_v56  ;;  %460 = vmatpush1.msra.mxu0 %v3643_v12 }
  0x24   :  { %386 = vmatpush1.msra.mxu1 %v3612_v57  ;;  %461 = vmatprep.subr.mxu0 %v3649_v19 }
  0x25   :  { %387 = vmatprep.subr.mxu1 %v3615_v58  ;;  %462 = vmatpush1.msra.mxu0 %v3655_v31 }
  0x26   :  { %388 = vmatpush1.msra.mxu1 %v3618_v59  ;;  %161 = vmatprep.mubr.f32.mxu0 %v4445_v0 }
  0x27   :  { %389 = vmatprep.subr.mxu1 %v3621_v60 }
  0x28   :  { %390 = vmatpush1.msra.mxu1 %v3624_v61 }
  0x29   :  { %391 = vmatprep.subr.mxu1 %v3631_v1 }
  0x2a   :  { %392 = vmatpush1.msra.mxu1 %v3640_v8 }
  0x2b   :  { %393 = vmatprep.subr.mxu1 %v3646_v14 }
  0x2c   :  { %394 = vmatpush1.msra.mxu1 %v3652_v24 }
  0xd1   :  { %v3566_v25 = vpop.f32.mrf.mxu1 }
  0xd2   :  { %4493 = vst [vmem:[#allocation14_spill] sm:$0xff] %v3566_v25 }
  0xd3   :  { %v3568_v26 = vpop.f32.mrf.mxu1  ;;  %v151_v34 = vpop.f32.mrf.mxu0 }
  0xd4   :  { %4494 = vst [vmem:[#allocation15_spill] sm:$0xff] %v3568_v26  ;;  %v152_v38 = vadd.f32 %v151_v34, %v3584_v35  ;;  %v3658_v34 = vld [vmem:[#allocation5 + $0x138] sm:$0xff] }
  0xd5   :  { %v3572_v28 = vpop.f32.mrf.mxu1  ;;  %v153_v40 = vpop.f32.mrf.mxu0  ;;  %395 = vmatprep.subr.mxu1 %v3658_v34 }
  0xd6   :  { %4495 = vst [vmem:[#allocation16_spill] sm:$0xff] %v3572_v28  ;;  %v154_v43 = vadd.f32 %v153_v40, %v3594_v41  ;;  %v3665_v40 = vld [vmem:[#allocation5 + $0xe8] sm:$0xff] }
  0xd7   :  { %v3574_v29 = vpop.f32.mrf.mxu1  ;;  %463 = vmatprep.subr.mxu0 %v3665_v40 }
  0xd8   :  { %4496 = vst [vmem:[#allocation17_spill] sm:$0xff] %v3574_v29 }
  0xd9   :  { %v3579_v32 = vpop.f32.mrf.mxu1 }
  0xda   :  { %4498 = vst [vmem:[#allocation19_spill] sm:$0xff] %v3579_v32 }
  0xdb   :  { %v3581_v33 = vpop.f32.mrf.mxu1 }
  0xdc   :  { %4499 = vst [vmem:[#allocation20_spill] sm:$0xff] %v3581_v33 }
  0xdd   :  { %v3587_v37 = vpop.f32.mrf.mxu1 }
  0xde   :  { %4501 = vst [vmem:[#allocation22_spill] sm:$0xff] %v3587_v37 }
  0xdf   :  { %v3590_v39 = vpop.f32.mrf.mxu1 }
  0xe0   :  { %4502 = vst [vmem:[#allocation23_spill] sm:$0xff] %v3590_v39  ;;  %v3736_v39 = vld [vmem:[#allocation5 + $0xa0] sm:$0xff] }
  0xe1   :  { %v302_v42 = vpop.f32.mrf.mxu1  ;;  %4513 = vst [vmem:[#allocation34_spill] sm:$0xff] %v3736_v39 }
  0xe2   :  { %v307_v44 = vadd.f32 %v302_v42, %v152_v38  ;;  %v3662_v38 = vld [vmem:[#allocation5 + $0x130] sm:$0xff]  ;;  %v3668_v42 = vld [vmem:[#allocation5 + $0x128] sm:$0xff] }
  0xe3   :  { %v304_v45 = vpop.f32.mrf.mxu1  ;;  %4505 = vst [vmem:[#allocation26_spill] sm:$0xff] %v3668_v42  ;;  %396 = vmatpush1.msra.mxu1 %v3662_v38 }
  0xe4   :  { %v3597_v46 = vadd.f32 %v304_v45, %v154_v43  ;;  %v309_v48 = vmul.f32 0.5, %v307_v44  ;;  %v39_v43 = vld [vmem:[%s4440_s0 + $0x10] sm:$0xff]  ;;  %v3675_v44 = vld [vmem:[#allocation5 + $0x120] sm:$0xff]  ;;  %397 = vmatprep.subr.mxu1 %v3668_v42 }
  0xe5   :  { %4506 = vst [vmem:[#allocation27_spill] sm:$0xff] %v3675_v44  ;;  %v3678_v45 = vld [vmem:[#allocation5 + $0xe0] sm:$0xff]  ;;  %2981 = vmatmul.mubr.msk.f32.gmra.mxu0 %vm60_vm0, %v39_v43  ;;  %398 = vmatpush1.msra.mxu1 %v3675_v44 }
  0xe6   :  { %3237 = vtanh.f32 %v3597_v46  ;;  %464 = vmatpush1.msra.mxu0 %v3678_v45  ;;  %571 = vmatprep.subr.mxu1 %v3494_v4 }
  0xe7   :  { %3239 = vtanh.f32 %v309_v48  ;;  %v3688_v48 = vld [vmem:[#allocation5 + $0xd0] sm:$0xff]  ;;  %432 = vmatmul.mubr.f32.vlgmr.msra.gmra.mxu1 %v4445_v0  ;;  %167 = vmatprep.mubr.f32.mxu0 %v4445_v0 }
  0xe8   :  { %4507 = vst [vmem:[#allocation28_spill] sm:$0xff] %v3688_v48  ;;  %572 = vmatpush1.msra.mxu1 %v3496_v5  ;;  %619 = vmatprep.mubr.f32.mxu1 %v4445_v0 }
  0xe9   :  { %573 = vmatprep.subr.mxu1 %v3498_v6 }
  0xea   :  { %574 = vmatpush1.msra.mxu1 %v3502_v7 }
  0xeb   :  { %575 = vmatprep.subr.mxu1 %v3509_v9 }
  0xec   :  { %576 = vmatpush1.msra.mxu1 %v3512_v10 }
  0xed   :  { %577 = vmatprep.subr.mxu1 %v3515_v11 }
  0xee   :  { %578 = vmatpush1.msra.mxu1 %v3522_v13 }
  0xef   :  { %579 = vmatprep.subr.mxu1 %v3529_v15 }
  0xf0   :  { %580 = vmatpush1.msra.mxu1 %v3532_v16 }
  0xf1   :  { %581 = vmatprep.subr.mxu1 %v3536_v17 }
  0xf2   :  { %582 = vmatpush1.msra.mxu1 %v3541_v18 }
  0xf3   :  { %v3238_v47 = vpop.eup %3237  ;;  %583 = vmatprep.subr.mxu1 %v3548_v20 }
  0xf4   :  { %320 = vrot.lane.b32.xlu0 %v3238_v47, %s3462_s28  ;;  %v3240_v49 = vpop.eup %3239  ;;  %v3684_v47 = vld [vmem:[#allocation5 + $0xd8] sm:$0xff]  ;;  %584 = vmatpush1.msra.mxu1 %v3551_v21 }
  0xf5   :  { %v313_v50 = vmul.f32 0.5, %v3240_v49  ;;  %465 = vmatprep.subr.mxu0 %v3684_v47  ;;  %v3694_v49 = vld [vmem:[#allocation5 + $0xc8] sm:$0xff]  ;;  %585 = vmatprep.subr.mxu1 %v3554_v22 }
  0xf6   :  { %4508 = vst [vmem:[#allocation29_spill] sm:$0xff] %v3694_v49  ;;  %466 = vmatpush1.msra.mxu0 %v3688_v48  ;;  %586 = vmatpush1.msra.mxu1 %v3558_v23 }
  0xf7   :  { %v3601_v51 = vadd.f32 0.5, %v313_v50  ;;  %v40_v50 = vld [vmem:[%s4440_s0 + $0x18] sm:$0xff]  ;;  %467 = vmatprep.subr.mxu0 %v3694_v49  ;;  %747 = vmatprep.subr.mxu1 %v3626_v62 }
  0xf8   :  { %2982 = vmatmul.mubr.msk.f32.gmra.mxu0 %vm60_vm0, %v40_v50 }
  0xf9   :  { %505 = vmatprep.mubr.f32.mxu0 %v4445_v0  ;;  %v318_v43 = vmul.f32 0.0, %v3601_v51  ;;  %v3733_v0 = vld [vmem:[#allocation5 + $0xa8] sm:$0xff] }
  0xfa   :  { %4512 = vst [vmem:[#allocation33_spill] sm:$0xff] %v3733_v0 }
 0x166   :  { %v321_v52 = vpop.permute.xlu0 %320 }
 0x167   :  { %v323_v53 = vmul.f32 %v321_v52, %v3601_v51  ;;  %v3703_v52 = vld [vmem:[#allocation5 + $0xc0] sm:$0xff]  ;;  %v310_v51 = vmul.f32 0.5, %v3597_v46 }
 0x168   :  { %4509 = vst [vmem:[#allocation30_spill] sm:$0xff] %v3703_v52  ;;  %468 = vmatpush1.msra.mxu0 %v3703_v52 }
 0x169   :  { %325 = vrot.lane.b32.xlu0 %v323_v53, %s3462_s28  ;;  %v3707_v53 = vld [vmem:[#allocation5 + $0xb8] sm:$0xff] }
 0x16a   :  { %4510 = vst [vmem:[#allocation31_spill] sm:$0xff] %v3707_v53  ;;  %469 = vmatprep.subr.mxu0 %v3707_v53 }
 0x16b   :  { %470 = vmatpush1.msra.mxu0 %v3711_v3 }
 0x16c   :  { %471 = vmatprep.subr.mxu0 %v3733_v0 }
 0x16d   :  { %472 = vmatpush1.msra.mxu0 %v3736_v39 }
 0x16e   :  { %673 = vmatprep.subr.mxu0 %v3605_v54 }
 0x1db   :  { %v326_v50 = vpop.permute.xlu0 %325 }
 0x1dc   :  { %v3730_v36 = vadd.f32 %v326_v50, %v318_v43 }
 0x1de   :  { %3241 = vtanh.f32 %v3730_v36 }
 0x1df   :  { %3243 = vtanh.f32 %v310_v51  ;;  %v433_v51 = vpop.f32.mrf.mxu1 }
 0x1eb   :  { %v3242_v37 = vpop.eup %3241 }
 0x1ec   :  { %331 = vrot.lane.b32.xlu1 %v3242_v37, %s3462_s28  ;;  %v3244_v43 = vpop.eup %3243 }
 0x1ed   :  { %v314_v50 = vmul.f32 0.5, %v3244_v43 }
 0x1ef   :  { %v316_v33 = vadd.f32 0.5, %v314_v50  ;;  %v435_v50 = vpop.f32.mrf.mxu1 }
 0x25e   :  { %v332_v32 = vpop.permute.xlu1 %331 }
 0x25f   :  { %v334_v29 = vmul.f32 %v332_v32, %v316_v33  ;;  %v157_v32 = vpop.f32.mrf.mxu0 }
 0x260   :  { %v158_v26 = vadd.f32 %v157_v32, %v3584_v35 }
 0x261   :  { %2987 = vmatmul.mubr.msk.f32.vlgmr.msra.gmra.mxu0 %vm232_vm1, %v334_v29  ;;  %2988 = vmatmul.mubr.msk.f32.vlgmr.msra.gmra.mxu1 %vm232_vm1, %v334_v29  ;;  %v4514_v29 = vmov 0.0   ;;  %v159_v33 = vpop.f32.mrf.mxu0 }
 0x262   :  { %748 = vmatpush1.msra.mxu1 %v3628_v63  ;;  %674 = vmatpush1.msra.mxu0 %v3607_v55 }
 0x263   :  { %749 = vmatprep.subr.mxu1 %v3634_v2  ;;  %675 = vmatprep.subr.mxu0 %v3609_v56  ;;  %v3778_v37 = vpop.f32.mrf.mxu0 }
 0x264   :  { %750 = vmatpush1.msra.mxu1 %v3643_v12  ;;  %676 = vmatpush1.msra.mxu0 %v3612_v57  ;;  %4515 = vst [vmem:[#allocation35_spill] sm:$0xff] %v3778_v37 }
 0x265   :  { %751 = vmatprep.subr.mxu1 %v3649_v19  ;;  %677 = vmatprep.subr.mxu0 %v3615_v58  ;;  %v3780_v46 = vpop.f32.mrf.mxu0 }
 0x266   :  { %752 = vmatpush1.msra.mxu1 %v3655_v31  ;;  %678 = vmatpush1.msra.mxu0 %v3618_v59  ;;  %4516 = vst [vmem:[#allocation36_spill] sm:$0xff] %v3780_v46 }
 0x267   :  { %753 = vmatprep.subr.mxu1 %v3665_v40  ;;  %679 = vmatprep.subr.mxu0 %v3621_v60  ;;  %v3782_v43 = vpop.f32.mrf.mxu0 }
 0x268   :  { %754 = vmatpush1.msra.mxu1 %v3678_v45  ;;  %680 = vmatpush1.msra.mxu0 %v3624_v61  ;;  %4517 = vst [vmem:[#allocation37_spill] sm:$0xff] %v3782_v43 }
 0x269   :  { %755 = vmatprep.subr.mxu1 %v3684_v47  ;;  %681 = vmatprep.subr.mxu0 %v3631_v1  ;;  %v3784_v28 = vpop.f32.mrf.mxu0 }
 0x26a   :  { %756 = vmatpush1.msra.mxu1 %v3688_v48  ;;  %682 = vmatpush1.msra.mxu0 %v3640_v8  ;;  %4518 = vst [vmem:[#allocation38_spill] sm:$0xff] %v3784_v28 }
 0x26b   :  { %757 = vmatprep.subr.mxu1 %v3694_v49  ;;  %683 = vmatprep.subr.mxu0 %v3646_v14 }
 0x26c   :  { %758 = vmatpush1.msra.mxu1 %v3703_v52  ;;  %684 = vmatpush1.msra.mxu0 %v3652_v24 }
 0x26d   :  { %759 = vmatprep.subr.mxu1 %v3707_v53  ;;  %685 = vmatprep.subr.mxu0 %v3658_v34  ;;  %v4519_v53 = vsub.s32 1, %v3570_v27 }
 0x26e   :  { %760 = vmatpush1.msra.mxu1 %v3711_v3  ;;  %686 = vmatpush1.msra.mxu0 %v3662_v38  ;;  %v160_v3 = vadd.f32 %v159_v33, %v3594_v41 }
 0x26f   :  { %761 = vmatprep.subr.mxu1 %v3733_v0  ;;  %687 = vmatprep.subr.mxu0 %v3668_v42 }
 0x270   :  { %762 = vmatpush1.msra.mxu1 %v3736_v39  ;;  %795 = vmatprep.mubr.f32.mxu1 %v4514_v29  ;;  %v513_v39 = vld [vmem:[#allocation5 + $0x1a0] ss:$8 sm:$0x3] }
 0x271   :  { %688 = vmatpush1.msra.mxu0 %v3675_v44  ;;  %721 = vmatprep.mubr.f32.mxu0 %v4514_v29  ;;  %v3790_v52 = vrot.slane %v513_v39, %v4519_v53 }
 0x272   :  { %848 = vmatprep.subr.mxu0 %v3494_v4  ;;  %950 = vmatprep.subr.mxu1 %v3605_v54 }
 0x273   :  { %4520 = vst [vmem:[#allocation39_spill] sm:$0xff] %v3790_v52 }
 0x321   :  { %v507_v25 = vpop.f32.mrf.mxu0  ;;  %v621_v0 = vpop.f32.mrf.mxu1 }
 0x322   :  { %v626_v54 = vadd.f32 %v621_v0, %v158_v26  ;;  %v508_v33 = vadd.f32 %v507_v25, %v433_v51  ;;  %v3796_v0 = vrot.slane %v513_v39, %v3577_v30 }
 0x323   :  { %v509_v37 = vpop.f32.mrf.mxu0  ;;  %v623_v46 = vpop.f32.mrf.mxu1 }
 0x324   :  { %v510_v49 = vadd.f32 %v509_v37, %v435_v50  ;;  %v627_v48 = vadd.f32 %v623_v46, %v160_v3  ;;  %v525_v26 = vadd.f32 %v3796_v0, %v508_v33  ;;  %v628_v27 = vmul.f32 0.5, %v626_v54 }
 0x326   :  { %v526_v43 = vadd.f32 %v3790_v52, %v510_v49  ;;  %3245 = vtanh.f32 %v627_v48  ;;  %v527_v53 = vmul.f32 0.5, %v525_v26 }
 0x328   :  { %3247 = vtanh.f32 %v526_v43 }
 0x329   :  { %3249 = vtanh.f32 %v628_v27  ;;  %v629_v27 = vmul.f32 0.5, %v627_v48  ;;  %v4521_v48 = vld [vmem:[#allocation28_spill] sm:$0xff] }
 0x32a   :  { %3251 = vtanh.f32 %v527_v53  ;;  %v528_v53 = vmul.f32 0.5, %v526_v43  ;;  %v4522_v43 = vld [vmem:[#allocation29_spill] sm:$0xff] }
 0x333   :  { %v3246_v28 = vpop.eup %3245 }
 0x334   :  { %639 = vrot.lane.b32.xlu0 %v3246_v28, %s3462_s28 }
 0x335   :  { %v3248_v32 = vpop.eup %3247 }
 0x336   :  { %538 = vrot.lane.b32.xlu1 %v3248_v32, %s3462_s28  ;;  %v3250_v3 = vpop.eup %3249 }
 0x337   :  { %v3252_v49 = vpop.eup %3251  ;;  %v632_v37 = vmul.f32 0.5, %v3250_v3 }
 0x338   :  { %v531_v46 = vmul.f32 0.5, %v3252_v49 }
 0x339   :  { %v634_v50 = vadd.f32 0.5, %v632_v37 }
 0x33a   :  { %v533_v35 = vadd.f32 0.5, %v531_v46 }
 0x33b   :  { %v637_v25 = vmul.f32 %v634_v50, %v3730_v36 }
 0x33c   :  { %v536_v51 = vmul.f32 0.0, %v533_v35 }
 0x3a6   :  { %v640_v41 = vpop.permute.xlu0 %639 }
 0x3a7   :  { %v642_v28 = vmul.f32 %v640_v41, %v634_v50 }
 0x3a8   :  { %v539_v52 = vpop.permute.xlu1 %538 }
 0x3a9   :  { %v541_v32 = vmul.f32 %v539_v52, %v533_v35  ;;  %644 = vrot.lane.b32.xlu0 %v642_v28, %s3462_s28 }
 0x3ab   :  { %543 = vrot.lane.b32.xlu1 %v541_v32, %s3462_s28 }
 0x41b   :  { %v645_v39 = vpop.permute.xlu0 %644 }
 0x41c   :  { %v3802_v54 = vadd.f32 %v645_v39, %v637_v25  ;;  %v4523_v39 = vld [vmem:[#allocation30_spill] sm:$0xff] }
 0x41d   :  { %v544_v33 = vpop.permute.xlu1 %543 }
 0x41e   :  { %3253 = vtanh.f32 %v3802_v54  ;;  %v3805_v26 = vadd.f32 %v544_v33, %v536_v51  ;;  %v4524_v51 = vld [vmem:[#allocation31_spill] sm:$0xff]  ;;  %v4525_v33 = vld [vmem:[#allocation32_spill] sm:$0xff] }
 0x420   :  { %3255 = vtanh.f32 %v3805_v26 }
 0x421   :  { %3257 = vtanh.f32 %v629_v27  ;;  %v4528_v27 = vld [vmem:[#allocation25_spill] sm:$0xff] }
 0x422   :  { %3259 = vtanh.f32 %v528_v53 }
 0x42b   :  { %v3254_v41 = vpop.eup %3253 }
 0x42c   :  { %650 = vrot.lane.b32.xlu0 %v3254_v41, %s3462_s28  ;;  %v4526_v41 = vld [vmem:[#allocation33_spill] sm:$0xff] }
 0x42d   :  { %v3256_v52 = vpop.eup %3255 }
 0x42e   :  { %549 = vrot.lane.b32.xlu1 %v3256_v52, %s3462_s28  ;;  %v3258_v36 = vpop.eup %3257  ;;  %v4527_v52 = vld [vmem:[#allocation34_spill] sm:$0xff] }
 0x42f   :  { %v3260_v3 = vpop.eup %3259  ;;  %v633_v35 = vmul.f32 0.5, %v3258_v36 }
 0x430   :  { %v532_v49 = vmul.f32 0.5, %v3260_v3 }
 0x431   :  { %v635_v37 = vadd.f32 0.5, %v633_v35 }
 0x432   :  { %v534_v28 = vadd.f32 0.5, %v532_v49 }
 0x49e   :  { %v651_v46 = vpop.permute.xlu0 %650 }
 0x49f   :  { %v653_v50 = vmul.f32 %v651_v46, %v635_v37  ;;  %v4529_v46 = vld [vmem:[#allocation39_spill] sm:$0xff] }
 0x4a0   :  { %v550_v32 = vpop.permute.xlu1 %549 }
 0x4a1   :  { %v552_v25 = vmul.f32 %v550_v32, %v534_v28  ;;  %2990 = vmatmul.mubr.msk.f32.vlgmr.msra.gmra.mxu1 %vm232_vm1, %v653_v50  ;;  %v4530_v28 = vld [vmem:[#allocation21_spill] sm:$0xff]  ;;  %v4531_v32 = vld [vmem:[#allocation35_spill] sm:$0xff] }
 0x4a2   :  { %951 = vmatpush1.msra.mxu1 %v3607_v55  ;;  %998 = vmatprep.mubr.f32.mxu1 %v4514_v29 }
 0x4a3   :  { %2989 = vmatmul.mubr.msk.f32.vlgmr.msra.gmra.mxu0 %vm232_vm1, %v552_v25  ;;  %952 = vmatprep.subr.mxu1 %v3609_v56  ;;  %v164_v25 = vadd.f32 %v4531_v32, %v4530_v28 }
 0x4a4   :  { %849 = vmatpush1.msra.mxu0 %v3496_v5  ;;  %896 = vmatprep.mubr.f32.mxu0 %v4514_v29 }
 0x4a5   :  { %850 = vmatprep.subr.mxu0 %v3498_v6  ;;  %953 = vmatpush1.msra.mxu1 %v3612_v57 }
 0x4a6   :  { %851 = vmatpush1.msra.mxu0 %v3502_v7  ;;  %954 = vmatprep.subr.mxu1 %v3615_v58 }
 0x4a7   :  { %852 = vmatprep.subr.mxu0 %v3509_v9  ;;  %955 = vmatpush1.msra.mxu1 %v3618_v59 }
 0x4a8   :  { %853 = vmatpush1.msra.mxu0 %v3512_v10  ;;  %956 = vmatprep.subr.mxu1 %v3621_v60 }
 0x4a9   :  { %854 = vmatprep.subr.mxu0 %v3515_v11  ;;  %957 = vmatpush1.msra.mxu1 %v3624_v61 }
 0x4aa   :  { %855 = vmatpush1.msra.mxu0 %v3522_v13  ;;  %958 = vmatprep.subr.mxu1 %v3631_v1 }
 0x4ab   :  { %856 = vmatprep.subr.mxu0 %v3529_v15  ;;  %959 = vmatpush1.msra.mxu1 %v3640_v8 }
 0x4ac   :  { %857 = vmatpush1.msra.mxu0 %v3532_v16  ;;  %960 = vmatprep.subr.mxu1 %v3646_v14 }
 0x4ad   :  { %858 = vmatprep.subr.mxu0 %v3536_v17  ;;  %961 = vmatpush1.msra.mxu1 %v3652_v24 }
 0x4ae   :  { %859 = vmatpush1.msra.mxu0 %v3541_v18  ;;  %962 = vmatprep.subr.mxu1 %v3658_v34 }
 0x4af   :  { %860 = vmatprep.subr.mxu0 %v3548_v20  ;;  %963 = vmatpush1.msra.mxu1 %v3662_v38 }
 0x4b0   :  { %861 = vmatpush1.msra.mxu0 %v3551_v21  ;;  %964 = vmatprep.subr.mxu1 %v3668_v42 }
 0x4b1   :  { %862 = vmatprep.subr.mxu0 %v3554_v22  ;;  %965 = vmatpush1.msra.mxu1 %v3675_v44  ;;  %v4533_v44 = vld [vmem:[#allocation36_spill] sm:$0xff] }
 0x4b2   :  { %863 = vmatpush1.msra.mxu0 %v3558_v23  ;;  %1125 = vmatprep.subr.mxu1 %v3494_v4  ;;  %v4532_v4 = vld [vmem:[#allocation24_spill] sm:$0xff] }
 0x4b3   :  { %2991 = vmatmul.mubr.msk.f32.vlgmr.msra.gmra.mxu0 %vm232_vm1, %v653_v50  ;;  %1024 = vmatprep.subr.mxu0 %v3626_v62 }
 0x4b4   :  { %1025 = vmatpush1.msra.mxu0 %v3628_v63  ;;  %1072 = vmatprep.mubr.f32.mxu0 %v4514_v29 }
 0x4b5   :  { %1026 = vmatprep.subr.mxu0 %v3634_v2 }
 0x4b6   :  { %1027 = vmatpush1.msra.mxu0 %v3643_v12 }
 0x4b7   :  { %1028 = vmatprep.subr.mxu0 %v3649_v19 }
 0x4b8   :  { %1029 = vmatpush1.msra.mxu0 %v3655_v31 }
 0x4b9   :  { %1030 = vmatprep.subr.mxu0 %v3665_v40 }
 0x4ba   :  { %1031 = vmatpush1.msra.mxu0 %v3678_v45 }
 0x4bb   :  { %1032 = vmatprep.subr.mxu0 %v3684_v47 }
 0x4bc   :  { %1033 = vmatpush1.msra.mxu0 %v4521_v48 }
 0x4bd   :  { %1034 = vmatprep.subr.mxu0 %v4522_v43 }
 0x4be   :  { %1035 = vmatpush1.msra.mxu0 %v4523_v39 }
 0x4bf   :  { %1036 = vmatprep.subr.mxu0 %v4524_v51 }
 0x4c0   :  { %1037 = vmatpush1.msra.mxu0 %v4525_v33 }
 0x4c1   :  { %1038 = vmatprep.subr.mxu0 %v4526_v41  ;;  %v166_v41 = vadd.f32 %v4533_v44, %v4532_v4 }
 0x4c2   :  { %1039 = vmatpush1.msra.mxu0 %v4527_v52 }
 0x4c3   :  { %1227 = vmatprep.subr.mxu0 %v4528_v27 }
 0x561   :  { %v797_v53 = vpop.f32.mrf.mxu1 }
 0x563   :  { %v723_v36 = vpop.f32.mrf.mxu0  ;;  %v799_v35 = vpop.f32.mrf.mxu1 }
 0x564   :  { %v798_v3 = vadd.f32 %v797_v53, %v723_v36 }
 0x565   :  { %v725_v49 = vpop.f32.mrf.mxu0 }
 0x566   :  { %v800_v37 = vadd.f32 %v799_v35, %v725_v49  ;;  %v802_v36 = vadd.f32 %v798_v3, %v3796_v0 }
 0x568   :  { %v803_v50 = vadd.f32 %v800_v37, %v4529_v46  ;;  %v804_v35 = vmul.f32 0.5, %v802_v36 }
 0x56a   :  { %3261 = vtanh.f32 %v803_v50 }
 0x573   :  { %v898_v30 = vpop.f32.mrf.mxu0 }
 0x574   :  { %v903_v33 = vadd.f32 %v898_v30, %v164_v25 }
 0x575   :  { %v900_v52 = vpop.f32.mrf.mxu0 }
 0x576   :  { %v904_v42 = vadd.f32 %v900_v52, %v166_v41  ;;  %v905_v49 = vmul.f32 0.5, %v903_v33 }
 0x577   :  { %v3262_v27 = vpop.eup %3261 }
 0x578   :  { %3263 = vtanh.f32 %v904_v42  ;;  %815 = vrot.lane.b32.xlu1 %v3262_v27, %s3462_s28 }
 0x579   :  { %3265 = vtanh.f32 %v804_v35 }
 0x57a   :  { %3267 = vtanh.f32 %v905_v49 }
 0x585   :  { %v3264_v53 = vpop.eup %3263 }
 0x586   :  { %916 = vrot.lane.b32.xlu0 %v3264_v53, %s3462_s28  ;;  %v3266_v37 = vpop.eup %3265 }
 0x587   :  { %v808_v32 = vmul.f32 0.5, %v3266_v37  ;;  %v3268_v41 = vpop.eup %3267 }
 0x588   :  { %v909_v52 = vmul.f32 0.5, %v3268_v41 }
 0x589   :  { %v810_v46 = vadd.f32 0.5, %v808_v32 }
 0x58a   :  { %v911_v25 = vadd.f32 0.5, %v909_v52 }
 0x58b   :  { %v813_v3 = vmul.f32 %v810_v46, %v3805_v26  ;;  %v906_v26 = vmul.f32 0.5, %v904_v42 }
 0x58c   :  { %v914_v33 = vmul.f32 %v911_v25, %v3802_v54 }
 0x5ea   :  { %v816_v44 = vpop.permute.xlu1 %815 }
 0x5eb   :  { %v818_v30 = vmul.f32 %v816_v44, %v810_v46 }
 0x5ed   :  { %820 = vrot.lane.b32.xlu1 %v818_v30, %s3462_s28 }
 0x5f8   :  { %v917_v27 = vpop.permute.xlu0 %916 }
 0x5f9   :  { %v919_v4 = vmul.f32 %v917_v27, %v911_v25 }
 0x5fb   :  { %921 = vrot.lane.b32.xlu0 %v919_v4, %s3462_s28  ;;  %v805_v4 = vmul.f32 0.5, %v803_v50 }
 0x65f   :  { %v821_v53 = vpop.permute.xlu1 %820 }
 0x660   :  { %v3875_v36 = vadd.f32 %v821_v53, %v813_v3 }
 0x662   :  { %3269 = vtanh.f32 %v3875_v36 }
 0x66d   :  { %v922_v35 = vpop.permute.xlu0 %921 }
 0x66e   :  { %v3879_v49 = vadd.f32 %v922_v35, %v914_v33  ;;  %v4542_v33 = vld [vmem:[#allocation39_spill] sm:$0xff] }
 0x66f   :  { %v3270_v37 = vpop.eup %3269 }
 0x670   :  { %3271 = vtanh.f32 %v3879_v49  ;;  %826 = vrot.lane.b32.xlu1 %v3270_v37, %s3462_s28 }
 0x671   :  { %3273 = vtanh.f32 %v805_v4  ;;  %v4544_v4 = vld [vmem:[#allocation38_spill] sm:$0xff] }
 0x672   :  { %3275 = vtanh.f32 %v906_v26 }
 0x67d   :  { %v3272_v32 = vpop.eup %3271 }
 0x67e   :  { %927 = vrot.lane.b32.xlu0 %v3272_v32, %s3462_s28  ;;  %v3274_v46 = vpop.eup %3273  ;;  %v4543_v32 = vld [vmem:[#allocation24_spill] sm:$0xff] }
 0x67f   :  { %v809_v44 = vmul.f32 0.5, %v3274_v46  ;;  %v3276_v52 = vpop.eup %3275  ;;  %v172_v26 = vadd.f32 %v4544_v4, %v4543_v32 }
 0x680   :  { %v910_v42 = vmul.f32 0.5, %v3276_v52 }
 0x681   :  { %v811_v30 = vadd.f32 0.5, %v809_v44 }
 0x6e2   :  { %v827_v41 = vpop.permute.xlu1 %826 }
 0x6e3   :  { %v829_v54 = vmul.f32 %v827_v41, %v811_v30 }
 0x6e5   :  { %2992 = vmatmul.mubr.msk.f32.vlgmr.msra.gmra.mxu1 %vm232_vm1, %v829_v54 }
 0x6e6   :  { %1126 = vmatpush1.msra.mxu1 %v3496_v5  ;;  %1173 = vmatprep.mubr.f32.mxu1 %v4514_v29  ;;  %v912_v5 = vadd.f32 0.5, %v910_v42 }
 0x6e7   :  { %1127 = vmatprep.subr.mxu1 %v3498_v6 }
 0x6e8   :  { %1128 = vmatpush1.msra.mxu1 %v3502_v7 }
 0x6e9   :  { %1129 = vmatprep.subr.mxu1 %v3509_v9  ;;  %v4534_v9 = vld [vmem:[#allocation26_spill] sm:$0xff] }
 0x6ea   :  { %1130 = vmatpush1.msra.mxu1 %v3512_v10  ;;  %v4535_v10 = vld [vmem:[#allocation32_spill] sm:$0xff] }
 0x6eb   :  { %1131 = vmatprep.subr.mxu1 %v3515_v11  ;;  %v4536_v11 = vld [vmem:[#allocation27_spill] sm:$0xff] }
 0x6ec   :  { %1132 = vmatpush1.msra.mxu1 %v3522_v13  ;;  %v4537_v13 = vld [vmem:[#allocation33_spill] sm:$0xff] }
 0x6ed   :  { %1133 = vmatprep.subr.mxu1 %v3529_v15  ;;  %v4538_v15 = vld [vmem:[#allocation34_spill] sm:$0xff] }
 0x6ee   :  { %1134 = vmatpush1.msra.mxu1 %v3532_v16  ;;  %v4539_v16 = vld [vmem:[#allocation13_spill] sm:$0xff] }
 0x6ef   :  { %1135 = vmatprep.subr.mxu1 %v3536_v17  ;;  %v4540_v17 = vld [vmem:[#allocation25_spill] sm:$0xff] }
 0x6f0   :  { %v928_v6 = vpop.permute.xlu0 %927  ;;  %1136 = vmatpush1.msra.mxu1 %v3541_v18 }
 0x6f1   :  { %v930_v7 = vmul.f32 %v928_v6, %v912_v5  ;;  %1137 = vmatprep.subr.mxu1 %v3548_v20 }
 0x6f2   :  { %1138 = vmatpush1.msra.mxu1 %v3551_v21 }
 0x6f3   :  { %2993 = vmatmul.mubr.msk.f32.vlgmr.msra.gmra.mxu0 %vm232_vm1, %v930_v7  ;;  %1139 = vmatprep.subr.mxu1 %v3554_v22  ;;  %v4541_v22 = vld [vmem:[#allocation37_spill] sm:$0xff] }
 0x6f4   :  { %1140 = vmatpush1.msra.mxu1 %v3558_v23  ;;  %1228 = vmatpush1.msra.mxu0 %v3607_v55  ;;  %v170_v23 = vadd.f32 %v4541_v22, %v4530_v28 }
 0x6f5   :  { %2994 = vmatmul.mubr.msk.f32.vlgmr.msra.gmra.mxu1 %vm232_vm1, %v930_v7  ;;  %1301 = vmatprep.subr.mxu1 %v3626_v62 }
 0x6f6   :  { %1229 = vmatprep.subr.mxu0 %v3609_v56  ;;  %1302 = vmatpush1.msra.mxu1 %v3628_v63 }
 0x6f7   :  { %1230 = vmatpush1.msra.mxu0 %v3612_v57  ;;  %1303 = vmatprep.subr.mxu1 %v3634_v2 }
 0x6f8   :  { %1231 = vmatprep.subr.mxu0 %v3615_v58  ;;  %1304 = vmatpush1.msra.mxu1 %v3643_v12 }
 0x6f9   :  { %1232 = vmatpush1.msra.mxu0 %v3618_v59  ;;  %1305 = vmatprep.subr.mxu1 %v3649_v19 }
 0x6fa   :  { %1233 = vmatprep.subr.mxu0 %v3621_v60  ;;  %1306 = vmatpush1.msra.mxu1 %v3655_v31 }
 0x6fb   :  { %1234 = vmatpush1.msra.mxu0 %v3624_v61  ;;  %1307 = vmatprep.subr.mxu1 %v3665_v40 }
 0x6fc   :  { %1235 = vmatprep.subr.mxu0 %v3631_v1  ;;  %1308 = vmatpush1.msra.mxu1 %v3678_v45 }
 0x6fd   :  { %1236 = vmatpush1.msra.mxu0 %v3640_v8  ;;  %1309 = vmatprep.subr.mxu1 %v3684_v47 }
 0x6fe   :  { %1237 = vmatprep.subr.mxu0 %v3646_v14  ;;  %1310 = vmatpush1.msra.mxu1 %v4521_v48 }
 0x6ff   :  { %1238 = vmatpush1.msra.mxu0 %v3652_v24  ;;  %1311 = vmatprep.subr.mxu1 %v4522_v43 }
 0x700   :  { %1239 = vmatprep.subr.mxu0 %v3658_v34  ;;  %1312 = vmatpush1.msra.mxu1 %v4523_v39 }
 0x701   :  { %1240 = vmatpush1.msra.mxu0 %v3662_v38  ;;  %1313 = vmatprep.subr.mxu1 %v4524_v51 }
 0x702   :  { %1241 = vmatprep.subr.mxu0 %v4534_v9  ;;  %1314 = vmatpush1.msra.mxu1 %v4535_v10 }
 0x703   :  { %1242 = vmatpush1.msra.mxu0 %v4536_v11  ;;  %1315 = vmatprep.subr.mxu1 %v4537_v13 }
 0x704   :  { %1275 = vmatprep.mubr.f32.mxu0 %v4514_v29  ;;  %1316 = vmatpush1.msra.mxu1 %v4538_v15 }
 0x705   :  { %1349 = vmatprep.mubr.f32.mxu1 %v4514_v29  ;;  %1402 = vmatprep.subr.mxu0 %v4539_v16 }
 0x706   :  { %1504 = vmatprep.subr.mxu1 %v4540_v17 }
 0x7a5   :  { %v1000_v18 = vpop.f32.mrf.mxu1 }
 0x7a7   :  { %v1002_v20 = vpop.f32.mrf.mxu1 }
 0x7b3   :  { %v1074_v21 = vpop.f32.mrf.mxu0 }
 0x7b4   :  { %v1075_v50 = vadd.f32 %v1074_v21, %v1000_v18 }
 0x7b5   :  { %v1076_v25 = vpop.f32.mrf.mxu0  ;;  %v1175_v27 = vpop.f32.mrf.mxu1 }
 0x7b6   :  { %v1077_v3 = vadd.f32 %v1076_v25, %v1002_v20  ;;  %v1180_v53 = vadd.f32 %v1175_v27, %v170_v23  ;;  %v1079_v41 = vadd.f32 %v1075_v50, %v3796_v0 }
 0x7b7   :  { %v1177_v37 = vpop.f32.mrf.mxu1 }
 0x7b8   :  { %v1080_v35 = vadd.f32 %v1077_v3, %v4542_v33  ;;  %v1181_v46 = vadd.f32 %v1177_v37, %v172_v26  ;;  %v1081_v54 = vmul.f32 0.5, %v1079_v41  ;;  %v1182_v52 = vmul.f32 0.5, %v1180_v53 }
 0x7ba   :  { %3277 = vtanh.f32 %v1080_v35 }
 0x7bb   :  { %3279 = vtanh.f32 %v1181_v46 }
 0x7bc   :  { %3281 = vtanh.f32 %v1081_v54 }
 0x7bd   :  { %3283 = vtanh.f32 %v1182_v52 }
 0x7c7   :  { %v3278_v44 = vpop.eup %3277 }
 0x7c8   :  { %1092 = vrot.lane.b32.xlu1 %v3278_v44, %s3462_s28  ;;  %v3280_v30 = vpop.eup %3279  ;;  %v1082_v44 = vmul.f32 0.5, %v1080_v35 }
 0x7c9   :  { %1193 = vrot.lane.b32.xlu0 %v3280_v30, %s3462_s28  ;;  %v3282_v42 = vpop.eup %3281 }
 0x7ca   :  { %v1085_v5 = vmul.f32 0.5, %v3282_v42  ;;  %v3284_v6 = vpop.eup %3283 }
 0x7cb   :  { %v1186_v7 = vmul.f32 0.5, %v3284_v6 }
 0x7cc   :  { %v1087_v16 = vadd.f32 0.5, %v1085_v5 }
 0x7cd   :  { %v1188_v21 = vadd.f32 0.5, %v1186_v7 }
 0x7ce   :  { %v1090_v50 = vmul.f32 %v1087_v16, %v3875_v36  ;;  %v1183_v36 = vmul.f32 0.5, %v1181_v46  ;;  %v3963_v46 = vld [vmem:[#allocation5 + $0x78] sm:$0xff] }
 0x7cf   :  { %v1191_v3 = vmul.f32 %v1188_v21, %v3879_v49 }
 0x83a   :  { %v1093_v18 = vpop.permute.xlu1 %1092 }
 0x83b   :  { %v1095_v20 = vmul.f32 %v1093_v18, %v1087_v16  ;;  %v1194_v22 = vpop.permute.xlu0 %1193  ;;  %v3959_v16 = vld [vmem:[#allocation5 + $0x80] sm:$0xff]  ;;  %v3966_v18 = vld [vmem:[#allocation5 + $0x70] sm:$0xff] }
 0x83c   :  { %v1196_v23 = vmul.f32 %v1194_v22, %v1188_v21  ;;  %v3973_v21 = vld [vmem:[#allocation5 + $0x60] sm:$0xff]  ;;  %v3977_v22 = vld [vmem:[#allocation5 + $0x58] sm:$0xff] }
 0x83d   :  { %1097 = vrot.lane.b32.xlu1 %v1095_v20, %s3462_s28  ;;  %v3970_v20 = vld [vmem:[#allocation5 + $0x68] sm:$0xff] }
 0x83e   :  { %1198 = vrot.lane.b32.xlu0 %v1196_v23, %s3462_s28  ;;  %v3981_v23 = vld [vmem:[#allocation5 + $0x50] sm:$0xff] }
 0x8af   :  { %v1098_v25 = vpop.permute.xlu1 %1097 }
 0x8b0   :  { %v3949_v27 = vadd.f32 %v1098_v25, %v1090_v50  ;;  %v1199_v53 = vpop.permute.xlu0 %1198  ;;  %v3985_v50 = vld [vmem:[#allocation5 + $0x48] sm:$0xff]  ;;  %v3989_v25 = vld [vmem:[#allocation5 + $0x40] sm:$0xff] }
 0x8b1   :  { %v3953_v37 = vadd.f32 %v1199_v53, %v1191_v3 }
 0x8b2   :  { %3285 = vtanh.f32 %v3949_v27 }
 0x8b3   :  { %3287 = vtanh.f32 %v3953_v37 }
 0x8b4   :  { %3289 = vtanh.f32 %v1082_v44 }
 0x8b5   :  { %3291 = vtanh.f32 %v1183_v36 }
 0x8bf   :  { %v3286_v4 = vpop.eup %3285 }
 0x8c0   :  { %1103 = vrot.lane.b32.xlu1 %v3286_v4, %s3462_s28  ;;  %v3288_v26 = vpop.eup %3287 }
 0x8c1   :  { %1204 = vrot.lane.b32.xlu0 %v3288_v26, %s3462_s28  ;;  %v3290_v30 = vpop.eup %3289 }
 0x8c2   :  { %v1086_v41 = vmul.f32 0.5, %v3290_v30  ;;  %v3292_v49 = vpop.eup %3291 }
 0x8c3   :  { %v1187_v54 = vmul.f32 0.5, %v3292_v49 }
 0x8c4   :  { %v1088_v52 = vadd.f32 0.5, %v1086_v41 }
 0x8c5   :  { %v1189_v6 = vadd.f32 0.5, %v1187_v54 }
 0x932   :  { %v1104_v42 = vpop.permute.xlu1 %1103 }
 0x933   :  { %v1106_v5 = vmul.f32 %v1104_v42, %v1088_v52  ;;  %v1205_v7 = vpop.permute.xlu0 %1204 }
 0x934   :  { %v1207_v35 = vmul.f32 %v1205_v7, %v1189_v6 }
 0x935   :  { %2995 = vmatmul.mubr.msk.f32.vlgmr.msra.gmra.mxu0 %vm232_vm1, %v1106_v5 }
 0x936   :  { %1403 = vmatpush1.msra.mxu0 %v3959_v16  ;;  %1450 = vmatprep.mubr.f32.mxu0 %v4514_v29 }
 0x937   :  { %1404 = vmatprep.subr.mxu0 %v3963_v46  ;;  %2996 = vmatmul.mubr.msk.f32.vlgmr.msra.gmra.mxu1 %vm232_vm1, %v1207_v35 }
 0x938   :  { %1405 = vmatpush1.msra.mxu0 %v3966_v18  ;;  %1505 = vmatpush1.msra.mxu1 %v3607_v55  ;;  %v3993_v55 = vld [vmem:[#allocation5 + $0x38] sm:$0xff] }
 0x939   :  { %1406 = vmatprep.subr.mxu0 %v3970_v20  ;;  %1506 = vmatprep.subr.mxu1 %v3609_v56  ;;  %v3997_v56 = vld [vmem:[#allocation5 + $0x30] sm:$0xff] }
 0x93a   :  { %1407 = vmatpush1.msra.mxu0 %v3973_v21  ;;  %1507 = vmatpush1.msra.mxu1 %v3612_v57  ;;  %v4001_v57 = vld [vmem:[#allocation5 + $0x28] sm:$0xff] }
 0x93b   :  { %1408 = vmatprep.subr.mxu0 %v3977_v22  ;;  %1508 = vmatprep.subr.mxu1 %v3615_v58  ;;  %v4005_v58 = vld [vmem:[#allocation5 + $0x20] sm:$0xff] }
 0x93c   :  { %1409 = vmatpush1.msra.mxu0 %v3981_v23  ;;  %1509 = vmatpush1.msra.mxu1 %v3618_v59  ;;  %v4009_v59 = vld [vmem:[#allocation5 + $0x18] sm:$0xff] }
 0x93d   :  { %1410 = vmatprep.subr.mxu0 %v3985_v50  ;;  %1510 = vmatprep.subr.mxu1 %v3621_v60  ;;  %v4013_v60 = vld [vmem:[#allocation5 + $0x10] sm:$0xff] }
 0x93e   :  { %1411 = vmatpush1.msra.mxu0 %v3989_v25  ;;  %1511 = vmatpush1.msra.mxu1 %v3624_v61  ;;  %v4026_v61 = vld [vmem:[#allocation5 + $0x88] sm:$0xff] }
 0x93f   :  { %1412 = vmatprep.subr.mxu0 %v3993_v55  ;;  %1512 = vmatprep.subr.mxu1 %v3631_v1 }
 0x940   :  { %1413 = vmatpush1.msra.mxu0 %v3997_v56  ;;  %1513 = vmatpush1.msra.mxu1 %v3640_v8 }
 0x941   :  { %1414 = vmatprep.subr.mxu0 %v4001_v57  ;;  %1514 = vmatprep.subr.mxu1 %v3646_v14 }
 0x942   :  { %1415 = vmatpush1.msra.mxu0 %v4005_v58  ;;  %1515 = vmatpush1.msra.mxu1 %v3652_v24 }
 0x943   :  { %1416 = vmatprep.subr.mxu0 %v4009_v59  ;;  %1516 = vmatprep.subr.mxu1 %v3658_v34  ;;  %v4546_v34 = vld [vmem:[#allocation15_spill] sm:$0xff] }
 0x944   :  { %1417 = vmatpush1.msra.mxu0 %v4013_v60  ;;  %1517 = vmatpush1.msra.mxu1 %v3662_v38  ;;  %v178_v38 = vadd.f32 %v4546_v34, %v4543_v32  ;;  %v4090_v34 = vld [vmem:[#allocation5 + $0x178] sm:$0xff] }
 0x945   :  { %2997 = vmatmul.mubr.msk.f32.vlgmr.msra.gmra.mxu0 %vm232_vm1, %v1207_v35  ;;  %1578 = vmatprep.subr.mxu0 %v3626_v62 }
 0x946   :  { %1518 = vmatprep.subr.mxu1 %v4534_v9  ;;  %1579 = vmatpush1.msra.mxu0 %v3628_v63 }
 0x947   :  { %1519 = vmatpush1.msra.mxu1 %v4536_v11  ;;  %1552 = vmatprep.mubr.f32.mxu1 %v4514_v29 }
 0x948   :  { %1580 = vmatprep.subr.mxu0 %v3634_v2  ;;  %1679 = vmatprep.subr.mxu1 %v4026_v61 }
 0x949   :  { %1581 = vmatpush1.msra.mxu0 %v3643_v12  ;;  %1626 = vmatprep.mubr.f32.mxu0 %v4514_v29 }
 0x94a   :  { %1582 = vmatprep.subr.mxu0 %v3649_v19  ;;  %v4545_v19 = vld [vmem:[#allocation14_spill] sm:$0xff] }
 0x94b   :  { %1583 = vmatpush1.msra.mxu0 %v3655_v31  ;;  %v176_v24 = vadd.f32 %v4545_v19, %v4530_v28  ;;  %v4078_v19 = vld [vmem:[#allocation5 + $0x190] sm:$0xff] }
 0x94c   :  { %1584 = vmatprep.subr.mxu0 %v3665_v40 }
 0x94d   :  { %1585 = vmatpush1.msra.mxu0 %v3678_v45 }
 0x94e   :  { %1586 = vmatprep.subr.mxu0 %v3684_v47 }
 0x94f   :  { %1587 = vmatpush1.msra.mxu0 %v4521_v48 }
 0x950   :  { %1588 = vmatprep.subr.mxu0 %v4522_v43 }
 0x951   :  { %1589 = vmatpush1.msra.mxu0 %v4523_v39 }
 0x952   :  { %1590 = vmatprep.subr.mxu0 %v4524_v51 }
 0x953   :  { %1591 = vmatpush1.msra.mxu0 %v4535_v10 }
 0x954   :  { %1592 = vmatprep.subr.mxu0 %v4537_v13 }
 0x955   :  { %1593 = vmatpush1.msra.mxu0 %v4538_v15 }
 0x956   :  { %1781 = vmatprep.subr.mxu0 %v4540_v17 }
 0x9f5   :  { %v1277_v62 = vpop.f32.mrf.mxu0 }
 0x9f7   :  { %v1351_v63 = vpop.f32.mrf.mxu1  ;;  %v1279_v1 = vpop.f32.mrf.mxu0 }
 0x9f8   :  { %v1352_v2 = vadd.f32 %v1351_v63, %v1277_v62 }
 0x9f9   :  { %v1353_v8 = vpop.f32.mrf.mxu1 }
 0x9fa   :  { %v1354_v12 = vadd.f32 %v1353_v8, %v1279_v1  ;;  %v1356_v39 = vadd.f32 %v1352_v2, %v3796_v0 }
 0x9fc   :  { %v1357_v14 = vadd.f32 %v1354_v12, %v4542_v33  ;;  %v1358_v51 = vmul.f32 0.5, %v1356_v39  ;;  %v4113_v39 = vld [vmem:[#allocation5 + $0x100] sm:$0xff] }
 0x9fe   :  { %3293 = vtanh.f32 %v1357_v14  ;;  %v1359_v6 = vmul.f32 0.5, %v1357_v14 }
 0xa05   :  { %v1452_v31 = vpop.f32.mrf.mxu0 }
 0xa06   :  { %v1457_v40 = vadd.f32 %v1452_v31, %v176_v24  ;;  %v4082_v24 = vld [vmem:[#allocation5 + $0x188] sm:$0xff]  ;;  %v4086_v31 = vld [vmem:[#allocation5 + $0x180] sm:$0xff] }
 0xa07   :  { %v1454_v45 = vpop.f32.mrf.mxu0 }
 0xa08   :  { %v1458_v47 = vadd.f32 %v1454_v45, %v178_v38  ;;  %v1459_v9 = vmul.f32 0.5, %v1457_v40  ;;  %v4094_v38 = vld [vmem:[#allocation5 + $0x170] sm:$0xff]  ;;  %v4098_v40 = vld [vmem:[#allocation5 + $0x118] sm:$0xff] }
 0xa09   :  { %v4101_v45 = vld [vmem:[#allocation5 + $0x110] sm:$0xff] }
 0xa0a   :  { %3295 = vtanh.f32 %v1458_v47 }
 0xa0b   :  { %v3294_v48 = vpop.eup %3293  ;;  %3297 = vtanh.f32 %v1358_v51  ;;  %v4116_v51 = vld [vmem:[#allocation5 + $0x158] sm:$0xff] }
 0xa0c   :  { %1369 = vrot.lane.b32.xlu1 %v3294_v48, %s3462_s28  ;;  %3299 = vtanh.f32 %v1459_v9  ;;  %v4107_v48 = vld [vmem:[#allocation5 + $0x108] sm:$0xff]  ;;  %v4119_v9 = vld [vmem:[#allocation5 + $0xf8] sm:$0xff] }
 0xa17   :  { %v3296_v43 = vpop.eup %3295 }
 0xa18   :  { %1470 = vrot.lane.b32.xlu0 %v3296_v43, %s3462_s28  ;;  %v3298_v10 = vpop.eup %3297  ;;  %v4110_v43 = vld [vmem:[#allocation5 + $0x160] sm:$0xff] }
 0xa19   :  { %v1362_v11 = vmul.f32 0.5, %v3298_v10  ;;  %v3300_v3 = vpop.eup %3299  ;;  %v4122_v10 = vld [vmem:[#allocation5 + $0x150] sm:$0xff] }
 0xa1a   :  { %v1463_v53 = vmul.f32 0.5, %v3300_v3  ;;  %v4137_v3 = vld [vmem:[#allocation5 + $0xe0] sm:$0xff] }
 0xa1b   :  { %v1364_v13 = vadd.f32 0.5, %v1362_v11  ;;  %v4125_v11 = vld [vmem:[#allocation5 + $0xf0] sm:$0xff] }
 0xa1c   :  { %v1465_v4 = vadd.f32 0.5, %v1463_v53  ;;  %v4140_v53 = vld [vmem:[#allocation5 + $0x138] sm:$0xff] }
 0xa1d   :  { %v1367_v36 = vmul.f32 %v1364_v13, %v3949_v27  ;;  %v1460_v27 = vmul.f32 0.5, %v1458_v47  ;;  %v4104_v47 = vld [vmem:[#allocation5 + $0x168] sm:$0xff] }
 0xa1e   :  { %v1468_v49 = vmul.f32 %v1465_v4, %v3953_v37 }
 0xa7e   :  { %v1370_v15 = vpop.permute.xlu1 %1369 }
 0xa7f   :  { %v1372_v17 = vmul.f32 %v1370_v15, %v1364_v13  ;;  %v4128_v13 = vld [vmem:[#allocation5 + $0x148] sm:$0xff] }
 0xa80   :  { %v4131_v15 = vld [vmem:[#allocation5 + $0xe8] sm:$0xff] }
 0xa81   :  { %1374 = vrot.lane.b32.xlu1 %v1372_v17, %s3462_s28  ;;  %v4134_v17 = vld [vmem:[#allocation5 + $0x140] sm:$0xff] }
 0xa8a   :  { %v1471_v26 = vpop.permute.xlu0 %1470 }
 0xa8b   :  { %v1473_v44 = vmul.f32 %v1471_v26, %v1465_v4  ;;  %v4143_v4 = vld [vmem:[#allocation5 + $0xd8] sm:$0xff]  ;;  %v4146_v26 = vld [vmem:[#allocation5 + $0x130] sm:$0xff] }
 0xa8d   :  { %1475 = vrot.lane.b32.xlu0 %v1473_v44, %s3462_s28  ;;  %v4149_v44 = vld [vmem:[#allocation5 + $0xd0] sm:$0xff] }
 0xaf3   :  { %v1375_v30 = vpop.permute.xlu1 %1374 }
 0xaf4   :  { %v4055_v41 = vadd.f32 %v1375_v30, %v1367_v36  ;;  %v4152_v36 = vld [vmem:[#allocation5 + $0x128] sm:$0xff] }
 0xaf5   :  { %v4155_v30 = vld [vmem:[#allocation5 + $0xc8] sm:$0xff] }
 0xaf6   :  { %3301 = vtanh.f32 %v4055_v41  ;;  %4547 = vst [vmem:[#allocation28_spill] sm:$0xff] %v4155_v30 }
 0xaff   :  { %v1476_v54 = vpop.permute.xlu0 %1475 }
 0xb00   :  { %v4059_v52 = vadd.f32 %v1476_v54, %v1468_v49  ;;  %v4158_v49 = vld [vmem:[#allocation5 + $0x120] sm:$0xff] }
 0xb01   :  { %v4161_v54 = vld [vmem:[#allocation5 + $0xc0] sm:$0xff] }
 0xb02   :  { %3303 = vtanh.f32 %v4059_v52  ;;  %4548 = vst [vmem:[#allocation29_spill] sm:$0xff] %v4161_v54 }
 0xb03   :  { %v3302_v42 = vpop.eup %3301  ;;  %3305 = vtanh.f32 %v1359_v6  ;;  %v4173_v6 = vld [vmem:[#allocation5 + $0xa8] sm:$0xff] }
 0xb04   :  { %1380 = vrot.lane.b32.xlu1 %v3302_v42, %s3462_s28  ;;  %3307 = vtanh.f32 %v1460_v27  ;;  %v4165_v42 = vld [vmem:[#allocation5 + $0xb8] sm:$0xff]  ;;  %4551 = vst [vmem:[#allocation35_spill] sm:$0xff] %v4173_v6  ;;  %v4176_v27 = vld [vmem:[#allocation5 + $0xa0] sm:$0xff] }
 0xb05   :  { %4549 = vst [vmem:[#allocation30_spill] sm:$0xff] %v4165_v42  ;;  %4552 = vst [vmem:[#allocation36_spill] sm:$0xff] %v4176_v27 }
 0xb0f   :  { %v3304_v5 = vpop.eup %3303 }
 0xb10   :  { %1481 = vrot.lane.b32.xlu0 %v3304_v5, %s3462_s28  ;;  %v3306_v7 = vpop.eup %3305  ;;  %v4169_v5 = vld [vmem:[#allocation5 + $0xb0] sm:$0xff] }
 0xb11   :  { %v1363_v35 = vmul.f32 0.5, %v3306_v7  ;;  %v3308_v1 = vpop.eup %3307  ;;  %4550 = vst [vmem:[#allocation31_spill] sm:$0xff] %v4169_v5  ;;  %v4179_v7 = vld [vmem:[#allocation5 + $0x198] sm:$0xff] }
 0xb12   :  { %v1464_v2 = vmul.f32 0.5, %v3308_v1  ;;  %4553 = vst [vmem:[#allocation26_spill] sm:$0xff] %v4179_v7 }
 0xb13   :  { %v1365_v62 = vadd.f32 0.5, %v1363_v35 }
 0xb14   :  { %v1466_v8 = vadd.f32 0.5, %v1464_v2 }
 0xb76   :  { %v1381_v63 = vpop.permute.xlu1 %1380 }
 0xb77   :  { %v1383_v37 = vmul.f32 %v1381_v63, %v1365_v62 }
 0xb79   :  { %2998 = vmatmul.mubr.msk.f32.vlgmr.msra.gmra.mxu1 %vm232_vm1, %v1383_v37 }
 0xb7a   :  { %1680 = vmatpush1.msra.mxu1 %v3959_v16  ;;  %1727 = vmatprep.mubr.f32.mxu1 %v4514_v29 }
 0xb7b   :  { %1681 = vmatprep.subr.mxu1 %v3963_v46 }
 0xb7c   :  { %1682 = vmatpush1.msra.mxu1 %v3966_v18 }
 0xb7d   :  { %1683 = vmatprep.subr.mxu1 %v3970_v20 }
 0xb7e   :  { %1684 = vmatpush1.msra.mxu1 %v3973_v21 }
 0xb7f   :  { %1685 = vmatprep.subr.mxu1 %v3977_v22 }
 0xb80   :  { %1686 = vmatpush1.msra.mxu1 %v3981_v23 }
 0xb81   :  { %1687 = vmatprep.subr.mxu1 %v3985_v50 }
 0xb82   :  { %v1482_v12 = vpop.permute.xlu0 %1481  ;;  %1688 = vmatpush1.msra.mxu1 %v3989_v25 }
 0xb83   :  { %v1484_v14 = vmul.f32 %v1482_v12, %v1466_v8  ;;  %1689 = vmatprep.subr.mxu1 %v3993_v55  ;;  %v4554_v8 = vld [vmem:[#allocation16_spill] sm:$0xff] }
 0xb84   :  { %1690 = vmatpush1.msra.mxu1 %v3997_v56  ;;  %v182_v12 = vadd.f32 %v4554_v8, %v4530_v28 }
 0xb85   :  { %2999 = vmatmul.mubr.msk.f32.vlgmr.msra.gmra.mxu0 %vm232_vm1, %v1484_v14  ;;  %1691 = vmatprep.subr.mxu1 %v4001_v57 }
 0xb86   :  { %1782 = vmatpush1.msra.mxu0 %v4078_v19  ;;  %1692 = vmatpush1.msra.mxu1 %v4005_v58 }
 0xb87   :  { %1783 = vmatprep.subr.mxu0 %v4082_v24  ;;  %1693 = vmatprep.subr.mxu1 %v4009_v59 }
 0xb88   :  { %1784 = vmatpush1.msra.mxu0 %v4086_v31  ;;  %1694 = vmatpush1.msra.mxu1 %v4013_v60 }
 0xb89   :  { %1785 = vmatprep.subr.mxu0 %v4090_v34  ;;  %3000 = vmatmul.mubr.msk.f32.vlgmr.msra.gmra.mxu1 %vm232_vm1, %v1484_v14 }
 0xb8a   :  { %1786 = vmatpush1.msra.mxu0 %v4094_v38  ;;  %1855 = vmatprep.subr.mxu1 %v4098_v40 }
 0xb8b   :  { %1856 = vmatpush1.msra.mxu1 %v4101_v45  ;;  %1787 = vmatprep.subr.mxu0 %v4104_v47 }
 0xb8c   :  { %1857 = vmatprep.subr.mxu1 %v4107_v48  ;;  %1788 = vmatpush1.msra.mxu0 %v4110_v43 }
 0xb8d   :  { %1858 = vmatpush1.msra.mxu1 %v4113_v39  ;;  %1789 = vmatprep.subr.mxu0 %v4116_v51 }
 0xb8e   :  { %1859 = vmatprep.subr.mxu1 %v4119_v9  ;;  %1790 = vmatpush1.msra.mxu0 %v4122_v10 }
 0xb8f   :  { %1860 = vmatpush1.msra.mxu1 %v4125_v11  ;;  %1791 = vmatprep.subr.mxu0 %v4128_v13 }
 0xb90   :  { %1861 = vmatprep.subr.mxu1 %v4131_v15  ;;  %1792 = vmatpush1.msra.mxu0 %v4134_v17 }
 0xb91   :  { %1862 = vmatpush1.msra.mxu1 %v4137_v3  ;;  %1793 = vmatprep.subr.mxu0 %v4140_v53 }
 0xb92   :  { %1863 = vmatprep.subr.mxu1 %v4143_v4  ;;  %1794 = vmatpush1.msra.mxu0 %v4146_v26 }
 0xb93   :  { %1864 = vmatpush1.msra.mxu1 %v4149_v44  ;;  %1795 = vmatprep.subr.mxu0 %v4152_v36 }
 0xb94   :  { %1865 = vmatprep.subr.mxu1 %v4155_v30  ;;  %1796 = vmatpush1.msra.mxu0 %v4158_v49 }
 0xb95   :  { %1866 = vmatpush1.msra.mxu1 %v4161_v54  ;;  %1829 = vmatprep.mubr.f32.mxu0 %v4514_v29 }
 0xb96   :  { %1867 = vmatprep.subr.mxu1 %v4165_v42  ;;  %1903 = vmatprep.mubr.f32.mxu1 %v4514_v29 }
 0xb97   :  { %1868 = vmatpush1.msra.mxu1 %v4169_v5  ;;  %1956 = vmatprep.subr.mxu0 %v4026_v61  ;;  %v4555_v5 = vld [vmem:[#allocation17_spill] sm:$0xff] }
 0xb98   :  { %1869 = vmatprep.subr.mxu1 %v4173_v6  ;;  %v184_v42 = vadd.f32 %v4555_v5, %v4543_v32 }
 0xb99   :  { %1870 = vmatpush1.msra.mxu1 %v4176_v27 }
 0xb9a   :  { %2058 = vmatprep.subr.mxu1 %v4179_v7 }
 0xc39   :  { %v1554_v35 = vpop.f32.mrf.mxu1 }
 0xc3b   :  { %v1556_v37 = vpop.f32.mrf.mxu1 }
 0xc45   :  { %v1628_v62 = vpop.f32.mrf.mxu0 }
 0xc46   :  { %v1629_v63 = vadd.f32 %v1628_v62, %v1554_v35 }
 0xc47   :  { %v1630_v1 = vpop.f32.mrf.mxu0 }
 0xc48   :  { %v1631_v2 = vadd.f32 %v1630_v1, %v1556_v37  ;;  %v1633_v62 = vadd.f32 %v1629_v63, %v3796_v0 }
 0xc49   :  { %v1729_v6 = vpop.f32.mrf.mxu1 }
 0xc4a   :  { %v1634_v14 = vadd.f32 %v1631_v2, %v4542_v33  ;;  %v1734_v27 = vadd.f32 %v1729_v6, %v182_v12  ;;  %v1635_v37 = vmul.f32 0.5, %v1633_v62 }
 0xc4b   :  { %v1731_v54 = vpop.f32.mrf.mxu1 }
 0xc4c   :  { %3309 = vtanh.f32 %v1634_v14  ;;  %v1735_v30 = vadd.f32 %v1731_v54, %v184_v42  ;;  %v1736_v1 = vmul.f32 0.5, %v1734_v27 }
 0xc4e   :  { %3311 = vtanh.f32 %v1735_v30 }
 0xc4f   :  { %3313 = vtanh.f32 %v1635_v37 }
 0xc50   :  { %3315 = vtanh.f32 %v1736_v1 }
 0xc59   :  { %v3310_v7 = vpop.eup %3309 }
 0xc5a   :  { %1646 = vrot.lane.b32.xlu1 %v3310_v7, %s3462_s28 }
 0xc5b   :  { %v3312_v35 = vpop.eup %3311 }
 0xc5c   :  { %1747 = vrot.lane.b32.xlu0 %v3312_v35, %s3462_s28  ;;  %v3314_v2 = vpop.eup %3313 }
 0xc5d   :  { %v1639_v8 = vmul.f32 0.5, %v3314_v2  ;;  %v3316_v5 = vpop.eup %3315 }
 0xc5e   :  { %v1740_v6 = vmul.f32 0.5, %v3316_v5 }
 0xc5f   :  { %v1641_v12 = vadd.f32 0.5, %v1639_v8 }
 0xc60   :  { %v1742_v42 = vadd.f32 0.5, %v1740_v6 }
 0xc61   :  { %v1644_v63 = vmul.f32 %v1641_v12, %v4055_v41  ;;  %v1737_v41 = vmul.f32 0.5, %v1735_v30  ;;  %v4556_v30 = vld [vmem:[#allocation28_spill] sm:$0xff] }
 0xc62   :  { %v1745_v27 = vmul.f32 %v1742_v42, %v4059_v52 }
 0xccc   :  { %v1647_v32 = vpop.permute.xlu1 %1646 }
 0xccd   :  { %v1649_v54 = vmul.f32 %v1647_v32, %v1641_v12 }
 0xcce   :  { %v1748_v7 = vpop.permute.xlu0 %1747 }
 0xccf   :  { %1651 = vrot.lane.b32.xlu1 %v1649_v54, %s3462_s28  ;;  %v1750_v28 = vmul.f32 %v1748_v7, %v1742_v42 }
 0xcd1   :  { %1752 = vrot.lane.b32.xlu0 %v1750_v28, %s3462_s28  ;;  %v1636_v28 = vmul.f32 0.5, %v1634_v14  ;;  %v4557_v14 = vld [vmem:[#allocation29_spill] sm:$0xff] }
 0xd41   :  { %v1652_v35 = vpop.permute.xlu1 %1651 }
 0xd42   :  { %v4193_v62 = vadd.f32 %v1652_v35, %v1644_v63 }
 0xd43   :  { %v1753_v37 = vpop.permute.xlu0 %1752 }
 0xd44   :  { %3317 = vtanh.f32 %v4193_v62  ;;  %v4197_v1 = vadd.f32 %v1753_v37, %v1745_v27  ;;  %v4559_v27 = vld [vmem:[#allocation31_spill] sm:$0xff] }
 0xd45   :  { %v4560_v37 = vld [vmem:[#allocation35_spill] sm:$0xff] }
 0xd46   :  { %3319 = vtanh.f32 %v4197_v1 }
 0xd47   :  { %3321 = vtanh.f32 %v1636_v28 }
 0xd48   :  { %3323 = vtanh.f32 %v1737_v41 }
 0xd51   :  { %v3318_v32 = vpop.eup %3317 }
 0xd52   :  { %1657 = vrot.lane.b32.xlu1 %v3318_v32, %s3462_s28  ;;  %v4561_v32 = vld [vmem:[#allocation36_spill] sm:$0xff] }
 0xd53   :  { %v3320_v2 = vpop.eup %3319 }
 0xd54   :  { %1758 = vrot.lane.b32.xlu0 %v3320_v2, %s3462_s28  ;;  %v3322_v8 = vpop.eup %3321  ;;  %v4562_v2 = vld [vmem:[#allocation26_spill] sm:$0xff] }
 0xd55   :  { %v1640_v5 = vmul.f32 0.5, %v3322_v8  ;;  %v3324_v52 = vpop.eup %3323 }
 0xd56   :  { %v1741_v6 = vmul.f32 0.5, %v3324_v52 }
 0xd57   :  { %v1642_v12 = vadd.f32 0.5, %v1640_v5 }
 0xd58   :  { %v1743_v7 = vadd.f32 0.5, %v1741_v6 }
 0xdc4   :  { %v1658_v54 = vpop.permute.xlu1 %1657 }
 0xdc5   :  { %v1660_v42 = vmul.f32 %v1658_v54, %v1642_v12  ;;  %v4563_v54 = vld [vmem:[#allocation21_spill] sm:$0xff] }
 0xdc6   :  { %v1759_v63 = vpop.permute.xlu0 %1758 }
 0xdc7   :  { %3001 = vmatmul.mubr.msk.f32.vlgmr.msra.gmra.mxu0 %vm232_vm1, %v1660_v42  ;;  %v1761_v35 = vmul.f32 %v1759_v63, %v1743_v7  ;;  %v4564_v42 = vld [vmem:[#allocation19_spill] sm:$0xff] }
 0xdc8   :  { %1957 = vmatpush1.msra.mxu0 %v3959_v16  ;;  %2004 = vmatprep.mubr.f32.mxu0 %v4514_v29  ;;  %v188_v7 = vadd.f32 %v4564_v42, %v4563_v54 }
 0xdc9   :  { %1958 = vmatprep.subr.mxu0 %v3963_v46  ;;  %3002 = vmatmul.mubr.msk.f32.vlgmr.msra.gmra.mxu1 %vm232_vm1, %v1761_v35 }
 0xdca   :  { %1959 = vmatpush1.msra.mxu0 %v3966_v18  ;;  %2059 = vmatpush1.msra.mxu1 %v4078_v19 }
 0xdcb   :  { %1960 = vmatprep.subr.mxu0 %v3970_v20  ;;  %2060 = vmatprep.subr.mxu1 %v4082_v24 }
 0xdcc   :  { %1961 = vmatpush1.msra.mxu0 %v3973_v21  ;;  %2061 = vmatpush1.msra.mxu1 %v4086_v31 }
 0xdcd   :  { %1962 = vmatprep.subr.mxu0 %v3977_v22  ;;  %2062 = vmatprep.subr.mxu1 %v4090_v34 }
 0xdce   :  { %1963 = vmatpush1.msra.mxu0 %v3981_v23  ;;  %2063 = vmatpush1.msra.mxu1 %v4094_v38 }
 0xdcf   :  { %1964 = vmatprep.subr.mxu0 %v3985_v50  ;;  %2064 = vmatprep.subr.mxu1 %v4104_v47 }
 0xdd0   :  { %1965 = vmatpush1.msra.mxu0 %v3989_v25  ;;  %2065 = vmatpush1.msra.mxu1 %v4110_v43 }
 0xdd1   :  { %1966 = vmatprep.subr.mxu0 %v3993_v55  ;;  %2066 = vmatprep.subr.mxu1 %v4116_v51 }
 0xdd2   :  { %1967 = vmatpush1.msra.mxu0 %v3997_v56  ;;  %2067 = vmatpush1.msra.mxu1 %v4122_v10 }
 0xdd3   :  { %1968 = vmatprep.subr.mxu0 %v4001_v57  ;;  %2068 = vmatprep.subr.mxu1 %v4128_v13 }
 0xdd4   :  { %1969 = vmatpush1.msra.mxu0 %v4005_v58  ;;  %2069 = vmatpush1.msra.mxu1 %v4134_v17 }
 0xdd5   :  { %1970 = vmatprep.subr.mxu0 %v4009_v59  ;;  %2070 = vmatprep.subr.mxu1 %v4140_v53 }
 0xdd6   :  { %1971 = vmatpush1.msra.mxu0 %v4013_v60  ;;  %2071 = vmatpush1.msra.mxu1 %v4146_v26 }
 0xdd7   :  { %3003 = vmatmul.mubr.msk.f32.vlgmr.msra.gmra.mxu0 %vm232_vm1, %v1761_v35  ;;  %2132 = vmatprep.subr.mxu0 %v4098_v40  ;;  %v4565_v35 = vld [vmem:[#allocation24_spill] sm:$0xff] }
 0xdd8   :  { %2072 = vmatprep.subr.mxu1 %v4152_v36  ;;  %2133 = vmatpush1.msra.mxu0 %v4101_v45 }
 0xdd9   :  { %2073 = vmatpush1.msra.mxu1 %v4158_v49  ;;  %2106 = vmatprep.mubr.f32.mxu1 %v4514_v29 }
 0xdda   :  { %2134 = vmatprep.subr.mxu0 %v4107_v48  ;;  %2233 = vmatprep.subr.mxu1 %v4026_v61  ;;  %v4558_v61 = vld [vmem:[#allocation30_spill] sm:$0xff] }
 0xddb   :  { %2135 = vmatpush1.msra.mxu0 %v4113_v39  ;;  %2180 = vmatprep.mubr.f32.mxu0 %v4514_v29 }
 0xddc   :  { %2136 = vmatprep.subr.mxu0 %v4119_v9 }
 0xddd   :  { %2137 = vmatpush1.msra.mxu0 %v4125_v11 }
 0xdde   :  { %2138 = vmatprep.subr.mxu0 %v4131_v15 }
 0xddf   :  { %2139 = vmatpush1.msra.mxu0 %v4137_v3 }
 0xde0   :  { %2140 = vmatprep.subr.mxu0 %v4143_v4 }
 0xde1   :  { %2141 = vmatpush1.msra.mxu0 %v4149_v44 }
 0xde2   :  { %2142 = vmatprep.subr.mxu0 %v4556_v30 }
 0xde3   :  { %2143 = vmatpush1.msra.mxu0 %v4557_v14 }
 0xde4   :  { %2144 = vmatprep.subr.mxu0 %v4558_v61 }
 0xde5   :  { %2145 = vmatpush1.msra.mxu0 %v4559_v27  ;;  %v4566_v27 = vld [vmem:[#allocation20_spill] sm:$0xff] }
 0xde6   :  { %2146 = vmatprep.subr.mxu0 %v4560_v37  ;;  %v190_v37 = vadd.f32 %v4566_v27, %v4565_v35 }
 0xde7   :  { %2147 = vmatpush1.msra.mxu0 %v4561_v32 }
 0xde8   :  { %2335 = vmatprep.subr.mxu0 %v4562_v2 }
 0xe87   :  { %v1831_v28 = vpop.f32.mrf.mxu0 }
 0xe89   :  { %v1905_v41 = vpop.f32.mrf.mxu1  ;;  %v1833_v8 = vpop.f32.mrf.mxu0 }
 0xe8a   :  { %v1906_v5 = vadd.f32 %v1905_v41, %v1831_v28 }
 0xe8b   :  { %v1907_v52 = vpop.f32.mrf.mxu1 }
 0xe8c   :  { %v1908_v6 = vadd.f32 %v1907_v52, %v1833_v8  ;;  %v1910_v41 = vadd.f32 %v1906_v5, %v3796_v0 }
 0xe8e   :  { %v1911_v12 = vadd.f32 %v1908_v6, %v4542_v33  ;;  %v1912_v8 = vmul.f32 0.5, %v1910_v41 }
 0xe90   :  { %3325 = vtanh.f32 %v1911_v12 }
 0xe97   :  { %v2006_v63 = vpop.f32.mrf.mxu0 }
 0xe98   :  { %v2011_v61 = vadd.f32 %v2006_v63, %v188_v7 }
 0xe99   :  { %v2008_v32 = vpop.f32.mrf.mxu0 }
 0xe9a   :  { %v2012_v14 = vadd.f32 %v2008_v32, %v190_v37  ;;  %v2013_v52 = vmul.f32 0.5, %v2011_v61 }
 0xe9c   :  { %3327 = vtanh.f32 %v2012_v14 }
 0xe9d   :  { %v3326_v2 = vpop.eup %3325  ;;  %3329 = vtanh.f32 %v1912_v8 }
 0xe9e   :  { %1923 = vrot.lane.b32.xlu1 %v3326_v2, %s3462_s28  ;;  %3331 = vtanh.f32 %v2013_v52 }
 0xea9   :  { %v3328_v28 = vpop.eup %3327 }
 0xeaa   :  { %2024 = vrot.lane.b32.xlu0 %v3328_v28, %s3462_s28  ;;  %v3330_v6 = vpop.eup %3329 }
 0xeab   :  { %v1916_v42 = vmul.f32 0.5, %v3330_v6  ;;  %v3332_v63 = vpop.eup %3331 }
 0xeac   :  { %v2017_v37 = vmul.f32 0.5, %v3332_v63 }
 0xead   :  { %v1918_v33 = vadd.f32 0.5, %v1916_v42 }
 0xeae   :  { %v2019_v32 = vadd.f32 0.5, %v2017_v37 }
 0xeaf   :  { %v1921_v5 = vmul.f32 %v1918_v33, %v4193_v62 }
 0xeb0   :  { %v2022_v61 = vmul.f32 %v2019_v32, %v4197_v1 }
 0xf10   :  { %v1924_v27 = vpop.permute.xlu1 %1923 }
 0xf11   :  { %v1926_v7 = vmul.f32 %v1924_v27, %v1918_v33  ;;  %v2014_v33 = vmul.f32 0.5, %v2012_v14 }
 0xf13   :  { %1928 = vrot.lane.b32.xlu1 %v1926_v7, %s3462_s28 }
 0xf1c   :  { %v2025_v2 = vpop.permute.xlu0 %2024 }
 0xf1d   :  { %v2027_v35 = vmul.f32 %v2025_v2, %v2019_v32 }
 0xf1f   :  { %2029 = vrot.lane.b32.xlu0 %v2027_v35, %s3462_s28  ;;  %v1913_v35 = vmul.f32 0.5, %v1911_v12 }
 0xf85   :  { %v1929_v28 = vpop.permute.xlu1 %1928 }
 0xf86   :  { %v4267_v41 = vadd.f32 %v1929_v28, %v1921_v5 }
 0xf88   :  { %3333 = vtanh.f32 %v4267_v41 }
 0xf91   :  { %v2030_v8 = vpop.permute.xlu0 %2029 }
 0xf92   :  { %v4271_v52 = vadd.f32 %v2030_v8, %v2022_v61 }
 0xf94   :  { %3335 = vtanh.f32 %v4271_v52 }
 0xf95   :  { %v3334_v6 = vpop.eup %3333  ;;  %3337 = vtanh.f32 %v1913_v35 }
 0xf96   :  { %1934 = vrot.lane.b32.xlu1 %v3334_v6, %s3462_s28  ;;  %3339 = vtanh.f32 %v2014_v33 }
 0xfa1   :  { %v3336_v42 = vpop.eup %3335 }
 0xfa2   :  { %2035 = vrot.lane.b32.xlu0 %v3336_v42, %s3462_s28  ;;  %v3338_v62 = vpop.eup %3337 }
 0xfa3   :  { %v1917_v27 = vmul.f32 0.5, %v3338_v62  ;;  %v3340_v37 = vpop.eup %3339 }
 0xfa4   :  { %v2018_v32 = vmul.f32 0.5, %v3340_v37 }
 0xfa5   :  { %v1919_v7 = vadd.f32 0.5, %v1917_v27 }
 0xfa6   :  { %v2020_v14 = vadd.f32 0.5, %v2018_v32 }
0x1008   :  { %v1935_v63 = vpop.permute.xlu1 %1934 }
0x1009   :  { %v1937_v1 = vmul.f32 %v1935_v63, %v1919_v7 }
0x100b   :  { %3004 = vmatmul.mubr.msk.f32.vlgmr.msra.gmra.mxu1 %vm232_vm1, %v1937_v1 }
0x100c   :  { %2234 = vmatpush1.msra.mxu1 %v3959_v16  ;;  %2281 = vmatprep.mubr.f32.mxu1 %v4514_v29 }
0x100d   :  { %2235 = vmatprep.subr.mxu1 %v3963_v46  ;;  %v4567_v46 = vld [vmem:[#allocation29_spill] sm:$0xff] }
0x100e   :  { %2236 = vmatpush1.msra.mxu1 %v3966_v18  ;;  %v4568_v18 = vld [vmem:[#allocation30_spill] sm:$0xff] }
0x100f   :  { %2237 = vmatprep.subr.mxu1 %v3970_v20  ;;  %v4569_v20 = vld [vmem:[#allocation31_spill] sm:$0xff] }
0x1010   :  { %2238 = vmatpush1.msra.mxu1 %v3973_v21  ;;  %v4570_v21 = vld [vmem:[#allocation35_spill] sm:$0xff] }
0x1011   :  { %2239 = vmatprep.subr.mxu1 %v3977_v22  ;;  %v4571_v22 = vld [vmem:[#allocation36_spill] sm:$0xff] }
0x1012   :  { %2240 = vmatpush1.msra.mxu1 %v3981_v23 }
0x1013   :  { %2241 = vmatprep.subr.mxu1 %v3985_v50 }
0x1014   :  { %v2036_v12 = vpop.permute.xlu0 %2035  ;;  %2242 = vmatpush1.msra.mxu1 %v3989_v25 }
0x1015   :  { %v2038_v16 = vmul.f32 %v2036_v12, %v2020_v14  ;;  %2243 = vmatprep.subr.mxu1 %v3993_v55 }
0x1016   :  { %2244 = vmatpush1.msra.mxu1 %v3997_v56 }
0x1017   :  { %3005 = vmatmul.mubr.msk.f32.vlgmr.msra.gmra.mxu0 %vm232_vm1, %v2038_v16  ;;  %2245 = vmatprep.subr.mxu1 %v4001_v57 }
0x1018   :  { %2336 = vmatpush1.msra.mxu0 %v4078_v19  ;;  %2246 = vmatpush1.msra.mxu1 %v4005_v58  ;;  %v4572_v58 = vld [vmem:[#allocation22_spill] sm:$0xff] }
0x1019   :  { %2337 = vmatprep.subr.mxu0 %v4082_v24  ;;  %2247 = vmatprep.subr.mxu1 %v4009_v59  ;;  %v194_v59 = vadd.f32 %v4572_v58, %v4563_v54 }
0x101a   :  { %2338 = vmatpush1.msra.mxu0 %v4086_v31  ;;  %2248 = vmatpush1.msra.mxu1 %v4013_v60  ;;  %v4573_v60 = vld [vmem:[#allocation39_spill] sm:$0xff]  ;;  %v4574_v31 = vld [vmem:[#allocation24_spill] sm:$0xff] }
0x101b   :  { %2339 = vmatprep.subr.mxu0 %v4090_v34  ;;  %3006 = vmatmul.mubr.msk.f32.vlgmr.msra.gmra.mxu1 %vm232_vm1, %v2038_v16  ;;  %v4575_v34 = vld [vmem:[#allocation23_spill] sm:$0xff] }
0x101c   :  { %2340 = vmatpush1.msra.mxu0 %v4094_v38  ;;  %2409 = vmatprep.subr.mxu1 %v4098_v40  ;;  %v196_v38 = vadd.f32 %v4575_v34, %v4574_v31 }
0x101d   :  { %2410 = vmatpush1.msra.mxu1 %v4101_v45  ;;  %2341 = vmatprep.subr.mxu0 %v4104_v47 }
0x101e   :  { %2411 = vmatprep.subr.mxu1 %v4107_v48  ;;  %2342 = vmatpush1.msra.mxu0 %v4110_v43 }
0x101f   :  { %2412 = vmatpush1.msra.mxu1 %v4113_v39  ;;  %2343 = vmatprep.subr.mxu0 %v4116_v51 }
0x1020   :  { %2413 = vmatprep.subr.mxu1 %v4119_v9  ;;  %2344 = vmatpush1.msra.mxu0 %v4122_v10 }
0x1021   :  { %2414 = vmatpush1.msra.mxu1 %v4125_v11  ;;  %2345 = vmatprep.subr.mxu0 %v4128_v13 }
0x1022   :  { %2415 = vmatprep.subr.mxu1 %v4131_v15  ;;  %2346 = vmatpush1.msra.mxu0 %v4134_v17 }
0x1023   :  { %2416 = vmatpush1.msra.mxu1 %v4137_v3  ;;  %2347 = vmatprep.subr.mxu0 %v4140_v53 }
0x1024   :  { %2417 = vmatprep.subr.mxu1 %v4143_v4  ;;  %2348 = vmatpush1.msra.mxu0 %v4146_v26 }
0x1025   :  { %2418 = vmatpush1.msra.mxu1 %v4149_v44  ;;  %2349 = vmatprep.subr.mxu0 %v4152_v36 }
0x1026   :  { %2419 = vmatprep.subr.mxu1 %v4556_v30  ;;  %2350 = vmatpush1.msra.mxu0 %v4158_v49 }
0x1027   :  { %2420 = vmatpush1.msra.mxu1 %v4567_v46  ;;  %2383 = vmatprep.mubr.f32.mxu0 %v4514_v29 }
0x1028   :  { %2421 = vmatprep.subr.mxu1 %v4568_v18  ;;  %2457 = vmatprep.mubr.f32.mxu1 %v4514_v29 }
0x1029   :  { %2422 = vmatpush1.msra.mxu1 %v4569_v20 }
0x102a   :  { %2423 = vmatprep.subr.mxu1 %v4570_v21 }
0x102b   :  { %2424 = vmatpush1.msra.mxu1 %v4571_v22 }
0x10cb   :  { %v2108_v23 = vpop.f32.mrf.mxu1 }
0x10cd   :  { %v2110_v55 = vpop.f32.mrf.mxu1 }
0x10d7   :  { %v2182_v50 = vpop.f32.mrf.mxu0 }
0x10d8   :  { %v2183_v25 = vadd.f32 %v2182_v50, %v2108_v23 }
0x10d9   :  { %v2184_v56 = vpop.f32.mrf.mxu0 }
0x10da   :  { %v2185_v57 = vadd.f32 %v2184_v56, %v2110_v55  ;;  %v2187_v39 = vadd.f32 %v2183_v25, %v3796_v0 }
0x10db   :  { %v2283_v24 = vpop.f32.mrf.mxu1 }
0x10dc   :  { %v2188_v19 = vadd.f32 %v2185_v57, %v4573_v60  ;;  %v2288_v40 = vadd.f32 %v2283_v24, %v194_v59  ;;  %v2189_v51 = vmul.f32 0.5, %v2187_v39 }
0x10dd   :  { %v2285_v45 = vpop.f32.mrf.mxu1 }
0x10de   :  { %3341 = vtanh.f32 %v2188_v19  ;;  %v2289_v47 = vadd.f32 %v2285_v45, %v196_v38  ;;  %v2290_v9 = vmul.f32 0.5, %v2288_v40  ;;  %v2190_v8 = vmul.f32 0.5, %v2188_v19 }
0x10e0   :  { %3343 = vtanh.f32 %v2289_v47  ;;  %v2291_v6 = vmul.f32 0.5, %v2289_v47 }
0x10e1   :  { %3345 = vtanh.f32 %v2189_v51 }
0x10e2   :  { %3347 = vtanh.f32 %v2290_v9 }
0x10eb   :  { %v3342_v48 = vpop.eup %3341 }
0x10ec   :  { %2200 = vrot.lane.b32.xlu1 %v3342_v48, %s3462_s28 }
0x10ed   :  { %v3344_v43 = vpop.eup %3343 }
0x10ee   :  { %2301 = vrot.lane.b32.xlu0 %v3344_v43, %s3462_s28  ;;  %v3346_v10 = vpop.eup %3345 }
0x10ef   :  { %v2193_v11 = vmul.f32 0.5, %v3346_v10  ;;  %v3348_v13 = vpop.eup %3347 }
0x10f0   :  { %v2294_v15 = vmul.f32 0.5, %v3348_v13 }
0x10f1   :  { %v2195_v17 = vadd.f32 0.5, %v2193_v11 }
0x10f2   :  { %v2296_v4 = vadd.f32 0.5, %v2294_v15 }
0x10f3   :  { %v2198_v36 = vmul.f32 %v2195_v17, %v4267_v41 }
0x10f4   :  { %v2299_v54 = vmul.f32 %v2296_v4, %v4271_v52 }
0x115e   :  { %v2201_v3 = vpop.permute.xlu1 %2200 }
0x115f   :  { %v2203_v53 = vmul.f32 %v2201_v3, %v2195_v17 }
0x1160   :  { %v2302_v26 = vpop.permute.xlu0 %2301 }
0x1161   :  { %2205 = vrot.lane.b32.xlu1 %v2203_v53, %s3462_s28  ;;  %v2304_v44 = vmul.f32 %v2302_v26, %v2296_v4 }
0x1163   :  { %2306 = vrot.lane.b32.xlu0 %v2304_v44, %s3462_s28 }
0x11d3   :  { %v2206_v49 = vpop.permute.xlu1 %2205 }
0x11d4   :  { %v2208_v30 = vadd.f32 %v2206_v49, %v2198_v36 }
0x11d5   :  { %v2307_v2 = vpop.permute.xlu0 %2306 }
0x11d6   :  { %3349 = vtanh.f32 %v2208_v30  ;;  %v2309_v5 = vadd.f32 %v2307_v2, %v2299_v54 }
0x11d8   :  { %3351 = vtanh.f32 %v2309_v5 }
0x11d9   :  { %3353 = vtanh.f32 %v2190_v8 }
0x11da   :  { %3355 = vtanh.f32 %v2291_v6 }
0x11e3   :  { %v3350_v28 = vpop.eup %3349 }
0x11e4   :  { %2211 = vrot.lane.b32.xlu1 %v3350_v28, %s3462_s28 }
0x11e5   :  { %v3352_v61 = vpop.eup %3351 }
0x11e6   :  { %2312 = vrot.lane.b32.xlu0 %v3352_v61, %s3462_s28  ;;  %v3354_v42 = vpop.eup %3353 }
0x11e7   :  { %v2194_v41 = vmul.f32 0.5, %v3354_v42  ;;  %v3356_v35 = vpop.eup %3355 }
0x11e8   :  { %v2295_v33 = vmul.f32 0.5, %v3356_v35 }
0x11e9   :  { %v2196_v62 = vadd.f32 0.5, %v2194_v41 }
0x11ea   :  { %v2297_v7 = vadd.f32 0.5, %v2295_v33 }
0x1256   :  { %v2212_v52 = vpop.permute.xlu1 %2211 }
0x1257   :  { %v2214_v27 = vmul.f32 %v2212_v52, %v2196_v62 }
0x1258   :  { %v2313_v63 = vpop.permute.xlu0 %2312 }
0x1259   :  { %3007 = vmatmul.mubr.msk.f32.vlgmr.msra.gmra.mxu0 %vm232_vm1, %v2214_v27  ;;  %v2315_v1 = vmul.f32 %v2313_v63, %v2297_v7 }
0x125b   :  { %3008 = vmatmul.mubr.msk.f32.vlgmr.msra.gmra.mxu1 %vm232_vm1, %v2315_v1 }
0x1319   :  { %v2385_v37 = vpop.f32.mrf.mxu0 }
0x131b   :  { %v2459_v32 = vpop.f32.mrf.mxu1  ;;  %v2387_v14 = vpop.f32.mrf.mxu0 }
0x131c   :  { %v2460_v12 = vadd.f32 %v2459_v32, %v2385_v37 }
0x131d   :  { %v2461_v16 = vpop.f32.mrf.mxu1 }
0x131e   :  { %v2462_v46 = vadd.f32 %v2461_v16, %v2387_v14  ;;  %v2464_v21 = vadd.f32 %v2460_v12, %v3796_v0 }
0x1320   :  { %v2465_v18 = vadd.f32 %v2462_v46, %v4573_v60  ;;  %v2466_v22 = vmul.f32 0.5, %v2464_v21 }
0x1322   :  { %3357 = vtanh.f32 %v2465_v18 }
0x1323   :  { %3359 = vtanh.f32 %v2466_v22 }
0x132f   :  { %v3358_v20 = vpop.eup %3357 }
0x1330   :  { %2477 = vrot.lane.b32.xlu1 %v3358_v20, %s3462_s28  ;;  %v3360_v23 = vpop.eup %3359 }
0x1331   :  { %v2470_v50 = vmul.f32 0.5, %v3360_v23 }
0x1333   :  { %v2472_v25 = vadd.f32 0.5, %v2470_v50 }
0x1335   :  { %v2475_v57 = vmul.f32 %v2472_v25, %v2208_v30 }
0x13a2   :  { %v2478_v55 = vpop.permute.xlu1 %2477 }
0x13a3   :  { %v2480_v56 = vmul.f32 %v2478_v55, %v2472_v25 }
0x13a5   :  { %2482 = vrot.lane.b32.xlu0 %v2480_v56, %s3462_s28 }
0x1417   :  { %v2483_v58 = vpop.permute.xlu0 %2482 }
0x1418   :  { %v2485_v59 = vadd.f32 %v2483_v58, %v2475_v57 }
0x141a   :  { %3361 = vtanh.f32 %v2485_v59 }
0x141b   :  { %3453 = shalt.err (!%p3450_p9)  }
0x141c   :  { %36 = dma.hbm_to_vmem [thread:$0]  %s4442_s2, 8704, %s34_s9, [#allocation4]  ;;  %v2467_v60 = vmul.f32 0.5, %v2465_v18 }
0x141e   :  { %3363 = vtanh.f32 %v2467_v60 }
0x1427   :  { %v3362_v0 = vpop.eup %3361 }
0x1428   :  { %2488 = vrot.lane.b32.xlu1 %v3362_v0, %s3462_s28 }
0x142b   :  { %v3364_v19 = vpop.eup %3363 }
0x142c   :  { %v2471_v24 = vmul.f32 0.5, %v3364_v19 }
0x142e   :  { %v2473_v31 = vadd.f32 0.5, %v2471_v24 }
0x149a   :  { %v2489_v34 = vpop.permute.xlu1 %2488 }
0x149b   :  { %v4352_v38 = vmul.f32 %v2489_v34, %v2473_v31 }
0x149c   :  { %3456 = dma.done.wait [#allocation4], 8704 }
0x149d   :  { %3457 = vsyncadd [#allocation4], 4294958592  ;;  %3084 = vmatprep.subr.mxu0 %v4514_v29  ;;  %vm2495_vm2 = vcmask 517120   ;;  %3103 = vmatprep.subr.mxu1 %v4514_v29  ;;  %vm3464_vm3 = vmmov 0   ;;  %v3465_v45 = vmov 0   ;;  %v2513_v39 = vld [vmem:[#allocation3 + $0x38] sm:$0xff] }
0x149e   :  { %3100 = vmatprep.mubr.msk.f32.mxu0 %vm3464_vm3, %v4514_v29  ;;  %v2496_v40 = vsel %vm2495_vm2, %v4352_v38, 0.0  ;;  %3413 = vset.pattern.permute.xlu0 %v3465_v45  ;;  %v2512_v51 = vld [vmem:[#allocation3 + $0x30] sm:$0xff]  ;;  %v2511_v10 = vld [vmem:[#allocation3 + $0x28] sm:$0xff]  ;;  %v2505_v11 = vld [vmem:[%s4440_s0 + $0x40] sm:$0xff] }
0x149f   :  { %v2497_v47 = vrot.slane %v2496_v40, 4  ;;  %3135 = vmatprep.mubr.msk.f32.mxu1 %vm3464_vm3, %v4514_v29  ;;  %3085 = vmatpush3.msra.mxu0 %v2513_v39  ;;  %v2627_v13 = vld [vmem:[#allocation3 + $0xc0] sm:$0xff]  ;;  %v2626_v15 = vld [vmem:[#allocation3 + $0xb8] sm:$0xff]  ;;  %v2625_v53 = vld [vmem:[#allocation3 + $0xb0] sm:$0xff] }
0x14a0   :  { %3086 = vmatprep.subr.mxu0 %v4514_v29  ;;  %2589 = vperm.xlu0 %3413, %v2505_v11   ;;  %v2510_v17 = vld [vmem:[#allocation3 + $0x20] sm:$0xff]  ;;  %v2509_v4 = vld [vmem:[#allocation3 + $0x18] sm:$0xff]  ;;  %v2508_v26 = vld [vmem:[#allocation3 + $0x10] sm:$0xff] }
0x14a1   :  { %v2498_v48 = vadd.f32 %v2497_v47, %v2496_v40  ;;  %3087 = vmatpush3.msra.mxu0 %v2512_v51  ;;  %3104 = vmatpush3.msra.mxu1 %v2627_v13  ;;  %v2507_v36 = vld [vmem:[#allocation3 + $0x8] sm:$0xff]  ;;  %v2506_v49 = vld [vmem:[#allocation3] sm:$0xff]  ;;  %v2622_v5 = vld [vmem:[#allocation3 + $0x98] sm:$0xff] }
0x14a2   :  { %3088 = vmatprep.subr.mxu0 %v4514_v29  ;;  %3105 = vmatprep.subr.mxu1 %v4514_v29  ;;  %v2624_v54 = vld [vmem:[#allocation3 + $0xa8] sm:$0xff]  ;;  %v2623_v2 = vld [vmem:[#allocation3 + $0xa0] sm:$0xff]  ;;  %v2621_v28 = vld [vmem:[#allocation3 + $0x90] sm:$0xff] }
0x14a3   :  { %v2499_v43 = vrot.slane %v2498_v48, 2  ;;  %3089 = vmatpush3.msra.mxu0 %v2511_v10  ;;  %3106 = vmatpush3.msra.mxu1 %v2626_v15  ;;  %v2620_v61 = vld [vmem:[#allocation3 + $0x88] sm:$0xff]  ;;  %v2619_v8 = vld [vmem:[#allocation3 + $0x80] sm:$0xff]  ;;  %v2618_v6 = vld [vmem:[#allocation3 + $0x78] sm:$0xff] }
0x14a4   :  { %3090 = vmatprep.subr.mxu0 %v4514_v29  ;;  %3107 = vmatprep.subr.mxu1 %v4514_v29  ;;  %v2617_v42 = vld [vmem:[#allocation3 + $0x70] sm:$0xff]  ;;  %v2616_v41 = vld [vmem:[#allocation3 + $0x68] sm:$0xff]  ;;  %v2615_v35 = vld [vmem:[#allocation3 + $0x60] sm:$0xff] }
0x14a5   :  { %v2500_v9 = vadd.f32 %v2499_v43, %v2498_v48  ;;  %3091 = vmatpush3.msra.mxu0 %v2510_v17  ;;  %3108 = vmatpush3.msra.mxu1 %v2625_v53  ;;  %v2614_v33 = vld [vmem:[#allocation3 + $0x58] sm:$0xff]  ;;  %v2613_v62 = vld [vmem:[#allocation3 + $0x50] sm:$0xff]  ;;  %v2612_v52 = vld [vmem:[#allocation3 + $0x48] sm:$0xff] }
0x14a6   :  { %3092 = vmatprep.subr.mxu0 %v4514_v29  ;;  %3109 = vmatprep.subr.mxu1 %v4514_v29  ;;  %v2722_v27 = vld [vmem:[#allocation3 + $0x188] sm:$0xff]  ;;  %v2721_v7 = vld [vmem:[#allocation3 + $0x180] sm:$0xff]  ;;  %v2720_v63 = vld [vmem:[#allocation3 + $0x178] sm:$0xff] }
0x14a7   :  { %v2501_v3 = vrot.slane %v2500_v9, 1  ;;  %3093 = vmatpush3.msra.mxu0 %v2509_v4  ;;  %3110 = vmatpush3.msra.mxu1 %v2624_v54  ;;  %v2719_v1 = vld [vmem:[#allocation3 + $0x170] sm:$0xff]  ;;  %v2718_v37 = vld [vmem:[#allocation3 + $0x168] sm:$0xff]  ;;  %v2717_v32 = vld [vmem:[#allocation3 + $0x160] sm:$0xff] }
0x14a8   :  { %3094 = vmatprep.subr.mxu0 %v4514_v29  ;;  %3111 = vmatprep.subr.mxu1 %v4514_v29  ;;  %v2716_v14 = vld [vmem:[#allocation3 + $0x158] sm:$0xff]  ;;  %v2715_v12 = vld [vmem:[#allocation3 + $0x150] sm:$0xff]  ;;  %v2714_v16 = vld [vmem:[#allocation3 + $0x148] sm:$0xff] }
0x14a9   :  { %v2502_v44 = vadd.f32 %v2501_v3, %v2500_v9  ;;  %3095 = vmatpush3.msra.mxu0 %v2508_v26  ;;  %3112 = vmatpush3.msra.mxu1 %v2623_v2  ;;  %v2713_v46 = vld [vmem:[#allocation3 + $0x140] sm:$0xff]  ;;  %v2712_v18 = vld [vmem:[#allocation3 + $0x138] sm:$0xff]  ;;  %v2711_v20 = vld [vmem:[#allocation3 + $0x130] sm:$0xff] }
0x14aa   :  { %3096 = vmatprep.subr.mxu0 %v4514_v29  ;;  %3113 = vmatprep.subr.mxu1 %v4514_v29  ;;  %v2710_v21 = vld [vmem:[#allocation3 + $0x128] sm:$0xff]  ;;  %v2709_v22 = vld [vmem:[#allocation3 + $0x120] sm:$0xff]  ;;  %v4576_v25 = vld [vmem:[#allocation18_spill] sm:$0xff] }
0x14ab   :  { %v2504_v30 = vmul.f32 0.5, %v2502_v44  ;;  %3097 = vmatpush3.msra.mxu0 %v2507_v36  ;;  %3114 = vmatpush3.msra.mxu1 %v2622_v5  ;;  %v3010_v57 = vld [vmem:[#allocation3 + $0x40] ss:$0 sm:$0xff]  ;;  %v2706_v48 = vld [vmem:[#allocation3 + $0x108] sm:$0xff]  ;;  %v2704_v39 = vld [vmem:[#allocation3 + $0xf8] sm:$0xff] }
0x14ac   :  { %3098 = vmatprep.subr.mxu0 %v4514_v29  ;;  %3115 = vmatprep.subr.mxu1 %v4514_v29  ;;  %v2705_v43 = vld [vmem:[#allocation3 + $0x100] sm:$0xff]  ;;  %v2703_v51 = vld [vmem:[#allocation3 + $0xf0] sm:$0xff]  ;;  %v2702_v9 = vld [vmem:[#allocation3 + $0xe8] sm:$0xff] }
0x14ad   :  { %3099 = vmatpush3.msra.mxu0 %v2506_v49  ;;  %3116 = vmatpush3.msra.mxu1 %v2621_v28  ;;  %v2701_v10 = vld [vmem:[#allocation3 + $0xe0] sm:$0xff]  ;;  %v2708_v11 = vld [vmem:[#allocation3 + $0x118] sm:$0xff]  ;;  %v2707_v15 = vld [vmem:[#allocation3 + $0x110] sm:$0xff] }
0x14ae   :  { %3101 = vmatmul.mubr.msk.f32.vlgmr.msra.gmra.mxu0 %vm232_vm1, %v2504_v30  ;;  %3138 = vmatprep.subr.mxu0 %v4514_v29  ;;  %v2700_v13 = vld [vmem:[#allocation3 + $0xd8] sm:$0xff]  ;;  %v2699_v17 = vld [vmem:[#allocation3 + $0xd0] sm:$0xff]  ;;  %v2628_v3 = vld [vmem:[#allocation3 + $0xc8] sm:$0x1] }
0x14af   :  { %3170 = vmatprep.mubr.msk.f32.mxu0 %vm3464_vm3, %v4514_v29  ;;  %3117 = vmatprep.subr.mxu1 %v4514_v29  ;;  %v2891_v26 = vld [vmem:[#allocation3 + $0x210] sm:$0xff]  ;;  %v2890_v36 = vld [vmem:[#allocation3 + $0x208] sm:$0xff]  ;;  %v2889_v49 = vld [vmem:[#allocation3 + $0x200] sm:$0xff] }
0x14b0   :  { %3118 = vmatpush3.msra.mxu1 %v2620_v61  ;;  %3139 = vmatpush3.msra.mxu0 %v2722_v27  ;;  %v2887_v30 = vld [vmem:[#allocation3 + $0x1f0] sm:$0xff]  ;;  %v2886_v54 = vld [vmem:[#allocation3 + $0x1e8] sm:$0xff]  ;;  %v2885_v2 = vld [vmem:[#allocation3 + $0x1e0] sm:$0xff] }
0x14b1   :  { %3119 = vmatprep.subr.mxu1 %v4514_v29  ;;  %3140 = vmatprep.subr.mxu0 %v4514_v29  ;;  %v2884_v5 = vld [vmem:[#allocation3 + $0x1d8] sm:$0xff]  ;;  %v2883_v28 = vld [vmem:[#allocation3 + $0x1d0] sm:$0xff]  ;;  %v2882_v61 = vld [vmem:[#allocation3 + $0x1c8] sm:$0xff] }
0x14b2   :  { %3120 = vmatpush3.msra.mxu1 %v2619_v8  ;;  %3141 = vmatpush3.msra.mxu0 %v2721_v7  ;;  %v2881_v8 = vld [vmem:[#allocation3 + $0x1c0] sm:$0xff] }
0x14b3   :  { %3121 = vmatprep.subr.mxu1 %v4514_v29  ;;  %3142 = vmatprep.subr.mxu0 %v4514_v29 }
0x14b4   :  { %3122 = vmatpush3.msra.mxu1 %v2618_v6  ;;  %3143 = vmatpush3.msra.mxu0 %v2720_v63  ;;  %v2880_v6 = vld [vmem:[#allocation3 + $0x1b8] sm:$0xff]  ;;  %v3012_v63 = vld [vmem:[#allocation3 + $0x190] ss:$0 sm:$0xff] }
0x14b5   :  { %3123 = vmatprep.subr.mxu1 %v4514_v29  ;;  %3144 = vmatprep.subr.mxu0 %v4514_v29 }
0x14b6   :  { %3124 = vmatpush3.msra.mxu1 %v2617_v42  ;;  %3145 = vmatpush3.msra.mxu0 %v2719_v1  ;;  %v2879_v42 = vld [vmem:[#allocation3 + $0x1b0] sm:$0xff] }
0x14b7   :  { %3125 = vmatprep.subr.mxu1 %v4514_v29  ;;  %3146 = vmatprep.subr.mxu0 %v4514_v29 }
0x14b8   :  { %3126 = vmatpush3.msra.mxu1 %v2616_v41  ;;  %3147 = vmatpush3.msra.mxu0 %v2718_v37 }
0x14b9   :  { %3127 = vmatprep.subr.mxu1 %v4514_v29  ;;  %3148 = vmatprep.subr.mxu0 %v4514_v29 }
0x14ba   :  { %3128 = vmatpush3.msra.mxu1 %v2615_v35  ;;  %3149 = vmatpush3.msra.mxu0 %v2717_v32  ;;  %v2878_v35 = vld [vmem:[#allocation3 + $0x1a8] sm:$0xff] }
0x14bb   :  { %3129 = vmatprep.subr.mxu1 %v4514_v29  ;;  %3150 = vmatprep.subr.mxu0 %v4514_v29 }
0x14bc   :  { %3130 = vmatpush3.msra.mxu1 %v2614_v33  ;;  %3151 = vmatpush3.msra.mxu0 %v2716_v14  ;;  %v3013_v14 = vld [vmem:[#allocation3 + $0x218] ss:$0 sm:$0xff] }
0x14bd   :  { %3131 = vmatprep.subr.mxu1 %v4514_v29  ;;  %3152 = vmatprep.subr.mxu0 %v4514_v29 }
0x14be   :  { %3132 = vmatpush3.msra.mxu1 %v2613_v62  ;;  %3153 = vmatpush3.msra.mxu0 %v2715_v12  ;;  %v2877_v62 = vld [vmem:[#allocation3 + $0x1a0] sm:$0xff] }
0x14bf   :  { %3133 = vmatprep.subr.mxu1 %v4514_v29  ;;  %3154 = vmatprep.subr.mxu0 %v4514_v29 }
0x14c0   :  { %3134 = vmatpush3.msra.mxu1 %v2612_v52  ;;  %3155 = vmatpush3.msra.mxu0 %v2714_v16  ;;  %v2876_v52 = vld [vmem:[#allocation3 + $0x198] sm:$0xff] }
0x14c1   :  { %3173 = vmatprep.subr.mxu1 %v4514_v29  ;;  %3156 = vmatprep.subr.mxu0 %v4514_v29 }
0x14c2   :  { %3157 = vmatpush3.msra.mxu0 %v2713_v46 }
0x14c3   :  { %3158 = vmatprep.subr.mxu0 %v4514_v29 }
0x14c4   :  { %3159 = vmatpush3.msra.mxu0 %v2712_v18 }
0x14c5   :  { %3160 = vmatprep.subr.mxu0 %v4514_v29 }
0x14c6   :  { %3161 = vmatpush3.msra.mxu0 %v2711_v20 }
0x14c7   :  { %3162 = vmatprep.subr.mxu0 %v4514_v29 }
0x14c8   :  { %3163 = vmatpush3.msra.mxu0 %v2710_v21 }
0x14c9   :  { %3164 = vmatprep.subr.mxu0 %v4514_v29 }
0x14ca   :  { %3165 = vmatpush3.msra.mxu0 %v2709_v22 }
0x14cb   :  { %3166 = vmatprep.subr.mxu0 %v4514_v29 }
0x14cc   :  { %3167 = vmatpush3.msra.mxu0 %v2708_v11 }
0x14cd   :  { %3168 = vmatprep.subr.mxu0 %v4514_v29 }
0x14ce   :  { %3169 = vmatpush3.msra.mxu0 %v2707_v15 }
0x14cf   :  { %3192 = vmatprep.subr.mxu0 %v4514_v29 }
0x151b   :  { %v2590_v50 = vpop.permute.xlu0 %2589 }
0x156e   :  { %v2583_v23 = vpop.f32.mrf.mxu0 }
0x156f   :  { %v2595_v55 = vrot.slane %v2583_v23, %v4576_v25 }
0x1570   :  { %v3102_v56 = vpop.f32.mrf.mxu0 }
0x1571   :  { %v2596_v58 = vmul.f32 %v2595_v55, %v2590_v50 }
0x1573   :  { %v2602_v59 = vadd.f32 %v3010_v57, %v2596_v58 }
0x1575   :  { %v2603_v0 = vmax.f32 %v2602_v59, 0.0 }
0x1577   :  { %v2604_v60 = vmul.f32 %v2603_v0, %v2590_v50 }
0x1579   :  { %v2605_v19 = vrot.slane %v2604_v60, 4 }
0x157b   :  { %v2606_v24 = vadd.f32 %v2605_v19, %v2604_v60 }
0x157d   :  { %v2607_v31 = vrot.slane %v2606_v24, 2 }
0x157f   :  { %v2608_v34 = vadd.f32 %v2607_v31, %v2606_v24 }
0x1581   :  { %v2609_v40 = vrot.slane %v2608_v34, 1 }
0x1583   :  { %v2610_v45 = vadd.f32 %v2609_v40, %v2608_v34 }
0x1585   :  { %v2611_v47 = vmul.f32 0.2, %v2610_v45 }
0x1587   :  { %3136 = vmatmul.mubr.f32.vlgmr.msra.gmra.mxu1 %v2611_v47 }
0x1588   :  { %3174 = vmatpush3.msra.mxu1 %v2706_v48  ;;  %3189 = vmatprep.mubr.msk.f32.mxu1 %vm3464_vm3, %v4514_v29 }
0x1589   :  { %3175 = vmatprep.subr.mxu1 %v4514_v29 }
0x158a   :  { %3176 = vmatpush3.msra.mxu1 %v2705_v43 }
0x158b   :  { %3177 = vmatprep.subr.mxu1 %v4514_v29 }
0x158c   :  { %3178 = vmatpush3.msra.mxu1 %v2704_v39 }
0x158d   :  { %3179 = vmatprep.subr.mxu1 %v4514_v29 }
0x158e   :  { %3180 = vmatpush3.msra.mxu1 %v2703_v51 }
0x158f   :  { %3181 = vmatprep.subr.mxu1 %v4514_v29 }
0x1590   :  { %3182 = vmatpush3.msra.mxu1 %v2702_v9 }
0x1591   :  { %3183 = vmatprep.subr.mxu1 %v4514_v29 }
0x1592   :  { %3184 = vmatpush3.msra.mxu1 %v2701_v10 }
0x1593   :  { %3185 = vmatprep.subr.mxu1 %v4514_v29 }
0x1594   :  { %3186 = vmatpush3.msra.mxu1 %v2700_v13 }
0x1595   :  { %3187 = vmatprep.subr.mxu1 %v4514_v29 }
0x1596   :  { %3188 = vmatpush3.msra.mxu1 %v2699_v17 }
0x1597   :  { %3190 = vmatmul.mubr.msk.f32.vlgmr.msra.gmra.mxu1 %vm232_vm1, %v4352_v38  ;;  %v2888_v38 = vld [vmem:[#allocation3 + $0x1f8] sm:$0xff] }
0x1647   :  { %v2695_v53 = vpop.f32.mrf.mxu1 }
0x1648   :  { %v2696_v4 = vadd.f32 %v2695_v53, %v2628_v3 }
0x1649   :  { %v3137_v44 = vpop.f32.mrf.mxu1 }
0x164a   :  { %3171 = vmatmul.mubr.f32.vlgmr.msra.gmra.mxu0 %v2696_v4 }
0x164b   :  { %3193 = vmatpush3.msra.mxu0 %v2891_v26  ;;  %3224 = vmatprep.mubr.msk.f32.mxu0 %vm3464_vm3, %v4514_v29 }
0x164c   :  { %3194 = vmatprep.subr.mxu0 %v4514_v29 }
0x164d   :  { %3195 = vmatpush3.msra.mxu0 %v2890_v36 }
0x164e   :  { %3196 = vmatprep.subr.mxu0 %v4514_v29 }
0x164f   :  { %3197 = vmatpush3.msra.mxu0 %v2889_v49 }
0x1650   :  { %3198 = vmatprep.subr.mxu0 %v4514_v29 }
0x1651   :  { %3199 = vmatpush3.msra.mxu0 %v2888_v38 }
0x1652   :  { %3200 = vmatprep.subr.mxu0 %v4514_v29 }
0x1653   :  { %3201 = vmatpush3.msra.mxu0 %v2887_v30 }
0x1654   :  { %3202 = vmatprep.subr.mxu0 %v4514_v29 }
0x1655   :  { %3203 = vmatpush3.msra.mxu0 %v2886_v54 }
0x1656   :  { %3204 = vmatprep.subr.mxu0 %v4514_v29 }
0x1657   :  { %3205 = vmatpush3.msra.mxu0 %v2885_v2  ;;  %v2866_v41 = vpop.f32.mrf.mxu1 }
0x1658   :  { %3206 = vmatprep.subr.mxu0 %v4514_v29 }
0x1659   :  { %3207 = vmatpush3.msra.mxu0 %v2884_v5  ;;  %v3191_v33 = vpop.f32.mrf.mxu1 }
0x165a   :  { %3208 = vmatprep.subr.mxu0 %v4514_v29 }
0x165b   :  { %3209 = vmatpush3.msra.mxu0 %v2883_v28 }
0x165c   :  { %3210 = vmatprep.subr.mxu0 %v4514_v29 }
0x165d   :  { %3211 = vmatpush3.msra.mxu0 %v2882_v61 }
0x165e   :  { %3212 = vmatprep.subr.mxu0 %v4514_v29 }
0x165f   :  { %3213 = vmatpush3.msra.mxu0 %v2881_v8 }
0x1660   :  { %3214 = vmatprep.subr.mxu0 %v4514_v29 }
0x1661   :  { %3215 = vmatpush3.msra.mxu0 %v2880_v6 }
0x1662   :  { %3216 = vmatprep.subr.mxu0 %v4514_v29 }
0x1663   :  { %3217 = vmatpush3.msra.mxu0 %v2879_v42 }
0x1664   :  { %3218 = vmatprep.subr.mxu0 %v4514_v29 }
0x1665   :  { %3219 = vmatpush3.msra.mxu0 %v2878_v35 }
0x1666   :  { %3220 = vmatprep.subr.mxu0 %v4514_v29 }
0x1667   :  { %3221 = vmatpush3.msra.mxu0 %v2877_v62 }
0x1668   :  { %3222 = vmatprep.subr.mxu0 %v4514_v29 }
0x1669   :  { %3223 = vmatpush3.msra.mxu0 %v2876_v52 }
0x170a   :  { %v2789_v27 = vpop.f32.mrf.mxu0 }
0x170b   :  { %v2796_v7 = vrot.slane %v2789_v27, %v4576_v25 }
0x170c   :  { %v3172_v1 = vpop.f32.mrf.mxu0 }
0x170d   :  { %v2867_v37 = vadd.f32 %v2866_v41, %v2796_v7 }
0x170f   :  { %v2875_v32 = vadd.f32 %v3012_v63, %v2867_v37 }
0x1711   :  { %3225 = vmatmul.mubr.f32.vlgmr.msra.gmra.mxu0 %v2875_v32 }
0x17d1   :  { %v2963_v12 = vpop.f32.mrf.mxu0 }
0x17d2   :  { %v2964_v16 = vadd.f32 %v3013_v14, %v2963_v12 }
0x17d3   :  { %v3226_v46 = vpop.f32.mrf.mxu0 }
0x17d4   :  { %2967 = vst [vmem:[%s4443_s3] sm:$0xff] %v2964_v16 }
0x17d5   :  { %2972 = vsyncpa [#allocation6], 1 }
0x17d6   :  { %2973 = vsyncmov [#allocation4] }
0x17d9   :  { %s2974_s15 = vpop.sfrf %2973 }
0x17da   :  { %p3014_p10 = scmp.ne.s32.totalorder %s2974_s15, 0 }
0x17dc   :  { %2978 = shalt.err (%p3014_p10)  }

</bundles_post_ra>
